<compile_context>
chip_gen: v6e
topology: v6e:2x2x1
jax: 0.10.0
libtpu: 0.0.40
codegen_flags: <defaults>
</compile_context>

<pallas_src>
import jax
import jax.numpy as jnp
from jax import lax
from jax.experimental import pallas as pl
from jax.experimental.pallas import tpu as pltpu


def _sigmoid_via_tanh(x):
    # sigmoid(x) == 0.5 * tanh(0.5 * x) + 0.5 : one EUP push + a VPU fma
    # instead of exp + reciprocal (two EUP pushes) on the serial path.
    return 0.5 * jnp.tanh(0.5 * x) + 0.5


# ----------------------------------------------------------------------------
# Kernel: entire LSTM recurrence + FC projection in one invocation
# ----------------------------------------------------------------------------
def _decoder_kernel(x_ref, h0_ref, c0_ref, wih_ref, whh_ref, b_ref,
                    wfc_ref, bfc_ref, out_ref, xproj_sc, hall_sc):
    """Shapes (B = padded batch, OUTp = padded output dim):

    x_ref   : (S*B, IN)   bf16, time-major, batch-padded, flattened over (S, B)
    h0/c0   : (B, H)      f32 initial hidden / cell state (batch-padded)
    wih_ref : (IN, 4H)    bf16 W_ih^T
    whh_ref : (H, 4H)     bf16 W_hh^T
    b_ref   : (1, 4H)     f32  b_ih + b_hh
    wfc_ref : (H, OUTp)   bf16 W_fc^T (zero-padded columns)
    bfc_ref : (1, OUTp)   f32
    out_ref : (S*B, OUTp) f32
    xproj_sc: VMEM (S*B, 4H) f32  — input projection for all time steps
    hall_sc : VMEM (S*B, H)  bf16 — all hidden states (MXU operand for FC)
    """
    B, H = h0_ref.shape
    S = x_ref.shape[0] // B

    # ---- Prologue: one bf16 MXU matmul (f32 accumulate) for the input
    # projection of ALL steps, with the pre-summed gate bias fused in.
    xproj_sc[...] = (
        jnp.dot(x_ref[...], wih_ref[...], preferred_element_type=jnp.float32)
        + b_ref[...]
    )

    # Hoist the loop-invariant recurrent weight (bf16) out of the time loop.
    # TODO(synk): pltpu.matmul_push_rhs/acc_lhs weight-stationary variant if
    # bundle dumps show W_hh being re-pushed into the MXU every step.
    w_hh = whh_ref[...]

    def step(t, carry):
        h, c = carry
        row = pl.multiple_of(t * B, B)                 # B is a multiple of 8
        gates = xproj_sc[pl.ds(row, B), :] + jnp.dot(
            h.astype(jnp.bfloat16), w_hh,
            preferred_element_type=jnp.float32)        # (B, 4H) f32

        # PyTorch gate order: input, forget, cell(g), output.
        # H % 128 == 0 keeps these slices lane-block aligned (no XLU).
        i = _sigmoid_via_tanh(gates[:, 0 * H:1 * H])
        f = _sigmoid_via_tanh(gates[:, 1 * H:2 * H])
        g = jnp.tanh(gates[:, 2 * H:3 * H])
        o = _sigmoid_via_tanh(gates[:, 3 * H:4 * H])

        c_new = f * c + i * g
        h_new = o * jnp.tanh(c_new)
        hall_sc[pl.ds(row, B), :] = h_new.astype(hall_sc.dtype)
        return h_new, c_new

    h0 = h0_ref[...].astype(jnp.float32)
    c0 = c0_ref[...].astype(jnp.float32)
    lax.fori_loop(0, S, step, (h0, c0), unroll=True)   # short, fully unrolled

    # ---- Epilogue: one batched bf16 FC matmul + one lane-dense f32 store.
    out_ref[...] = (
        jnp.dot(hall_sc[...], wfc_ref[...], preferred_element_type=jnp.float32)
        + bfc_ref[...]
    ).astype(out_ref.dtype)


# ----------------------------------------------------------------------------
# Wrapper (layout conversion, padding, weight pre-transpose, pallas_call)
# ----------------------------------------------------------------------------
def _round_up(x, m):
    return (x + m - 1) // m * m


@jax.jit
def decoder_forward(x, hidden, params):
    """x: (B, S, IN) float32, batch_first like PyTorch.
    hidden = (h0, c0), each (num_layers=1, B, H).
    Returns (B, S, OUT)."""
    h0, c0 = hidden
    assert h0.shape[0] == 1 and c0.shape[0] == 1, "kernel assumes num_layers == 1"
    B, S, IN = x.shape
    H = params["w_hh"].shape[1]
    OUT = params["w_fc"].shape[0]
    assert IN % 128 == 0 and H % 128 == 0, "kernel assumes lane-aligned IN and H"

    B_pad = _round_up(max(B, 8), 8)        # full sublanes for every vector op
    OUT_pad = _round_up(OUT, 128)          # lane-dense (unmasked) output store

    # Parameter prep (fused into the same jit): pre-transpose, merge biases,
    # pad OUT, cast MXU operands to bf16 (biases / states stay f32).
    w_ih_t = params["w_ih"].T.astype(jnp.bfloat16)                       # (IN, 4H)
    w_hh_t = params["w_hh"].T.astype(jnp.bfloat16)                       # (H, 4H)
    b_gate = (params["b_ih"] + params["b_hh"]).reshape(1, 4 * H)         # (1, 4H)
    w_fc_t = jnp.pad(params["w_fc"],
                     ((0, OUT_pad - OUT), (0, 0))).T.astype(jnp.bfloat16)  # (H, OUTp)
    b_fc = jnp.pad(params["b_fc"], (0, OUT_pad - OUT)).reshape(1, OUT_pad)

    # Input prep: pad batch to sublane width, go time-major, flatten (S, B).
    x_p = jnp.pad(x, ((0, B_pad - B), (0, 0), (0, 0)))
    x_tm = (jnp.transpose(x_p, (1, 0, 2))
            .reshape(S * B_pad, IN).astype(jnp.bfloat16))                # (S*B, IN)
    h0_p = jnp.pad(h0[0], ((0, B_pad - B), (0, 0))).astype(jnp.float32)
    c0_p = jnp.pad(c0[0], ((0, B_pad - B), (0, 0))).astype(jnp.float32)

    vmem_spec = pl.BlockSpec(memory_space=pltpu.MemorySpace.VMEM)

    out2d = pl.pallas_call(
        _decoder_kernel,
        out_shape=jax.ShapeDtypeStruct((S * B_pad, OUT_pad), jnp.float32),
        in_specs=[vmem_spec] * 8,          # no grid -> no redundant double-buffering
        out_specs=vmem_spec,
        scratch_shapes=[
            pltpu.VMEM((S * B_pad, 4 * H), jnp.float32),   # x projection (all steps)
            pltpu.VMEM((S * B_pad, H), jnp.bfloat16),      # all h_t (FC MXU operand)
        ],
    )(x_tm, h0_p, c0_p, w_ih_t, w_hh_t, b_gate, w_fc_t, b_fc)

    out = out2d.reshape(S, B_pad, OUT_pad)[:, :B, :OUT]                  # drop padding
    return jnp.transpose(out, (1, 0, 2))                                 # (B, S, OUT)


# ----------------------------------------------------------------------------
# Pure-JAX references (for correctness checks)
# ----------------------------------------------------------------------------
def _lstm_ref(x, hidden, params, mxu_dtype):
    """Reference with matmul operands cast to `mxu_dtype` (f32 accumulate),
    elementwise math in f32 — mirrors exact PyTorch semantics when
    mxu_dtype == float32."""
    h0, c0 = hidden
    h, c = h0[0].astype(jnp.float32), c0[0].astype(jnp.float32)
    H = params["w_hh"].shape[1]
    w_ih_t = params["w_ih"].T.astype(mxu_dtype)
    w_hh_t = params["w_hh"].T.astype(mxu_dtype)
    w_fc_t = params["w_fc"].T.astype(mxu_dtype)
    outs = []
    for t in range(x.shape[1]):
        x_t = x[:, t, :].astype(mxu_dtype)
        gates = (jnp.dot(x_t, w_ih_t, preferred_element_type=jnp.float32)
                 + params["b_ih"] + params["b_hh"]
                 + jnp.dot(h.astype(mxu_dtype), w_hh_t,
                           preferred_element_type=jnp.float32))
        i = jax.nn.sigmoid(gates[:, 0 * H:1 * H])
        f = jax.nn.sigmoid(gates[:, 1 * H:2 * H])
        g = jnp.tanh(gates[:, 2 * H:3 * H])
        o = jax.nn.sigmoid(gates[:, 3 * H:4 * H])
        c = f * c + i * g
        h = o * jnp.tanh(c)
        outs.append(h)
    h_all = jnp.stack(outs, axis=1)                                      # (B, S, H)
    return (jnp.dot(h_all.astype(mxu_dtype), w_fc_t,
                    preferred_element_type=jnp.float32) + params["b_fc"])


def decoder_reference(x, hidden, params):
    return _lstm_ref(x, hidden, params, jnp.float32)     # exact module semantics


def decoder_reference_bf16(x, hidden, params):
    return _lstm_ref(x, hidden, params, jnp.bfloat16)    # emulates kernel's MXU dtype


# ----------------------------------------------------------------------------
# Main
# ----------------------------------------------------------------------------
if __name__ == "__main__":
    # Module-consistent small shapes: input_size=128, hidden_size=256,
    # output_size (len(target_features)) taken as 8, num_layers=1.
    B, S, IN, H, OUT = 2, 8, 128, 256, 8
    NUM_LAYERS = 1

    key = jax.random.PRNGKey(0)
    ks = jax.random.split(key, 9)
    scale = 0.1
    params = {
        "w_ih": scale * jax.random.normal(ks[0], (4 * H, IN), jnp.float32),
        "w_hh": scale * jax.random.normal(ks[1], (4 * H, H), jnp.float32),
        "b_ih": scale * jax.random.normal(ks[2], (4 * H,), jnp.float32),
        "b_hh": scale * jax.random.normal(ks[3], (4 * H,), jnp.float32),
        "w_fc": scale * jax.random.normal(ks[4], (OUT, H), jnp.float32),
        "b_fc": scale * jax.random.normal(ks[5], (OUT,), jnp.float32),
    }

    x = jax.random.normal(ks[6], (B, S, IN), jnp.float32)
    h0 = jax.random.normal(ks[7], (NUM_LAYERS, B, H), jnp.float32)
    c0 = jax.random.normal(ks[8], (NUM_LAYERS, B, H), jnp.float32)

    out = decoder_forward(x, (h0, c0), params)
    out = jax.block_until_ready(out)
    assert out.shape == (B, S, OUT), out.shape

    # Tight check vs. a reference that uses the same bf16 MXU-operand scheme.
    ref_bf16 = decoder_reference_bf16(x, (h0, c0), params)
    assert jnp.allclose(out, ref_bf16, atol=2e-3, rtol=2e-3), \
        "mismatch vs bf16-MXU reference"

    # Loose check vs. the exact f32 module semantics (bf16 MXU operands
    # introduce a small, bounded deviation through the saturating gates).
    ref_f32 = decoder_reference(x, (h0, c0), params)
    assert jnp.allclose(out, ref_f32, atol=1e-1, rtol=1e-1), \
        "mismatch vs exact f32 reference"

    print("KERNEL_OK")
</pallas_src>

<mosaic_0001>
module attributes {stable_mosaic.version = 11 : i64} {
  func.func @_decoder_kernel(%arg0: memref<64x128xbf16, #tpu.memory_space<vmem>>, %arg1: memref<8x256xf32, #tpu.memory_space<vmem>>, %arg2: memref<8x256xf32, #tpu.memory_space<vmem>>, %arg3: memref<128x1024xbf16, #tpu.memory_space<vmem>>, %arg4: memref<256x1024xbf16, #tpu.memory_space<vmem>>, %arg5: memref<1x1024xf32, #tpu.memory_space<vmem>>, %arg6: memref<256x128xbf16, #tpu.memory_space<vmem>>, %arg7: memref<1x128xf32, #tpu.memory_space<vmem>>, %arg8: memref<64x128xf32, #tpu.memory_space<vmem>>, %arg9: memref<64x1024xf32, #tpu.memory_space<vmem>>, %arg10: memref<64x256xbf16, #tpu.memory_space<vmem>>) attributes {dimension_semantics = [], scalar_prefetch = 0 : i64, scratch_operands = 2 : i64, tpu.core_type = #tpu.core_type<tc>} {
    %c0 = arith.constant 0 : index
    %c0_0 = arith.constant 0 : index
    %0 = vector.load %arg0[%c0, %c0_0] : memref<64x128xbf16, #tpu.memory_space<vmem>>, vector<64x128xbf16>
    %c0_1 = arith.constant 0 : index
    %c0_2 = arith.constant 0 : index
    %1 = vector.load %arg3[%c0_1, %c0_2] : memref<128x1024xbf16, #tpu.memory_space<vmem>>, vector<128x1024xbf16>
    %cst = arith.constant dense<0.000000e+00> : vector<64x1024xf32>
    %2 = tpu.matmul %0, %1, %cst {dimension_numbers = #tpu.dot_dimension_numbers<[1], [0], [0], [1], [0, 0, 1, 1], [], []>} : vector<64x128xbf16>, vector<128x1024xbf16>, vector<64x1024xf32> -> vector<64x1024xf32>
    %c0_3 = arith.constant 0 : index
    %c0_4 = arith.constant 0 : index
    %3 = vector.load %arg5[%c0_3, %c0_4] : memref<1x1024xf32, #tpu.memory_space<vmem>>, vector<1x1024xf32>
    %4 = vector.broadcast %3 : vector<1x1024xf32> to vector<64x1024xf32>
    %5 = arith.addf %2, %4 : vector<64x1024xf32>
    %c0_5 = arith.constant 0 : index
    %c0_6 = arith.constant 0 : index
    %6 = vector.load %arg9[%c0_5, %c0_6] : memref<64x1024xf32, #tpu.memory_space<vmem>>, vector<64x1024xf32>
    tpu.vector_store %arg9[%c0_5, %c0_6], %5 {strides = array<i32>} : memref<64x1024xf32, #tpu.memory_space<vmem>>, vector<64x1024xf32>,
    %c0_7 = arith.constant 0 : index
    %c0_8 = arith.constant 0 : index
    %7 = vector.load %arg4[%c0_7, %c0_8] : memref<256x1024xbf16, #tpu.memory_space<vmem>>, vector<256x1024xbf16>
    %c0_9 = arith.constant 0 : index
    %c0_10 = arith.constant 0 : index
    %8 = vector.load %arg1[%c0_9, %c0_10] : memref<8x256xf32, #tpu.memory_space<vmem>>, vector<8x256xf32>
    %c0_11 = arith.constant 0 : index
    %c0_12 = arith.constant 0 : index
    %9 = vector.load %arg2[%c0_11, %c0_12] : memref<8x256xf32, #tpu.memory_space<vmem>>, vector<8x256xf32>
    %c0_i32 = arith.constant 0 : i32
    %c8_i32 = arith.constant 8 : i32
    %10 = arith.muli %c0_i32, %c8_i32 : i32
    %11 = tpu.assume_multiple %10, 8 : i32
    %12 = arith.index_cast %11 : i32 to index
    %c0_13 = arith.constant 0 : index
    %13 = vector.load %arg9[%12, %c0_13] : memref<64x1024xf32, #tpu.memory_space<vmem>>, vector<8x1024xf32>
    %14 = arith.truncf %8 : vector<8x256xf32> to vector<8x256xbf16>
    %cst_14 = arith.constant dense<0.000000e+00> : vector<8x1024xf32>
    %15 = tpu.matmul %14, %7, %cst_14 {dimension_numbers = #tpu.dot_dimension_numbers<[1], [0], [0], [1], [0, 0, 1, 1], [], []>} : vector<8x256xbf16>, vector<256x1024xbf16>, vector<8x1024xf32> -> vector<8x1024xf32>
    %16 = arith.addf %13, %15 : vector<8x1024xf32>
    %17 = vector.extract_strided_slice %16 {offsets = [0, 0], sizes = [8, 256], strides = [1, 1]} : vector<8x1024xf32> to vector<8x256xf32>
    %cst_15 = arith.constant 5.000000e-01 : f32
    %18 = vector.broadcast %cst_15 : f32 to vector<8x256xf32>
    %19 = arith.mulf %18, %17 : vector<8x256xf32>
    %20 = math.tanh %19 : vector<8x256xf32>
    %cst_16 = arith.constant 5.000000e-01 : f32
    %21 = vector.broadcast %cst_16 : f32 to vector<8x256xf32>
    %22 = arith.mulf %21, %20 : vector<8x256xf32>
    %cst_17 = arith.constant 5.000000e-01 : f32
    %23 = vector.broadcast %cst_17 : f32 to vector<8x256xf32>
    %24 = arith.addf %22, %23 : vector<8x256xf32>
    %25 = vector.extract_strided_slice %16 {offsets = [0, 256], sizes = [8, 256], strides = [1, 1]} : vector<8x1024xf32> to vector<8x256xf32>
    %cst_18 = arith.constant 5.000000e-01 : f32
    %26 = vector.broadcast %cst_18 : f32 to vector<8x256xf32>
    %27 = arith.mulf %26, %25 : vector<8x256xf32>
    %28 = math.tanh %27 : vector<8x256xf32>
    %cst_19 = arith.constant 5.000000e-01 : f32
    %29 = vector.broadcast %cst_19 : f32 to vector<8x256xf32>
    %30 = arith.mulf %29, %28 : vector<8x256xf32>
    %cst_20 = arith.constant 5.000000e-01 : f32
    %31 = vector.broadcast %cst_20 : f32 to vector<8x256xf32>
    %32 = arith.addf %30, %31 : vector<8x256xf32>
    %33 = vector.extract_strided_slice %16 {offsets = [0, 512], sizes = [8, 256], strides = [1, 1]} : vector<8x1024xf32> to vector<8x256xf32>
    %34 = math.tanh %33 : vector<8x256xf32>
    %35 = vector.extract_strided_slice %16 {offsets = [0, 768], sizes = [8, 256], strides = [1, 1]} : vector<8x1024xf32> to vector<8x256xf32>
    %cst_21 = arith.constant 5.000000e-01 : f32
    %36 = vector.broadcast %cst_21 : f32 to vector<8x256xf32>
    %37 = arith.mulf %36, %35 : vector<8x256xf32>
    %38 = math.tanh %37 : vector<8x256xf32>
    %cst_22 = arith.constant 5.000000e-01 : f32
    %39 = vector.broadcast %cst_22 : f32 to vector<8x256xf32>
    %40 = arith.mulf %39, %38 : vector<8x256xf32>
    %cst_23 = arith.constant 5.000000e-01 : f32
    %41 = vector.broadcast %cst_23 : f32 to vector<8x256xf32>
    %42 = arith.addf %40, %41 : vector<8x256xf32>
    %43 = arith.mulf %32, %9 : vector<8x256xf32>
    %44 = arith.mulf %24, %34 : vector<8x256xf32>
    %45 = arith.addf %43, %44 : vector<8x256xf32>
    %46 = math.tanh %45 : vector<8x256xf32>
    %47 = arith.mulf %42, %46 : vector<8x256xf32>
    %48 = arith.truncf %47 : vector<8x256xf32> to vector<8x256xbf16>
    %49 = arith.index_cast %11 : i32 to index
    %c0_24 = arith.constant 0 : index
    %50 = vector.load %arg10[%49, %c0_24] : memref<64x256xbf16, #tpu.memory_space<vmem>>, vector<8x256xbf16>
    tpu.vector_store %arg10[%49, %c0_24], %48 {strides = array<i32>} : memref<64x256xbf16, #tpu.memory_space<vmem>>, vector<8x256xbf16>,
    %c1_i32 = arith.constant 1 : i32
    %c8_i32_25 = arith.constant 8 : i32
    %51 = arith.muli %c1_i32, %c8_i32_25 : i32
    %52 = tpu.assume_multiple %51, 8 : i32
    %53 = arith.index_cast %52 : i32 to index
    %c0_26 = arith.constant 0 : index
    %54 = vector.load %arg9[%53, %c0_26] : memref<64x1024xf32, #tpu.memory_space<vmem>>, vector<8x1024xf32>
    %55 = arith.truncf %47 : vector<8x256xf32> to vector<8x256xbf16>
    %cst_27 = arith.constant dense<0.000000e+00> : vector<8x1024xf32>
    %56 = tpu.matmul %55, %7, %cst_27 {dimension_numbers = #tpu.dot_dimension_numbers<[1], [0], [0], [1], [0, 0, 1, 1], [], []>} : vector<8x256xbf16>, vector<256x1024xbf16>, vector<8x1024xf32> -> vector<8x1024xf32>
    %57 = arith.addf %54, %56 : vector<8x1024xf32>
    %58 = vector.extract_strided_slice %57 {offsets = [0, 0], sizes = [8, 256], strides = [1, 1]} : vector<8x1024xf32> to vector<8x256xf32>
    %cst_28 = arith.constant 5.000000e-01 : f32
    %59 = vector.broadcast %cst_28 : f32 to vector<8x256xf32>
    %60 = arith.mulf %59, %58 : vector<8x256xf32>
    %61 = math.tanh %60 : vector<8x256xf32>
    %cst_29 = arith.constant 5.000000e-01 : f32
    %62 = vector.broadcast %cst_29 : f32 to vector<8x256xf32>
    %63 = arith.mulf %62, %61 : vector<8x256xf32>
    %cst_30 = arith.constant 5.000000e-01 : f32
    %64 = vector.broadcast %cst_30 : f32 to vector<8x256xf32>
    %65 = arith.addf %63, %64 : vector<8x256xf32>
    %66 = vector.extract_strided_slice %57 {offsets = [0, 256], sizes = [8, 256], strides = [1, 1]} : vector<8x1024xf32> to vector<8x256xf32>
    %cst_31 = arith.constant 5.000000e-01 : f32
    %67 = vector.broadcast %cst_31 : f32 to vector<8x256xf32>
    %68 = arith.mulf %67, %66 : vector<8x256xf32>
    %69 = math.tanh %68 : vector<8x256xf32>
    %cst_32 = arith.constant 5.000000e-01 : f32
    %70 = vector.broadcast %cst_32 : f32 to vector<8x256xf32>
    %71 = arith.mulf %70, %69 : vector<8x256xf32>
    %cst_33 = arith.constant 5.000000e-01 : f32
    %72 = vector.broadcast %cst_33 : f32 to vector<8x256xf32>
    %73 = arith.addf %71, %72 : vector<8x256xf32>
    %74 = vector.extract_strided_slice %57 {offsets = [0, 512], sizes = [8, 256], strides = [1, 1]} : vector<8x1024xf32> to vector<8x256xf32>
    %75 = math.tanh %74 : vector<8x256xf32>
    %76 = vector.extract_strided_slice %57 {offsets = [0, 768], sizes = [8, 256], strides = [1, 1]} : vector<8x1024xf32> to vector<8x256xf32>
    %cst_34 = arith.constant 5.000000e-01 : f32
    %77 = vector.broadcast %cst_34 : f32 to vector<8x256xf32>
    %78 = arith.mulf %77, %76 : vector<8x256xf32>
    %79 = math.tanh %78 : vector<8x256xf32>
    %cst_35 = arith.constant 5.000000e-01 : f32
    %80 = vector.broadcast %cst_35 : f32 to vector<8x256xf32>
    %81 = arith.mulf %80, %79 : vector<8x256xf32>
    %cst_36 = arith.constant 5.000000e-01 : f32
    %82 = vector.broadcast %cst_36 : f32 to vector<8x256xf32>
    %83 = arith.addf %81, %82 : vector<8x256xf32>
    %84 = arith.mulf %73, %45 : vector<8x256xf32>
    %85 = arith.mulf %65, %75 : vector<8x256xf32>
    %86 = arith.addf %84, %85 : vector<8x256xf32>
    %87 = math.tanh %86 : vector<8x256xf32>
    %88 = arith.mulf %83, %87 : vector<8x256xf32>
    %89 = arith.truncf %88 : vector<8x256xf32> to vector<8x256xbf16>
    %90 = arith.index_cast %52 : i32 to index
    %c0_37 = arith.constant 0 : index
    %91 = vector.load %arg10[%90, %c0_37] : memref<64x256xbf16, #tpu.memory_space<vmem>>, vector<8x256xbf16>
    tpu.vector_store %arg10[%90, %c0_37], %89 {strides = array<i32>} : memref<64x256xbf16, #tpu.memory_space<vmem>>, vector<8x256xbf16>,
    %c2_i32 = arith.constant 2 : i32
    %c8_i32_38 = arith.constant 8 : i32
    %92 = arith.muli %c2_i32, %c8_i32_38 : i32
    %93 = tpu.assume_multiple %92, 8 : i32
    %94 = arith.index_cast %93 : i32 to index
    %c0_39 = arith.constant 0 : index
    %95 = vector.load %arg9[%94, %c0_39] : memref<64x1024xf32, #tpu.memory_space<vmem>>, vector<8x1024xf32>
    %96 = arith.truncf %88 : vector<8x256xf32> to vector<8x256xbf16>
    %cst_40 = arith.constant dense<0.000000e+00> : vector<8x1024xf32>
    %97 = tpu.matmul %96, %7, %cst_40 {dimension_numbers = #tpu.dot_dimension_numbers<[1], [0], [0], [1], [0, 0, 1, 1], [], []>} : vector<8x256xbf16>, vector<256x1024xbf16>, vector<8x1024xf32> -> vector<8x1024xf32>
    %98 = arith.addf %95, %97 : vector<8x1024xf32>
    %99 = vector.extract_strided_slice %98 {offsets = [0, 0], sizes = [8, 256], strides = [1, 1]} : vector<8x1024xf32> to vector<8x256xf32>
    %cst_41 = arith.constant 5.000000e-01 : f32
    %100 = vector.broadcast %cst_41 : f32 to vector<8x256xf32>
    %101 = arith.mulf %100, %99 : vector<8x256xf32>
    %102 = math.tanh %101 : vector<8x256xf32>
    %cst_42 = arith.constant 5.000000e-01 : f32
    %103 = vector.broadcast %cst_42 : f32 to vector<8x256xf32>
    %104 = arith.mulf %103, %102 : vector<8x256xf32>
    %cst_43 = arith.constant 5.000000e-01 : f32
    %105 = vector.broadcast %cst_43 : f32 to vector<8x256xf32>
    %106 = arith.addf %104, %105 : vector<8x256xf32>
    %107 = vector.extract_strided_slice %98 {offsets = [0, 256], sizes = [8, 256], strides = [1, 1]} : vector<8x1024xf32> to vector<8x256xf32>
    %cst_44 = arith.constant 5.000000e-01 : f32
    %108 = vector.broadcast %cst_44 : f32 to vector<8x256xf32>
    %109 = arith.mulf %108, %107 : vector<8x256xf32>
    %110 = math.tanh %109 : vector<8x256xf32>
    %cst_45 = arith.constant 5.000000e-01 : f32
    %111 = vector.broadcast %cst_45 : f32 to vector<8x256xf32>
    %112 = arith.mulf %111, %110 : vector<8x256xf32>
    %cst_46 = arith.constant 5.000000e-01 : f32
    %113 = vector.broadcast %cst_46 : f32 to vector<8x256xf32>
    %114 = arith.addf %112, %113 : vector<8x256xf32>
    %115 = vector.extract_strided_slice %98 {offsets = [0, 512], sizes = [8, 256], strides = [1, 1]} : vector<8x1024xf32> to vector<8x256xf32>
    %116 = math.tanh %115 : vector<8x256xf32>
    %117 = vector.extract_strided_slice %98 {offsets = [0, 768], sizes = [8, 256], strides = [1, 1]} : vector<8x1024xf32> to vector<8x256xf32>
    %cst_47 = arith.constant 5.000000e-01 : f32
    %118 = vector.broadcast %cst_47 : f32 to vector<8x256xf32>
    %119 = arith.mulf %118, %117 : vector<8x256xf32>
    %120 = math.tanh %119 : vector<8x256xf32>
    %cst_48 = arith.constant 5.000000e-01 : f32
    %121 = vector.broadcast %cst_48 : f32 to vector<8x256xf32>
    %122 = arith.mulf %121, %120 : vector<8x256xf32>
    %cst_49 = arith.constant 5.000000e-01 : f32
    %123 = vector.broadcast %cst_49 : f32 to vector<8x256xf32>
    %124 = arith.addf %122, %123 : vector<8x256xf32>
    %125 = arith.mulf %114, %86 : vector<8x256xf32>
    %126 = arith.mulf %106, %116 : vector<8x256xf32>
    %127 = arith.addf %125, %126 : vector<8x256xf32>
    %128 = math.tanh %127 : vector<8x256xf32>
    %129 = arith.mulf %124, %128 : vector<8x256xf32>
    %130 = arith.truncf %129 : vector<8x256xf32> to vector<8x256xbf16>
    %131 = arith.index_cast %93 : i32 to index
    %c0_50 = arith.constant 0 : index
    %132 = vector.load %arg10[%131, %c0_50] : memref<64x256xbf16, #tpu.memory_space<vmem>>, vector<8x256xbf16>
    tpu.vector_store %arg10[%131, %c0_50], %130 {strides = array<i32>} : memref<64x256xbf16, #tpu.memory_space<vmem>>, vector<8x256xbf16>,
    %c3_i32 = arith.constant 3 : i32
    %c8_i32_51 = arith.constant 8 : i32
    %133 = arith.muli %c3_i32, %c8_i32_51 : i32
    %134 = tpu.assume_multiple %133, 8 : i32
    %135 = arith.index_cast %134 : i32 to index
    %c0_52 = arith.constant 0 : index
    %136 = vector.load %arg9[%135, %c0_52] : memref<64x1024xf32, #tpu.memory_space<vmem>>, vector<8x1024xf32>
    %137 = arith.truncf %129 : vector<8x256xf32> to vector<8x256xbf16>
    %cst_53 = arith.constant dense<0.000000e+00> : vector<8x1024xf32>
    %138 = tpu.matmul %137, %7, %cst_53 {dimension_numbers = #tpu.dot_dimension_numbers<[1], [0], [0], [1], [0, 0, 1, 1], [], []>} : vector<8x256xbf16>, vector<256x1024xbf16>, vector<8x1024xf32> -> vector<8x1024xf32>
    %139 = arith.addf %136, %138 : vector<8x1024xf32>
    %140 = vector.extract_strided_slice %139 {offsets = [0, 0], sizes = [8, 256], strides = [1, 1]} : vector<8x1024xf32> to vector<8x256xf32>
    %cst_54 = arith.constant 5.000000e-01 : f32
    %141 = vector.broadcast %cst_54 : f32 to vector<8x256xf32>
    %142 = arith.mulf %141, %140 : vector<8x256xf32>
    %143 = math.tanh %142 : vector<8x256xf32>
    %cst_55 = arith.constant 5.000000e-01 : f32
    %144 = vector.broadcast %cst_55 : f32 to vector<8x256xf32>
    %145 = arith.mulf %144, %143 : vector<8x256xf32>
    %cst_56 = arith.constant 5.000000e-01 : f32
    %146 = vector.broadcast %cst_56 : f32 to vector<8x256xf32>
    %147 = arith.addf %145, %146 : vector<8x256xf32>
    %148 = vector.extract_strided_slice %139 {offsets = [0, 256], sizes = [8, 256], strides = [1, 1]} : vector<8x1024xf32> to vector<8x256xf32>
    %cst_57 = arith.constant 5.000000e-01 : f32
    %149 = vector.broadcast %cst_57 : f32 to vector<8x256xf32>
    %150 = arith.mulf %149, %148 : vector<8x256xf32>
    %151 = math.tanh %150 : vector<8x256xf32>
    %cst_58 = arith.constant 5.000000e-01 : f32
    %152 = vector.broadcast %cst_58 : f32 to vector<8x256xf32>
    %153 = arith.mulf %152, %151 : vector<8x256xf32>
    %cst_59 = arith.constant 5.000000e-01 : f32
    %154 = vector.broadcast %cst_59 : f32 to vector<8x256xf32>
    %155 = arith.addf %153, %154 : vector<8x256xf32>
    %156 = vector.extract_strided_slice %139 {offsets = [0, 512], sizes = [8, 256], strides = [1, 1]} : vector<8x1024xf32> to vector<8x256xf32>
    %157 = math.tanh %156 : vector<8x256xf32>
    %158 = vector.extract_strided_slice %139 {offsets = [0, 768], sizes = [8, 256], strides = [1, 1]} : vector<8x1024xf32> to vector<8x256xf32>
    %cst_60 = arith.constant 5.000000e-01 : f32
    %159 = vector.broadcast %cst_60 : f32 to vector<8x256xf32>
    %160 = arith.mulf %159, %158 : vector<8x256xf32>
    %161 = math.tanh %160 : vector<8x256xf32>
    %cst_61 = arith.constant 5.000000e-01 : f32
    %162 = vector.broadcast %cst_61 : f32 to vector<8x256xf32>
    %163 = arith.mulf %162, %161 : vector<8x256xf32>
    %cst_62 = arith.constant 5.000000e-01 : f32
    %164 = vector.broadcast %cst_62 : f32 to vector<8x256xf32>
    %165 = arith.addf %163, %164 : vector<8x256xf32>
    %166 = arith.mulf %155, %127 : vector<8x256xf32>
    %167 = arith.mulf %147, %157 : vector<8x256xf32>
    %168 = arith.addf %166, %167 : vector<8x256xf32>
    %169 = math.tanh %168 : vector<8x256xf32>
    %170 = arith.mulf %165, %169 : vector<8x256xf32>
    %171 = arith.truncf %170 : vector<8x256xf32> to vector<8x256xbf16>
    %172 = arith.index_cast %134 : i32 to index
    %c0_63 = arith.constant 0 : index
    %173 = vector.load %arg10[%172, %c0_63] : memref<64x256xbf16, #tpu.memory_space<vmem>>, vector<8x256xbf16>
    tpu.vector_store %arg10[%172, %c0_63], %171 {strides = array<i32>} : memref<64x256xbf16, #tpu.memory_space<vmem>>, vector<8x256xbf16>,
    %c4_i32 = arith.constant 4 : i32
    %c8_i32_64 = arith.constant 8 : i32
    %174 = arith.muli %c4_i32, %c8_i32_64 : i32
    %175 = tpu.assume_multiple %174, 8 : i32
    %176 = arith.index_cast %175 : i32 to index
    %c0_65 = arith.constant 0 : index
    %177 = vector.load %arg9[%176, %c0_65] : memref<64x1024xf32, #tpu.memory_space<vmem>>, vector<8x1024xf32>
    %178 = arith.truncf %170 : vector<8x256xf32> to vector<8x256xbf16>
    %cst_66 = arith.constant dense<0.000000e+00> : vector<8x1024xf32>
    %179 = tpu.matmul %178, %7, %cst_66 {dimension_numbers = #tpu.dot_dimension_numbers<[1], [0], [0], [1], [0, 0, 1, 1], [], []>} : vector<8x256xbf16>, vector<256x1024xbf16>, vector<8x1024xf32> -> vector<8x1024xf32>
    %180 = arith.addf %177, %179 : vector<8x1024xf32>
    %181 = vector.extract_strided_slice %180 {offsets = [0, 0], sizes = [8, 256], strides = [1, 1]} : vector<8x1024xf32> to vector<8x256xf32>
    %cst_67 = arith.constant 5.000000e-01 : f32
    %182 = vector.broadcast %cst_67 : f32 to vector<8x256xf32>
    %183 = arith.mulf %182, %181 : vector<8x256xf32>
    %184 = math.tanh %183 : vector<8x256xf32>
    %cst_68 = arith.constant 5.000000e-01 : f32
    %185 = vector.broadcast %cst_68 : f32 to vector<8x256xf32>
    %186 = arith.mulf %185, %184 : vector<8x256xf32>
    %cst_69 = arith.constant 5.000000e-01 : f32
    %187 = vector.broadcast %cst_69 : f32 to vector<8x256xf32>
    %188 = arith.addf %186, %187 : vector<8x256xf32>
    %189 = vector.extract_strided_slice %180 {offsets = [0, 256], sizes = [8, 256], strides = [1, 1]} : vector<8x1024xf32> to vector<8x256xf32>
    %cst_70 = arith.constant 5.000000e-01 : f32
    %190 = vector.broadcast %cst_70 : f32 to vector<8x256xf32>
    %191 = arith.mulf %190, %189 : vector<8x256xf32>
    %192 = math.tanh %191 : vector<8x256xf32>
    %cst_71 = arith.constant 5.000000e-01 : f32
    %193 = vector.broadcast %cst_71 : f32 to vector<8x256xf32>
    %194 = arith.mulf %193, %192 : vector<8x256xf32>
    %cst_72 = arith.constant 5.000000e-01 : f32
    %195 = vector.broadcast %cst_72 : f32 to vector<8x256xf32>
    %196 = arith.addf %194, %195 : vector<8x256xf32>
    %197 = vector.extract_strided_slice %180 {offsets = [0, 512], sizes = [8, 256], strides = [1, 1]} : vector<8x1024xf32> to vector<8x256xf32>
    %198 = math.tanh %197 : vector<8x256xf32>
    %199 = vector.extract_strided_slice %180 {offsets = [0, 768], sizes = [8, 256], strides = [1, 1]} : vector<8x1024xf32> to vector<8x256xf32>
    %cst_73 = arith.constant 5.000000e-01 : f32
    %200 = vector.broadcast %cst_73 : f32 to vector<8x256xf32>
    %201 = arith.mulf %200, %199 : vector<8x256xf32>
    %202 = math.tanh %201 : vector<8x256xf32>
    %cst_74 = arith.constant 5.000000e-01 : f32
    %203 = vector.broadcast %cst_74 : f32 to vector<8x256xf32>
    %204 = arith.mulf %203, %202 : vector<8x256xf32>
    %cst_75 = arith.constant 5.000000e-01 : f32
    %205 = vector.broadcast %cst_75 : f32 to vector<8x256xf32>
    %206 = arith.addf %204, %205 : vector<8x256xf32>
    %207 = arith.mulf %196, %168 : vector<8x256xf32>
    %208 = arith.mulf %188, %198 : vector<8x256xf32>
    %209 = arith.addf %207, %208 : vector<8x256xf32>
    %210 = math.tanh %209 : vector<8x256xf32>
    %211 = arith.mulf %206, %210 : vector<8x256xf32>
    %212 = arith.truncf %211 : vector<8x256xf32> to vector<8x256xbf16>
    %213 = arith.index_cast %175 : i32 to index
    %c0_76 = arith.constant 0 : index
    %214 = vector.load %arg10[%213, %c0_76] : memref<64x256xbf16, #tpu.memory_space<vmem>>, vector<8x256xbf16>
    tpu.vector_store %arg10[%213, %c0_76], %212 {strides = array<i32>} : memref<64x256xbf16, #tpu.memory_space<vmem>>, vector<8x256xbf16>,
    %c5_i32 = arith.constant 5 : i32
    %c8_i32_77 = arith.constant 8 : i32
    %215 = arith.muli %c5_i32, %c8_i32_77 : i32
    %216 = tpu.assume_multiple %215, 8 : i32
    %217 = arith.index_cast %216 : i32 to index
    %c0_78 = arith.constant 0 : index
    %218 = vector.load %arg9[%217, %c0_78] : memref<64x1024xf32, #tpu.memory_space<vmem>>, vector<8x1024xf32>
    %219 = arith.truncf %211 : vector<8x256xf32> to vector<8x256xbf16>
    %cst_79 = arith.constant dense<0.000000e+00> : vector<8x1024xf32>
    %220 = tpu.matmul %219, %7, %cst_79 {dimension_numbers = #tpu.dot_dimension_numbers<[1], [0], [0], [1], [0, 0, 1, 1], [], []>} : vector<8x256xbf16>, vector<256x1024xbf16>, vector<8x1024xf32> -> vector<8x1024xf32>
    %221 = arith.addf %218, %220 : vector<8x1024xf32>
    %222 = vector.extract_strided_slice %221 {offsets = [0, 0], sizes = [8, 256], strides = [1, 1]} : vector<8x1024xf32> to vector<8x256xf32>
    %cst_80 = arith.constant 5.000000e-01 : f32
    %223 = vector.broadcast %cst_80 : f32 to vector<8x256xf32>
    %224 = arith.mulf %223, %222 : vector<8x256xf32>
    %225 = math.tanh %224 : vector<8x256xf32>
    %cst_81 = arith.constant 5.000000e-01 : f32
    %226 = vector.broadcast %cst_81 : f32 to vector<8x256xf32>
    %227 = arith.mulf %226, %225 : vector<8x256xf32>
    %cst_82 = arith.constant 5.000000e-01 : f32
    %228 = vector.broadcast %cst_82 : f32 to vector<8x256xf32>
    %229 = arith.addf %227, %228 : vector<8x256xf32>
    %230 = vector.extract_strided_slice %221 {offsets = [0, 256], sizes = [8, 256], strides = [1, 1]} : vector<8x1024xf32> to vector<8x256xf32>
    %cst_83 = arith.constant 5.000000e-01 : f32
    %231 = vector.broadcast %cst_83 : f32 to vector<8x256xf32>
    %232 = arith.mulf %231, %230 : vector<8x256xf32>
    %233 = math.tanh %232 : vector<8x256xf32>
    %cst_84 = arith.constant 5.000000e-01 : f32
    %234 = vector.broadcast %cst_84 : f32 to vector<8x256xf32>
    %235 = arith.mulf %234, %233 : vector<8x256xf32>
    %cst_85 = arith.constant 5.000000e-01 : f32
    %236 = vector.broadcast %cst_85 : f32 to vector<8x256xf32>
    %237 = arith.addf %235, %236 : vector<8x256xf32>
    %238 = vector.extract_strided_slice %221 {offsets = [0, 512], sizes = [8, 256], strides = [1, 1]} : vector<8x1024xf32> to vector<8x256xf32>
    %239 = math.tanh %238 : vector<8x256xf32>
    %240 = vector.extract_strided_slice %221 {offsets = [0, 768], sizes = [8, 256], strides = [1, 1]} : vector<8x1024xf32> to vector<8x256xf32>
    %cst_86 = arith.constant 5.000000e-01 : f32
    %241 = vector.broadcast %cst_86 : f32 to vector<8x256xf32>
    %242 = arith.mulf %241, %240 : vector<8x256xf32>
    %243 = math.tanh %242 : vector<8x256xf32>
    %cst_87 = arith.constant 5.000000e-01 : f32
    %244 = vector.broadcast %cst_87 : f32 to vector<8x256xf32>
    %245 = arith.mulf %244, %243 : vector<8x256xf32>
    %cst_88 = arith.constant 5.000000e-01 : f32
    %246 = vector.broadcast %cst_88 : f32 to vector<8x256xf32>
    %247 = arith.addf %245, %246 : vector<8x256xf32>
    %248 = arith.mulf %237, %209 : vector<8x256xf32>
    %249 = arith.mulf %229, %239 : vector<8x256xf32>
    %250 = arith.addf %248, %249 : vector<8x256xf32>
    %251 = math.tanh %250 : vector<8x256xf32>
    %252 = arith.mulf %247, %251 : vector<8x256xf32>
    %253 = arith.truncf %252 : vector<8x256xf32> to vector<8x256xbf16>
    %254 = arith.index_cast %216 : i32 to index
    %c0_89 = arith.constant 0 : index
    %255 = vector.load %arg10[%254, %c0_89] : memref<64x256xbf16, #tpu.memory_space<vmem>>, vector<8x256xbf16>
    tpu.vector_store %arg10[%254, %c0_89], %253 {strides = array<i32>} : memref<64x256xbf16, #tpu.memory_space<vmem>>, vector<8x256xbf16>,
    %c6_i32 = arith.constant 6 : i32
    %c8_i32_90 = arith.constant 8 : i32
    %256 = arith.muli %c6_i32, %c8_i32_90 : i32
    %257 = tpu.assume_multiple %256, 8 : i32
    %258 = arith.index_cast %257 : i32 to index
    %c0_91 = arith.constant 0 : index
    %259 = vector.load %arg9[%258, %c0_91] : memref<64x1024xf32, #tpu.memory_space<vmem>>, vector<8x1024xf32>
    %260 = arith.truncf %252 : vector<8x256xf32> to vector<8x256xbf16>
    %cst_92 = arith.constant dense<0.000000e+00> : vector<8x1024xf32>
    %261 = tpu.matmul %260, %7, %cst_92 {dimension_numbers = #tpu.dot_dimension_numbers<[1], [0], [0], [1], [0, 0, 1, 1], [], []>} : vector<8x256xbf16>, vector<256x1024xbf16>, vector<8x1024xf32> -> vector<8x1024xf32>
    %262 = arith.addf %259, %261 : vector<8x1024xf32>
    %263 = vector.extract_strided_slice %262 {offsets = [0, 0], sizes = [8, 256], strides = [1, 1]} : vector<8x1024xf32> to vector<8x256xf32>
    %cst_93 = arith.constant 5.000000e-01 : f32
    %264 = vector.broadcast %cst_93 : f32 to vector<8x256xf32>
    %265 = arith.mulf %264, %263 : vector<8x256xf32>
    %266 = math.tanh %265 : vector<8x256xf32>
    %cst_94 = arith.constant 5.000000e-01 : f32
    %267 = vector.broadcast %cst_94 : f32 to vector<8x256xf32>
    %268 = arith.mulf %267, %266 : vector<8x256xf32>
    %cst_95 = arith.constant 5.000000e-01 : f32
    %269 = vector.broadcast %cst_95 : f32 to vector<8x256xf32>
    %270 = arith.addf %268, %269 : vector<8x256xf32>
    %271 = vector.extract_strided_slice %262 {offsets = [0, 256], sizes = [8, 256], strides = [1, 1]} : vector<8x1024xf32> to vector<8x256xf32>
    %cst_96 = arith.constant 5.000000e-01 : f32
    %272 = vector.broadcast %cst_96 : f32 to vector<8x256xf32>
    %273 = arith.mulf %272, %271 : vector<8x256xf32>
    %274 = math.tanh %273 : vector<8x256xf32>
    %cst_97 = arith.constant 5.000000e-01 : f32
    %275 = vector.broadcast %cst_97 : f32 to vector<8x256xf32>
    %276 = arith.mulf %275, %274 : vector<8x256xf32>
    %cst_98 = arith.constant 5.000000e-01 : f32
    %277 = vector.broadcast %cst_98 : f32 to vector<8x256xf32>
    %278 = arith.addf %276, %277 : vector<8x256xf32>
    %279 = vector.extract_strided_slice %262 {offsets = [0, 512], sizes = [8, 256], strides = [1, 1]} : vector<8x1024xf32> to vector<8x256xf32>
    %280 = math.tanh %279 : vector<8x256xf32>
    %281 = vector.extract_strided_slice %262 {offsets = [0, 768], sizes = [8, 256], strides = [1, 1]} : vector<8x1024xf32> to vector<8x256xf32>
    %cst_99 = arith.constant 5.000000e-01 : f32
    %282 = vector.broadcast %cst_99 : f32 to vector<8x256xf32>
    %283 = arith.mulf %282, %281 : vector<8x256xf32>
    %284 = math.tanh %283 : vector<8x256xf32>
    %cst_100 = arith.constant 5.000000e-01 : f32
    %285 = vector.broadcast %cst_100 : f32 to vector<8x256xf32>
    %286 = arith.mulf %285, %284 : vector<8x256xf32>
    %cst_101 = arith.constant 5.000000e-01 : f32
    %287 = vector.broadcast %cst_101 : f32 to vector<8x256xf32>
    %288 = arith.addf %286, %287 : vector<8x256xf32>
    %289 = arith.mulf %278, %250 : vector<8x256xf32>
    %290 = arith.mulf %270, %280 : vector<8x256xf32>
    %291 = arith.addf %289, %290 : vector<8x256xf32>
    %292 = math.tanh %291 : vector<8x256xf32>
    %293 = arith.mulf %288, %292 : vector<8x256xf32>
    %294 = arith.truncf %293 : vector<8x256xf32> to vector<8x256xbf16>
    %295 = arith.index_cast %257 : i32 to index
    %c0_102 = arith.constant 0 : index
    %296 = vector.load %arg10[%295, %c0_102] : memref<64x256xbf16, #tpu.memory_space<vmem>>, vector<8x256xbf16>
    tpu.vector_store %arg10[%295, %c0_102], %294 {strides = array<i32>} : memref<64x256xbf16, #tpu.memory_space<vmem>>, vector<8x256xbf16>,
    %c7_i32 = arith.constant 7 : i32
    %c8_i32_103 = arith.constant 8 : i32
    %297 = arith.muli %c7_i32, %c8_i32_103 : i32
    %298 = tpu.assume_multiple %297, 8 : i32
    %299 = arith.index_cast %298 : i32 to index
    %c0_104 = arith.constant 0 : index
    %300 = vector.load %arg9[%299, %c0_104] : memref<64x1024xf32, #tpu.memory_space<vmem>>, vector<8x1024xf32>
    %301 = arith.truncf %293 : vector<8x256xf32> to vector<8x256xbf16>
    %cst_105 = arith.constant dense<0.000000e+00> : vector<8x1024xf32>
    %302 = tpu.matmul %301, %7, %cst_105 {dimension_numbers = #tpu.dot_dimension_numbers<[1], [0], [0], [1], [0, 0, 1, 1], [], []>} : vector<8x256xbf16>, vector<256x1024xbf16>, vector<8x1024xf32> -> vector<8x1024xf32>
    %303 = arith.addf %300, %302 : vector<8x1024xf32>
    %304 = vector.extract_strided_slice %303 {offsets = [0, 0], sizes = [8, 256], strides = [1, 1]} : vector<8x1024xf32> to vector<8x256xf32>
    %cst_106 = arith.constant 5.000000e-01 : f32
    %305 = vector.broadcast %cst_106 : f32 to vector<8x256xf32>
    %306 = arith.mulf %305, %304 : vector<8x256xf32>
    %307 = math.tanh %306 : vector<8x256xf32>
    %cst_107 = arith.constant 5.000000e-01 : f32
    %308 = vector.broadcast %cst_107 : f32 to vector<8x256xf32>
    %309 = arith.mulf %308, %307 : vector<8x256xf32>
    %cst_108 = arith.constant 5.000000e-01 : f32
    %310 = vector.broadcast %cst_108 : f32 to vector<8x256xf32>
    %311 = arith.addf %309, %310 : vector<8x256xf32>
    %312 = vector.extract_strided_slice %303 {offsets = [0, 256], sizes = [8, 256], strides = [1, 1]} : vector<8x1024xf32> to vector<8x256xf32>
    %cst_109 = arith.constant 5.000000e-01 : f32
    %313 = vector.broadcast %cst_109 : f32 to vector<8x256xf32>
    %314 = arith.mulf %313, %312 : vector<8x256xf32>
    %315 = math.tanh %314 : vector<8x256xf32>
    %cst_110 = arith.constant 5.000000e-01 : f32
    %316 = vector.broadcast %cst_110 : f32 to vector<8x256xf32>
    %317 = arith.mulf %316, %315 : vector<8x256xf32>
    %cst_111 = arith.constant 5.000000e-01 : f32
    %318 = vector.broadcast %cst_111 : f32 to vector<8x256xf32>
    %319 = arith.addf %317, %318 : vector<8x256xf32>
    %320 = vector.extract_strided_slice %303 {offsets = [0, 512], sizes = [8, 256], strides = [1, 1]} : vector<8x1024xf32> to vector<8x256xf32>
    %321 = math.tanh %320 : vector<8x256xf32>
    %322 = vector.extract_strided_slice %303 {offsets = [0, 768], sizes = [8, 256], strides = [1, 1]} : vector<8x1024xf32> to vector<8x256xf32>
    %cst_112 = arith.constant 5.000000e-01 : f32
    %323 = vector.broadcast %cst_112 : f32 to vector<8x256xf32>
    %324 = arith.mulf %323, %322 : vector<8x256xf32>
    %325 = math.tanh %324 : vector<8x256xf32>
    %cst_113 = arith.constant 5.000000e-01 : f32
    %326 = vector.broadcast %cst_113 : f32 to vector<8x256xf32>
    %327 = arith.mulf %326, %325 : vector<8x256xf32>
    %cst_114 = arith.constant 5.000000e-01 : f32
    %328 = vector.broadcast %cst_114 : f32 to vector<8x256xf32>
    %329 = arith.addf %327, %328 : vector<8x256xf32>
    %330 = arith.mulf %319, %291 : vector<8x256xf32>
    %331 = arith.mulf %311, %321 : vector<8x256xf32>
    %332 = arith.addf %330, %331 : vector<8x256xf32>
    %333 = math.tanh %332 : vector<8x256xf32>
    %334 = arith.mulf %329, %333 : vector<8x256xf32>
    %335 = arith.truncf %334 : vector<8x256xf32> to vector<8x256xbf16>
    %336 = arith.index_cast %298 : i32 to index
    %c0_115 = arith.constant 0 : index
    %337 = vector.load %arg10[%336, %c0_115] : memref<64x256xbf16, #tpu.memory_space<vmem>>, vector<8x256xbf16>
    tpu.vector_store %arg10[%336, %c0_115], %335 {strides = array<i32>} : memref<64x256xbf16, #tpu.memory_space<vmem>>, vector<8x256xbf16>,
    %c8_i32_116 = arith.constant 8 : i32
    %c0_117 = arith.constant 0 : index
    %c0_118 = arith.constant 0 : index
    %338 = vector.load %arg10[%c0_117, %c0_118] : memref<64x256xbf16, #tpu.memory_space<vmem>>, vector<64x256xbf16>
    %c0_119 = arith.constant 0 : index
    %c0_120 = arith.constant 0 : index
    %339 = vector.load %arg6[%c0_119, %c0_120] : memref<256x128xbf16, #tpu.memory_space<vmem>>, vector<256x128xbf16>
    %cst_121 = arith.constant dense<0.000000e+00> : vector<64x128xf32>
    %340 = tpu.matmul %338, %339, %cst_121 {dimension_numbers = #tpu.dot_dimension_numbers<[1], [0], [0], [1], [0, 0, 1, 1], [], []>} : vector<64x256xbf16>, vector<256x128xbf16>, vector<64x128xf32> -> vector<64x128xf32>
    %c0_122 = arith.constant 0 : index
    %c0_123 = arith.constant 0 : index
    %341 = vector.load %arg7[%c0_122, %c0_123] : memref<1x128xf32, #tpu.memory_space<vmem>>, vector<1x128xf32>
    %342 = vector.broadcast %341 : vector<1x128xf32> to vector<64x128xf32>
    %343 = arith.addf %340, %342 : vector<64x128xf32>
    %c0_124 = arith.constant 0 : index
    %c0_125 = arith.constant 0 : index
    %344 = vector.load %arg8[%c0_124, %c0_125] : memref<64x128xf32, #tpu.memory_space<vmem>>, vector<64x128xf32>
    tpu.vector_store %arg8[%c0_124, %c0_125], %343 {strides = array<i32>} : memref<64x128xf32, #tpu.memory_space<vmem>>, vector<64x128xf32>,
    return
  }
}

</mosaic_0001>

<bundles_post_ra>
// kernel: decoder_forward.1
= control target key start
LH: loop header
LB: loop body
LE: loop exit
PB: predicated region body
PF: predicated region fallthrough
CT: control target
= control target key end

     0   :  { %v6731_v3 = vmov 0   ;;  %s6722_s3 = inlined_call_operand.vmem [shape: bf16[128,1024], index: 3, kind: input, shape index: {}]   ;;  %s6723_s0 = inlined_call_operand.vmem [shape: bf16[64,128], index: 0, kind: input, shape index: {}]   ;;  %s6724_s4 = inlined_call_operand.vmem [shape: bf16[256,1024], index: 4, kind: input, shape index: {}]   ;;  %s6725_s1 = inlined_call_operand.vmem [shape: f32[8,256], index: 1, kind: input, shape index: {}]   ;;  %s6726_s5 = inlined_call_operand.vmem [shape: f32[1,1024], index: 5, kind: input, shape index: {}]   ;;  %s6727_s2 = inlined_call_operand.vmem [shape: f32[8,256], index: 2, kind: input, shape index: {}]   ;;  %s6728_s6 = inlined_call_operand.vmem [shape: bf16[256,128], index: 6, kind: input, shape index: {}]   ;;  %s6729_s7 = inlined_call_operand.vmem [shape: f32[1,128], index: 7, kind: input, shape index: {}]   ;;  %s6730_s8 = inlined_call_operand.vmem [shape: f32[64,128], index: 8, kind: output, shape index: {}]  }
   0x1   :  { %v94_v0 = vld [vmem:[%s6722_s3 + $0x1c0] sm:$0xff]  ;;  %v96_v2 = vld [vmem:[%s6722_s3 + $0x1d0] sm:$0xff]  ;;  %520 = vmatprep.mubr.bf16.mxu1 %v6731_v3  ;;  %666 = vmatprep.mubr.bf16.mxu0 %v6731_v3  ;;  %v95_v63 = vld [vmem:[%s6722_s3 + $0x1c8] sm:$0xff] }
   0x2   :  { %v98_v1 = vld [vmem:[%s6722_s3 + $0x1e0] sm:$0xff]  ;;  %v100_v5 = vld [vmem:[%s6722_s3 + $0x1f0] sm:$0xff] }
   0x3   :  { %v3801_v4 = vcombine.high %v94_v0, %v98_v1  ;;  %v3800_v6 = vcombine.low %v94_v0, %v98_v1  ;;  %v86_v7 = vld [vmem:[%s6722_s3 + $0x180] sm:$0xff]  ;;  %v3805_v9 = vcombine.high %v96_v2, %v100_v5  ;;  %v3804_v10 = vcombine.low %v96_v2, %v100_v5  ;;  %v88_v12 = vld [vmem:[%s6722_s3 + $0x190] sm:$0xff]  ;;  %v99_v0 = vld [vmem:[%s6722_s3 + $0x1e8] sm:$0xff] }
   0x4   :  { %v90_v8 = vld [vmem:[%s6722_s3 + $0x1a0] sm:$0xff]  ;;  %v92_v13 = vld [vmem:[%s6722_s3 + $0x1b0] sm:$0xff] }
   0x5   :  { %v3793_v11 = vcombine.high %v86_v7, %v90_v8  ;;  %v78_v14 = vld [vmem:[%s6722_s3 + $0x140] sm:$0xff]  ;;  %488 = vmatprep.subr.bf16.mxu1 %v3801_v4  ;;  %v3797_v15 = vcombine.high %v88_v12, %v92_v13  ;;  %v80_v17 = vld [vmem:[%s6722_s3 + $0x150] sm:$0xff]  ;;  %634 = vmatprep.subr.bf16.mxu0 %v3805_v9  ;;  %v3792_v19 = vcombine.low %v86_v7, %v90_v8  ;;  %v87_v8 = vld [vmem:[%s6722_s3 + $0x188] sm:$0xff] }
   0x6   :  { %v82_v16 = vld [vmem:[%s6722_s3 + $0x160] sm:$0xff]  ;;  %v84_v18 = vld [vmem:[%s6722_s3 + $0x170] sm:$0xff]  ;;  %489 = vmatpush1.bf16.msra.mxu1 %v3800_v6  ;;  %635 = vmatpush1.bf16.msra.mxu0 %v3804_v10  ;;  %v3796_v20 = vcombine.low %v88_v12, %v92_v13  ;;  %v3803_v6 = vcombine.high %v95_v63, %v99_v0  ;;  %v91_v9 = vld [vmem:[%s6722_s3 + $0x1a8] sm:$0xff]  ;;  %v3802_v13 = vcombine.low %v95_v63, %v99_v0 }
   0x7   :  { %490 = vmatprep.subr.bf16.mxu1 %v3793_v11  ;;  %v3785_v21 = vcombine.high %v78_v14, %v82_v16  ;;  %636 = vmatprep.subr.bf16.mxu0 %v3797_v15  ;;  %v3789_v22 = vcombine.high %v80_v17, %v84_v18  ;;  %v70_v23 = vld [vmem:[%s6722_s3 + $0x100] sm:$0xff]  ;;  %v72_v25 = vld [vmem:[%s6722_s3 + $0x110] sm:$0xff]  ;;  %v3784_v27 = vcombine.low %v78_v14, %v82_v16 }
   0x8   :  { %v74_v24 = vld [vmem:[%s6722_s3 + $0x120] sm:$0xff]  ;;  %v76_v26 = vld [vmem:[%s6722_s3 + $0x130] sm:$0xff]  ;;  %v3788_v28 = vcombine.low %v80_v17, %v84_v18  ;;  %v3795_v15 = vcombine.high %v87_v8, %v91_v9  ;;  %v79_v17 = vld [vmem:[%s6722_s3 + $0x148] sm:$0xff] }
   0x9   :  { %v3777_v29 = vcombine.high %v70_v23, %v74_v24  ;;  %v3781_v30 = vcombine.high %v72_v25, %v76_v26  ;;  %v62_v31 = vld [vmem:[%s6722_s3 + $0xc0] sm:$0xff]  ;;  %v64_v33 = vld [vmem:[%s6722_s3 + $0xd0] sm:$0xff]  ;;  %v3776_v35 = vcombine.low %v70_v23, %v74_v24  ;;  %v3780_v36 = vcombine.low %v72_v25, %v76_v26  ;;  %v83_v18 = vld [vmem:[%s6722_s3 + $0x168] sm:$0xff] }
   0xa   :  { %491 = vmatpush1.bf16.msra.mxu1 %v3792_v19  ;;  %637 = vmatpush1.bf16.msra.mxu0 %v3796_v20  ;;  %v66_v32 = vld [vmem:[%s6722_s3 + $0xe0] sm:$0xff]  ;;  %v68_v34 = vld [vmem:[%s6722_s3 + $0xf0] sm:$0xff]  ;;  %v3787_v23 = vcombine.high %v79_v17, %v83_v18  ;;  %v71_v25 = vld [vmem:[%s6722_s3 + $0x108] sm:$0xff] }
   0xb   :  { %492 = vmatprep.subr.bf16.mxu1 %v3785_v21  ;;  %638 = vmatprep.subr.bf16.mxu0 %v3789_v22  ;;  %v3769_v37 = vcombine.high %v62_v31, %v66_v32  ;;  %v54_v38 = vld [vmem:[%s6722_s3 + $0x80] sm:$0xff]  ;;  %v3773_v39 = vcombine.high %v64_v33, %v68_v34  ;;  %v56_v41 = vld [vmem:[%s6722_s3 + $0x90] sm:$0xff]  ;;  %v3768_v43 = vcombine.low %v62_v31, %v66_v32  ;;  %v75_v26 = vld [vmem:[%s6722_s3 + $0x128] sm:$0xff] }
   0xc   :  { %v58_v40 = vld [vmem:[%s6722_s3 + $0xa0] sm:$0xff]  ;;  %v60_v42 = vld [vmem:[%s6722_s3 + $0xb0] sm:$0xff]  ;;  %v3772_v44 = vcombine.low %v64_v33, %v68_v34  ;;  %v3794_v21 = vcombine.low %v87_v8, %v91_v9  ;;  %v3779_v32 = vcombine.high %v71_v25, %v75_v26  ;;  %v63_v34 = vld [vmem:[%s6722_s3 + $0xc8] sm:$0xff] }
   0xd   :  { %v3761_v45 = vcombine.high %v54_v38, %v58_v40  ;;  %v46_v46 = vld [vmem:[%s6722_s3 + $0x40] sm:$0xff]  ;;  %v3765_v47 = vcombine.high %v56_v41, %v60_v42  ;;  %v48_v49 = vld [vmem:[%s6722_s3 + $0x50] sm:$0xff]  ;;  %v3760_v51 = vcombine.low %v54_v38, %v58_v40  ;;  %v3764_v52 = vcombine.low %v56_v41, %v60_v42  ;;  %v55_v42 = vld [vmem:[%s6722_s3 + $0x88] sm:$0xff] }
   0xe   :  { %493 = vmatpush1.bf16.msra.mxu1 %v3784_v27  ;;  %639 = vmatpush1.bf16.msra.mxu0 %v3788_v28  ;;  %v50_v48 = vld [vmem:[%s6722_s3 + $0x60] sm:$0xff]  ;;  %v52_v50 = vld [vmem:[%s6722_s3 + $0x70] sm:$0xff]  ;;  %v4416_v27 = vld [vmem:[%s6723_s0 + $0x8] sm:$0xff]   ;;  %v3778_v38 = vcombine.low %v71_v25, %v75_v26 }
   0xf   :  { %494 = vmatprep.subr.bf16.mxu1 %v3777_v29  ;;  %640 = vmatprep.subr.bf16.mxu0 %v3781_v30  ;;  %v3753_v53 = vcombine.high %v46_v46, %v50_v48  ;;  %v3757_v54 = vcombine.high %v48_v49, %v52_v50  ;;  %v38_v55 = vld [vmem:[%s6722_s3] sm:$0xff]  ;;  %v40_v57 = vld [vmem:[%s6722_s3 + $0x10] sm:$0xff]  ;;  %v3752_v59 = vcombine.low %v46_v46, %v50_v48  ;;  %v101_v8 = vld [vmem:[%s6722_s3 + $0x1f8] sm:$0xff] }
  0x10   :  { %v42_v56 = vld [vmem:[%s6722_s3 + $0x20] sm:$0xff]  ;;  %v44_v58 = vld [vmem:[%s6722_s3 + $0x30] sm:$0xff]  ;;  %v3756_v60 = vcombine.low %v48_v49, %v52_v50  ;;  %v3786_v30 = vcombine.low %v79_v17, %v83_v18 }
  0x11   :  { %v3745_v61 = vcombine.high %v38_v55, %v42_v56  ;;  %v3749_v62 = vcombine.high %v40_v57, %v44_v58  ;;  %v900_v1 = vld [vmem:[%s6724_s4 + $0x1c0] sm:$0xff]  ;;  %v3744_v4 = vcombine.low %v38_v55, %v42_v56  ;;  %v3748_v5 = vcombine.low %v40_v57, %v44_v58 }
  0x12   :  { %495 = vmatpush1.bf16.msra.mxu1 %v3776_v35  ;;  %641 = vmatpush1.bf16.msra.mxu0 %v3780_v36  ;;  %v904_v2 = vld [vmem:[%s6724_s4 + $0x1e0] sm:$0xff]  ;;  %v67_v35 = vld [vmem:[%s6722_s3 + $0xe8] sm:$0xff] }
  0x13   :  { %496 = vmatprep.subr.bf16.mxu1 %v3769_v37  ;;  %642 = vmatprep.subr.bf16.mxu0 %v3773_v39  ;;  %v4362_v7 = vcombine.high %v900_v1, %v904_v2  ;;  %v4373_v10 = vld [vmem:[%s6723_s0] sm:$0xff]   ;;  %v4381_v14 = vcombine.low %v900_v1, %v904_v2  ;;  %v3771_v40 = vcombine.high %v63_v34, %v67_v35  ;;  %v973_v1 = vld [vmem:[%s6725_s1 + $0x8] sm:$0xff] }
  0x14   :  { %v892_v11 = vld [vmem:[%s6724_s4 + $0x180] sm:$0xff] }
  0x15   :  { %6971 = vst [vmem:[#allocation4_spill] sm:$0xff] %v4362_v7  ;;  %v896_v12 = vld [vmem:[%s6724_s4 + $0x1a0] sm:$0xff]  ;;  %6972 = vst [vmem:[#allocation5_spill] sm:$0xff] %v4381_v14 }
  0x16   :  { %497 = vmatpush1.bf16.msra.mxu1 %v3768_v43  ;;  %643 = vmatpush1.bf16.msra.mxu0 %v3772_v44  ;;  %v4384_v16 = vcombine.high %v892_v11, %v896_v12  ;;  %v884_v19 = vld [vmem:[%s6724_s4 + $0x140] sm:$0xff]  ;;  %v4401_v22 = vcombine.low %v892_v11, %v896_v12  ;;  %v59_v43 = vld [vmem:[%s6722_s3 + $0xa8] sm:$0xff]  ;;  %v4461_v44 = vld [vmem:[%s6723_s0 + $0x10] sm:$0xff]   ;;  %v4537_v12 = vpack.c.bf16 %v973_v1, %v973_v1 }
  0x17   :  { %498 = vmatprep.subr.bf16.mxu1 %v3761_v45  ;;  %644 = vmatprep.subr.bf16.mxu0 %v3765_v47  ;;  %v888_v20 = vld [vmem:[%s6724_s4 + $0x160] sm:$0xff]  ;;  %v3770_v47 = vcombine.low %v63_v34, %v67_v35  ;;  %v3763_v49 = vcombine.high %v55_v42, %v59_v43  ;;  %v3762_v55 = vcombine.low %v55_v42, %v59_v43  ;;  %v73_v42 = vld [vmem:[%s6722_s3 + $0x118] sm:$0xff] }
  0x18   :  { %6973 = vst [vmem:[#allocation6_spill] sm:$0xff] %v4384_v16  ;;  %6974 = vst [vmem:[#allocation7_spill] sm:$0xff] %v4401_v22  ;;  %v4405_v24 = vcombine.high %v884_v19, %v888_v20  ;;  %v876_v28 = vld [vmem:[%s6724_s4 + $0x100] sm:$0xff]  ;;  %v4426_v31 = vcombine.low %v884_v19, %v888_v20  ;;  %v89_v19 = vld [vmem:[%s6722_s3 + $0x198] sm:$0xff] }
  0x19   :  { %v880_v29 = vld [vmem:[%s6724_s4 + $0x120] sm:$0xff]  ;;  %v93_v20 = vld [vmem:[%s6722_s3 + $0x1b8] sm:$0xff] }
  0x1a   :  { %499 = vmatpush1.bf16.msra.mxu1 %v3760_v51  ;;  %645 = vmatpush1.bf16.msra.mxu0 %v3764_v52  ;;  %6975 = vst [vmem:[#allocation8_spill] sm:$0xff] %v4405_v24  ;;  %6976 = vst [vmem:[#allocation9_spill] sm:$0xff] %v4426_v31  ;;  %v4429_v33 = vcombine.high %v876_v28, %v880_v29  ;;  %v868_v36 = vld [vmem:[%s6724_s4 + $0xc0] sm:$0xff]  ;;  %v4446_v39 = vcombine.low %v876_v28, %v880_v29  ;;  %v47_v51 = vld [vmem:[%s6722_s3 + $0x48] sm:$0xff] }
  0x1b   :  { %500 = vmatprep.subr.bf16.mxu1 %v3753_v53  ;;  %646 = vmatprep.subr.bf16.mxu0 %v3757_v54  ;;  %v872_v37 = vld [vmem:[%s6724_s4 + $0xe0] sm:$0xff]  ;;  %v51_v52 = vld [vmem:[%s6722_s3 + $0x68] sm:$0xff]  ;;  %v3799_v28 = vcombine.high %v89_v19, %v93_v20  ;;  %v77_v43 = vld [vmem:[%s6722_s3 + $0x138] sm:$0xff] }
  0x1c   :  { %6977 = vst [vmem:[#allocation10_spill] sm:$0xff] %v4429_v33  ;;  %6978 = vst [vmem:[#allocation11_spill] sm:$0xff] %v4446_v39  ;;  %v4449_v41 = vcombine.high %v868_v36, %v872_v37  ;;  %v860_v45 = vld [vmem:[%s6724_s4 + $0x80] sm:$0xff]  ;;  %v4471_v48 = vcombine.low %v868_v36, %v872_v37  ;;  %v3755_v57 = vcombine.high %v47_v51, %v51_v52  ;;  %v61_v1 = vld [vmem:[%s6722_s3 + $0xb8] sm:$0xff] }
  0x1d   :  { %v864_v46 = vld [vmem:[%s6724_s4 + $0xa0] sm:$0xff]  ;;  %v3754_v0 = vcombine.low %v47_v51, %v51_v52  ;;  %v3798_v36 = vcombine.low %v89_v19, %v93_v20  ;;  %v3783_v51 = vcombine.high %v73_v42, %v77_v43  ;;  %v53_v19 = vld [vmem:[%s6722_s3 + $0x78] sm:$0xff] }
  0x1e   :  { %501 = vmatpush1.bf16.msra.mxu1 %v3752_v59  ;;  %647 = vmatpush1.bf16.msra.mxu0 %v3756_v60  ;;  %6979 = vst [vmem:[#allocation12_spill] sm:$0xff] %v4449_v41  ;;  %6980 = vst [vmem:[#allocation13_spill] sm:$0xff] %v4471_v48  ;;  %v4474_v50 = vcombine.high %v860_v45, %v864_v46  ;;  %v852_v53 = vld [vmem:[%s6724_s4 + $0x40] sm:$0xff]  ;;  %v4491_v56 = vcombine.low %v860_v45, %v864_v46  ;;  %v39_v59 = vld [vmem:[%s6722_s3 + $0x8] sm:$0xff] }
  0x1f   :  { %502 = vmatprep.subr.bf16.mxu1 %v3745_v61  ;;  %648 = vmatprep.subr.bf16.mxu0 %v3749_v62  ;;  %v856_v54 = vld [vmem:[%s6724_s4 + $0x60] sm:$0xff]  ;;  %v43_v60 = vld [vmem:[%s6722_s3 + $0x28] sm:$0xff]  ;;  %v4506_v61 = vld [vmem:[%s6723_s0 + $0x18] sm:$0xff]  }
  0x20   :  { %6981 = vst [vmem:[#allocation14_spill] sm:$0xff] %v4474_v50  ;;  %6982 = vst [vmem:[#allocation15_spill] sm:$0xff] %v4491_v56  ;;  %v4494_v58 = vcombine.high %v852_v53, %v856_v54  ;;  %v844_v62 = vld [vmem:[%s6724_s4] sm:$0xff]  ;;  %v4519_v2 = vcombine.low %v852_v53, %v856_v54  ;;  %v65_v53 = vld [vmem:[%s6722_s3 + $0xd8] sm:$0xff] }
  0x21   :  { %v848_v63 = vld [vmem:[%s6724_s4 + $0x20] sm:$0xff]  ;;  %v69_v54 = vld [vmem:[%s6722_s3 + $0xf8] sm:$0xff] }
  0x22   :  { %503 = vmatpush1.bf16.msra.mxu1 %v3744_v4  ;;  %649 = vmatpush1.bf16.msra.mxu0 %v3748_v5  ;;  %6983 = vst [vmem:[#allocation16_spill] sm:$0xff] %v4494_v58  ;;  %6984 = vst [vmem:[#allocation17_spill] sm:$0xff] %v4519_v2  ;;  %v3747_v4 = vcombine.high %v39_v59, %v43_v60  ;;  %v4522_v5 = vcombine.high %v844_v62, %v848_v63  ;;  %v964_v9 = vld [vmem:[%s6724_s4 + $0x3c0] sm:$0xff] }
  0x23   :  { %561 = vmatprep.subr.bf16.mxu1 %v3803_v6  ;;  %1629 = vmatprep.subr.bf16.mxu0 %v4362_v7  ;;  %v97_v6 = vld [vmem:[%s6722_s3 + $0x1d8] sm:$0xff]  ;;  %v968_v11 = vld [vmem:[%s6724_s4 + $0x3e0] sm:$0xff] }
  0x24   :  { %6985 = vst [vmem:[#allocation18_spill] sm:$0xff] %v4522_v5  ;;  %v3807_v17 = vcombine.high %v97_v6, %v101_v8  ;;  %v4544_v18 = vcombine.high %v964_v9, %v968_v11  ;;  %v3806_v25 = vcombine.low %v97_v6, %v101_v8  ;;  %v4561_v26 = vcombine.low %v964_v9, %v968_v11  ;;  %v948_v34 = vld [vmem:[%s6724_s4 + $0x340] sm:$0xff] }
  0x25   :  { %521 = vmatmul.mubr.bf16.vlgmr.msra.gmra.mxu1 %v4373_v10  ;;  %667 = vmatmul.mubr.bf16.vlgmr.msra.gmra.mxu0 %v4373_v10  ;;  %v952_v35 = vld [vmem:[%s6724_s4 + $0x360] sm:$0xff]  ;;  %v3774_v8 = vcombine.low %v65_v53, %v69_v54 }
  0x26   :  { %562 = vmatpush1.bf16.msra.mxu1 %v3802_v13  ;;  %1630 = vmatpush1.bf16.msra.mxu0 %v4381_v14  ;;  %v3746_v13 = vcombine.low %v39_v59, %v43_v60  ;;  %6987 = vst [vmem:[#allocation20_spill] sm:$0xff] %v4544_v18  ;;  %6988 = vst [vmem:[#allocation21_spill] sm:$0xff] %v4561_v26  ;;  %v940_v45 = vld [vmem:[%s6724_s4 + $0x300] sm:$0xff]  ;;  %v3782_v59 = vcombine.low %v73_v42, %v77_v43 }
  0x27   :  { %563 = vmatprep.subr.bf16.mxu1 %v3795_v15  ;;  %1631 = vmatprep.subr.bf16.mxu0 %v4384_v16  ;;  %v4541_v15 = vcombine.low %v844_v62, %v848_v63  ;;  %v944_v46 = vld [vmem:[%s6724_s4 + $0x320] sm:$0xff]  ;;  %v3775_v62 = vcombine.high %v65_v53, %v69_v54  ;;  %v906_v53 = vld [vmem:[%s6724_s4 + $0x1f0] sm:$0xff] }
  0x28   :  { %530 = vmatprep.mubr.bf16.mxu1 %v6731_v3  ;;  %676 = vmatprep.mubr.bf16.mxu0 %v6731_v3  ;;  %v4602_v52 = vcombine.high %v940_v45, %v944_v46  ;;  %v4619_v60 = vcombine.low %v940_v45, %v944_v46  ;;  %v928_v6 = vld [vmem:[%s6724_s4 + $0x2a0] sm:$0xff]  ;;  %v901_v46 = vld [vmem:[%s6724_s4 + $0x1c8] sm:$0xff] }
  0x29   :  { %6986 = vst [vmem:[#allocation19_spill] sm:$0xff] %v4541_v15  ;;  %v916_v20 = vld [vmem:[%s6724_s4 + $0x240] sm:$0xff] }
  0x2a   :  { %564 = vmatpush1.bf16.msra.mxu1 %v3794_v21  ;;  %1632 = vmatpush1.bf16.msra.mxu0 %v4401_v22  ;;  %v956_v21 = vld [vmem:[%s6724_s4 + $0x380] sm:$0xff]  ;;  %6993 = vst [vmem:[#allocation26_spill] sm:$0xff] %v4602_v52  ;;  %6994 = vst [vmem:[#allocation27_spill] sm:$0xff] %v4619_v60 }
  0x2b   :  { %565 = vmatprep.subr.bf16.mxu1 %v3787_v23  ;;  %1633 = vmatprep.subr.bf16.mxu0 %v4405_v24  ;;  %v960_v23 = vld [vmem:[%s6724_s4 + $0x3a0] sm:$0xff] }
  0x2c   :  { %v4564_v29 = vcombine.high %v956_v21, %v960_v23  ;;  %v4581_v37 = vcombine.low %v956_v21, %v960_v23  ;;  %v920_v21 = vld [vmem:[%s6724_s4 + $0x260] sm:$0xff] }
  0x2d   :  { %531 = vmatmul.mubr.bf16.gmra.mxu1 %v4416_v27  ;;  %677 = vmatmul.mubr.bf16.gmra.mxu0 %v4416_v27  ;;  %v4675_v42 = vcombine.low %v916_v20, %v920_v21 }
  0x2e   :  { %566 = vmatpush1.bf16.msra.mxu1 %v3786_v30  ;;  %540 = vmatprep.mubr.bf16.mxu1 %v6731_v3  ;;  %6989 = vst [vmem:[#allocation22_spill] sm:$0xff] %v4564_v29  ;;  %v81_v30 = vld [vmem:[%s6722_s3 + $0x158] sm:$0xff]  ;;  %6990 = vst [vmem:[#allocation23_spill] sm:$0xff] %v4581_v37 }
  0x2f   :  { %1634 = vmatpush1.bf16.msra.mxu0 %v4426_v31  ;;  %567 = vmatprep.subr.bf16.mxu1 %v3779_v32  ;;  %v85_v32 = vld [vmem:[%s6722_s3 + $0x178] sm:$0xff]  ;;  %7000 = vst [vmem:[#allocation33_spill] sm:$0xff] %v4675_v42 }
  0x30   :  { %1635 = vmatprep.subr.bf16.mxu0 %v4429_v33  ;;  %686 = vmatprep.mubr.bf16.mxu0 %v6731_v3 }
  0x32   :  { %568 = vmatpush1.bf16.msra.mxu1 %v3778_v38  ;;  %v3791_v38 = vcombine.high %v81_v30, %v85_v32 }
  0x33   :  { %1636 = vmatpush1.bf16.msra.mxu0 %v4446_v39  ;;  %569 = vmatprep.subr.bf16.mxu1 %v3771_v40  ;;  %v4584_v40 = vcombine.high %v948_v34, %v952_v35 }
  0x34   :  { %1637 = vmatprep.subr.bf16.mxu0 %v4449_v41 }
  0x35   :  { %541 = vmatmul.mubr.bf16.gmra.mxu1 %v4461_v44  ;;  %687 = vmatmul.mubr.bf16.gmra.mxu0 %v4461_v44  ;;  %6991 = vst [vmem:[#allocation24_spill] sm:$0xff] %v4584_v40 }
  0x36   :  { %570 = vmatpush1.bf16.msra.mxu1 %v3770_v47  ;;  %550 = vmatprep.mubr.bf16.mxu1 %v6731_v3  ;;  %v3790_v47 = vcombine.low %v81_v30, %v85_v32  ;;  %v4660_v30 = vcombine.high %v916_v20, %v920_v21  ;;  %v41_v32 = vld [vmem:[%s6722_s3 + $0x18] sm:$0xff]  ;;  %v885_v21 = vld [vmem:[%s6724_s4 + $0x148] sm:$0xff] }
  0x37   :  { %1638 = vmatpush1.bf16.msra.mxu0 %v4471_v48  ;;  %571 = vmatprep.subr.bf16.mxu1 %v3763_v49  ;;  %v4599_v49 = vcombine.low %v948_v34, %v952_v35  ;;  %v45_v34 = vld [vmem:[%s6722_s3 + $0x38] sm:$0xff]  ;;  %v908_v35 = vld [vmem:[%s6724_s4 + $0x200] sm:$0xff] }
  0x38   :  { %1639 = vmatprep.subr.bf16.mxu0 %v4474_v50  ;;  %696 = vmatprep.mubr.bf16.mxu0 %v6731_v3  ;;  %6999 = vst [vmem:[#allocation32_spill] sm:$0xff] %v4660_v30  ;;  %v3751_v43 = vcombine.high %v41_v32, %v45_v34  ;;  %v3750_v54 = vcombine.low %v41_v32, %v45_v34  ;;  %v890_v32 = vld [vmem:[%s6724_s4 + $0x170] sm:$0xff] }
  0x39   :  { %6992 = vst [vmem:[#allocation25_spill] sm:$0xff] %v4599_v49 }
  0x3a   :  { %572 = vmatpush1.bf16.msra.mxu1 %v3762_v55  ;;  %v932_v55 = vld [vmem:[%s6724_s4 + $0x2c0] sm:$0xff] }
  0x3b   :  { %1640 = vmatpush1.bf16.msra.mxu0 %v4491_v56  ;;  %573 = vmatprep.subr.bf16.mxu1 %v3755_v57  ;;  %v936_v57 = vld [vmem:[%s6724_s4 + $0x2e0] sm:$0xff] }
  0x3c   :  { %1641 = vmatprep.subr.bf16.mxu0 %v4494_v58  ;;  %v4622_v63 = vcombine.high %v932_v55, %v936_v57  ;;  %v4637_v9 = vcombine.low %v932_v55, %v936_v57  ;;  %v972_v57 = vld [vmem:[%s6725_s1] sm:$0xff] }
  0x3d   :  { %551 = vmatmul.mubr.bf16.gmra.mxu1 %v4506_v61  ;;  %697 = vmatmul.mubr.bf16.gmra.mxu0 %v4506_v61 }
  0x3e   :  { %574 = vmatpush1.bf16.msra.mxu1 %v3754_v0  ;;  %593 = vmatprep.mubr.bf16.mxu1 %v6731_v3  ;;  %6995 = vst [vmem:[#allocation28_spill] sm:$0xff] %v4622_v63  ;;  %v57_v0 = vld [vmem:[%s6722_s3 + $0x98] sm:$0xff]  ;;  %6996 = vst [vmem:[#allocation29_spill] sm:$0xff] %v4637_v9 }
  0x3f   :  { %1642 = vmatpush1.bf16.msra.mxu0 %v4519_v2  ;;  %575 = vmatprep.subr.bf16.mxu1 %v3747_v4  ;;  %v924_v4 = vld [vmem:[%s6724_s4 + $0x280] sm:$0xff]  ;;  %v3767_v11 = vcombine.high %v57_v0, %v61_v1  ;;  %v3766_v23 = vcombine.low %v57_v0, %v61_v1  ;;  %v893_v0 = vld [vmem:[%s6724_s4 + $0x188] sm:$0xff] }
  0x40   :  { %1643 = vmatprep.subr.bf16.mxu0 %v4522_v5  ;;  %1661 = vmatprep.mubr.bf16.mxu0 %v4537_v12  ;;  %v897_v1 = vld [vmem:[%s6724_s4 + $0x1a8] sm:$0xff] }
  0x41   :  { %v4745_v34 = vcombine.low %v893_v0, %v897_v1 }
  0x42   :  { %576 = vmatpush1.bf16.msra.mxu1 %v3746_v13  ;;  %v4640_v13 = vcombine.high %v924_v4, %v928_v6 }
  0x43   :  { %1644 = vmatpush1.bf16.msra.mxu0 %v4541_v15  ;;  %707 = vmatprep.subr.bf16.mxu1 %v3807_v17  ;;  %v49_v17 = vld [vmem:[%s6722_s3 + $0x58] sm:$0xff]  ;;  %7009 = vst [vmem:[#allocation42_spill] sm:$0xff] %v4745_v34 }
  0x44   :  { %1645 = vmatprep.subr.bf16.mxu0 %v4544_v18  ;;  %6997 = vst [vmem:[#allocation30_spill] sm:$0xff] %v4640_v13 }
  0x45   :  { %594 = vmatmul.mubr.bf16.vlgmr.msra.gmra.mxu1 %v4373_v10 }
  0x46   :  { %708 = vmatpush1.bf16.msra.mxu1 %v3806_v25  ;;  %603 = vmatprep.mubr.bf16.mxu1 %v6731_v3  ;;  %v4657_v25 = vcombine.low %v924_v4, %v928_v6  ;;  %v894_v4 = vld [vmem:[%s6724_s4 + $0x190] sm:$0xff] }
  0x47   :  { %1646 = vmatpush2.bf16.msra.mxu0 %v4561_v26  ;;  %709 = vmatprep.subr.bf16.mxu1 %v3799_v28  ;;  %v3759_v28 = vcombine.high %v49_v17, %v53_v19  ;;  %v898_v6 = vld [vmem:[%s6724_s4 + $0x1b0] sm:$0xff] }
  0x48   :  { %1647 = vmatprep.subr.bf16.mxu0 %v4564_v29  ;;  %6998 = vst [vmem:[#allocation31_spill] sm:$0xff] %v4657_v25  ;;  %v4728_v20 = vcombine.high %v894_v4, %v898_v6 }
  0x4a   :  { %710 = vmatpush1.bf16.msra.mxu1 %v3798_v36  ;;  %v912_v36 = vld [vmem:[%s6724_s4 + $0x220] sm:$0xff]  ;;  %7008 = vst [vmem:[#allocation41_spill] sm:$0xff] %v4728_v20 }
  0x4b   :  { %1648 = vmatpush2.bf16.msra.mxu0 %v4581_v37  ;;  %711 = vmatprep.subr.bf16.mxu1 %v3791_v38  ;;  %v3758_v38 = vcombine.low %v49_v17, %v53_v19  ;;  %v4678_v45 = vcombine.high %v908_v35, %v912_v36  ;;  %v4695_v55 = vcombine.low %v908_v35, %v912_v36 }
  0x4c   :  { %1649 = vmatprep.subr.bf16.mxu0 %v4584_v40  ;;  %v4725_v19 = vcombine.high %v893_v0, %v897_v1  ;;  %v4749_v35 = vcombine.low %v894_v4, %v898_v6  ;;  %v869_v0 = vld [vmem:[%s6724_s4 + $0xc8] sm:$0xff]  ;;  %v870_v4 = vld [vmem:[%s6724_s4 + $0xd0] sm:$0xff] }
  0x4d   :  { %604 = vmatmul.mubr.bf16.gmra.mxu1 %v4416_v27  ;;  %7001 = vst [vmem:[#allocation34_spill] sm:$0xff] %v4678_v45  ;;  %7002 = vst [vmem:[#allocation35_spill] sm:$0xff] %v4695_v55  ;;  %v873_v1 = vld [vmem:[%s6724_s4 + $0xe8] sm:$0xff]  ;;  %v874_v6 = vld [vmem:[%s6724_s4 + $0xf0] sm:$0xff] }
  0x4e   :  { %712 = vmatpush1.bf16.msra.mxu1 %v3790_v47  ;;  %613 = vmatprep.mubr.bf16.mxu1 %v6731_v3  ;;  %v905_v47 = vld [vmem:[%s6724_s4 + $0x1e8] sm:$0xff]  ;;  %7007 = vst [vmem:[#allocation40_spill] sm:$0xff] %v4725_v19  ;;  %7010 = vst [vmem:[#allocation43_spill] sm:$0xff] %v4749_v35 }
  0x4f   :  { %1650 = vmatpush2.bf16.msra.mxu0 %v4599_v49  ;;  %713 = vmatprep.subr.bf16.mxu1 %v3783_v51  ;;  %v902_v51 = vld [vmem:[%s6724_s4 + $0x1d0] sm:$0xff] }
  0x50   :  { %1651 = vmatprep.subr.bf16.mxu0 %v4602_v52  ;;  %v4723_v17 = vcombine.low %v902_v51, %v906_v53 }
  0x52   :  { %714 = vmatpush1.bf16.msra.mxu1 %v3782_v59  ;;  %v4700_v59 = vcombine.high %v901_v46, %v905_v47  ;;  %7006 = vst [vmem:[#allocation39_spill] sm:$0xff] %v4723_v17 }
  0x53   :  { %1652 = vmatpush2.bf16.msra.mxu0 %v4619_v60  ;;  %715 = vmatprep.subr.bf16.mxu1 %v3775_v62  ;;  %v4703_v62 = vcombine.high %v902_v51, %v906_v53 }
  0x54   :  { %1653 = vmatprep.subr.bf16.mxu0 %v4622_v63  ;;  %7003 = vst [vmem:[#allocation36_spill] sm:$0xff] %v4700_v59 }
  0x55   :  { %614 = vmatmul.mubr.bf16.gmra.mxu1 %v4461_v44  ;;  %7004 = vst [vmem:[#allocation37_spill] sm:$0xff] %v4703_v62 }
  0x56   :  { %716 = vmatpush1.bf16.msra.mxu1 %v3774_v8  ;;  %623 = vmatprep.mubr.bf16.mxu1 %v6731_v3  ;;  %v4717_v8 = vpack.c.bf16 %v972_v57, %v972_v57 }
  0x57   :  { %1654 = vmatpush2.bf16.msra.mxu0 %v4637_v9  ;;  %717 = vmatprep.subr.bf16.mxu1 %v3767_v11  ;;  %v4719_v11 = vcombine.low %v901_v46, %v905_v47  ;;  %v878_v46 = vld [vmem:[%s6724_s4 + $0x110] sm:$0xff] }
  0x58   :  { %1655 = vmatprep.subr.bf16.mxu0 %v4640_v13  ;;  %v882_v47 = vld [vmem:[%s6724_s4 + $0x130] sm:$0xff] }
  0x59   :  { %7005 = vst [vmem:[#allocation38_spill] sm:$0xff] %v4719_v11  ;;  %v4780_v57 = vcombine.high %v878_v46, %v882_v47 }
  0x5a   :  { %718 = vmatpush1.bf16.msra.mxu1 %v3766_v23  ;;  %v889_v23 = vld [vmem:[%s6724_s4 + $0x168] sm:$0xff] }
  0x5b   :  { %1656 = vmatpush2.bf16.msra.mxu0 %v4657_v25  ;;  %719 = vmatprep.subr.bf16.mxu1 %v3759_v28  ;;  %v886_v28 = vld [vmem:[%s6724_s4 + $0x150] sm:$0xff]  ;;  %v4771_v51 = vcombine.low %v885_v21, %v889_v23  ;;  %7016 = vst [vmem:[#allocation49_spill] sm:$0xff] %v4780_v57 }
  0x5c   :  { %1657 = vmatprep.subr.bf16.mxu0 %v4660_v30  ;;  %v4754_v36 = vcombine.high %v886_v28, %v890_v32  ;;  %v4775_v53 = vcombine.low %v886_v28, %v890_v32  ;;  %v4803_v28 = vcombine.high %v869_v0, %v873_v1  ;;  %v4806_v32 = vcombine.high %v870_v4, %v874_v6 }
  0x5d   :  { %624 = vmatmul.mubr.bf16.gmra.mxu1 %v4506_v61  ;;  %7013 = vst [vmem:[#allocation46_spill] sm:$0xff] %v4771_v51 }
  0x5e   :  { %720 = vmatpush1.bf16.msra.mxu1 %v3758_v38  ;;  %739 = vmatprep.mubr.bf16.mxu1 %v6731_v3  ;;  %7012 = vst [vmem:[#allocation45_spill] sm:$0xff] %v4754_v36  ;;  %v877_v38 = vld [vmem:[%s6724_s4 + $0x108] sm:$0xff]  ;;  %7014 = vst [vmem:[#allocation47_spill] sm:$0xff] %v4775_v53 }
  0x5f   :  { %1658 = vmatpush2.bf16.msra.mxu0 %v4675_v42  ;;  %721 = vmatprep.subr.bf16.mxu1 %v3751_v43  ;;  %v881_v43 = vld [vmem:[%s6724_s4 + $0x128] sm:$0xff]  ;;  %7019 = vst [vmem:[#allocation52_spill] sm:$0xff] %v4803_v28  ;;  %7020 = vst [vmem:[#allocation53_spill] sm:$0xff] %v4806_v32 }
  0x60   :  { %1659 = vmatprep.subr.bf16.mxu0 %v4678_v45 }
  0x62   :  { %722 = vmatpush1.bf16.msra.mxu1 %v3750_v54  ;;  %v4777_v54 = vcombine.high %v877_v38, %v881_v43 }
  0x63   :  { %1660 = vmatpush2.bf16.msra.mxu0 %v4695_v55  ;;  %1670 = vmatprep.subr.bf16.mxu1 %v4700_v59 }
  0x64   :  { %1711 = vmatprep.subr.bf16.mxu0 %v4703_v62  ;;  %7015 = vst [vmem:[#allocation48_spill] sm:$0xff] %v4777_v54 }
  0x65   :  { %740 = vmatmul.mubr.bf16.vlgmr.msra.gmra.mxu1 %v4373_v10  ;;  %v4751_v10 = vcombine.high %v885_v21, %v889_v23  ;;  %v4796_v21 = vcombine.low %v877_v38, %v881_v43  ;;  %v4801_v23 = vcombine.low %v878_v46, %v882_v47  ;;  %v865_v38 = vld [vmem:[%s6724_s4 + $0xa8] sm:$0xff]  ;;  %v862_v43 = vld [vmem:[%s6724_s4 + $0x90] sm:$0xff]  ;;  %v4821_v47 = vcombine.low %v869_v0, %v873_v1 }
  0x66   :  { %1662 = vmatmul.mubr.bf16.vlgmr.msra.gmra.mxu0 %v4717_v8  ;;  %1671 = vmatpush1.bf16.msra.mxu1 %v4719_v11  ;;  %v866_v46 = vld [vmem:[%s6724_s4 + $0xb0] sm:$0xff]  ;;  %v857_v0 = vld [vmem:[%s6724_s4 + $0x68] sm:$0xff] }
  0x67   :  { %1712 = vmatpush1.bf16.msra.mxu0 %v4723_v17  ;;  %1672 = vmatprep.subr.bf16.mxu1 %v4725_v19  ;;  %7011 = vst [vmem:[#allocation44_spill] sm:$0xff] %v4751_v10  ;;  %7017 = vst [vmem:[#allocation50_spill] sm:$0xff] %v4796_v21  ;;  %v854_v1 = vld [vmem:[%s6724_s4 + $0x50] sm:$0xff]  ;;  %v965_v17 = vld [vmem:[%s6724_s4 + $0x3c8] sm:$0xff] }
  0x68   :  { %1713 = vmatprep.subr.bf16.mxu0 %v4728_v20  ;;  %749 = vmatprep.mubr.bf16.mxu1 %v6731_v3  ;;  %7018 = vst [vmem:[#allocation51_spill] sm:$0xff] %v4801_v23  ;;  %7021 = vst [vmem:[#allocation54_spill] sm:$0xff] %v4821_v47 }
  0x69   :  { %1743 = vmatprep.mubr.bf16.mxu0 %v4537_v12 }
  0x6a   :  { %1673 = vmatpush1.bf16.msra.mxu1 %v4745_v34 }
  0x6b   :  { %1714 = vmatpush1.bf16.msra.mxu0 %v4749_v35  ;;  %1674 = vmatprep.subr.bf16.mxu1 %v4751_v10 }
  0x6c   :  { %1715 = vmatprep.subr.bf16.mxu0 %v4754_v36  ;;  %v853_v36 = vld [vmem:[%s6724_s4 + $0x48] sm:$0xff] }
  0x6d   :  { %750 = vmatmul.mubr.bf16.gmra.mxu1 %v4416_v27  ;;  %v861_v27 = vld [vmem:[%s6724_s4 + $0x88] sm:$0xff]  ;;  %v4853_v35 = vcombine.high %v853_v36, %v857_v0 }
  0x6e   :  { %1675 = vmatpush1.bf16.msra.mxu1 %v4771_v51  ;;  %759 = vmatprep.mubr.bf16.mxu1 %v6731_v3  ;;  %v4825_v3 = vcombine.low %v870_v4, %v874_v6  ;;  %v858_v4 = vld [vmem:[%s6724_s4 + $0x70] sm:$0xff]  ;;  %v4846_v6 = vcombine.low %v861_v27, %v865_v38 }
  0x6f   :  { %1716 = vmatpush1.bf16.msra.mxu0 %v4775_v53  ;;  %1676 = vmatprep.subr.bf16.mxu1 %v4777_v54  ;;  %v4830_v53 = vcombine.high %v862_v43, %v866_v46  ;;  %7028 = vst [vmem:[#allocation60_spill] sm:$0xff] %v4853_v35  ;;  %v4856_v20 = vcombine.high %v854_v1, %v858_v4 }
  0x70   :  { %1717 = vmatprep.subr.bf16.mxu0 %v4780_v57  ;;  %7022 = vst [vmem:[#allocation55_spill] sm:$0xff] %v4825_v3  ;;  %v4827_v57 = vcombine.high %v861_v27, %v865_v38  ;;  %7025 = vst [vmem:[#allocation58_spill] sm:$0xff] %v4846_v6  ;;  %v846_v27 = vld [vmem:[%s6724_s4 + $0x10] sm:$0xff] }
  0x71   :  { %7024 = vst [vmem:[#allocation57_spill] sm:$0xff] %v4830_v53  ;;  %7029 = vst [vmem:[#allocation61_spill] sm:$0xff] %v4856_v20  ;;  %v850_v38 = vld [vmem:[%s6724_s4 + $0x30] sm:$0xff] }
  0x72   :  { %1677 = vmatpush1.bf16.msra.mxu1 %v4796_v21  ;;  %7023 = vst [vmem:[#allocation56_spill] sm:$0xff] %v4827_v57 }
  0x73   :  { %1718 = vmatpush1.bf16.msra.mxu0 %v4801_v23  ;;  %1678 = vmatprep.subr.bf16.mxu1 %v4803_v28  ;;  %v4851_v23 = vcombine.low %v862_v43, %v866_v46  ;;  %v4871_v43 = vcombine.low %v853_v36, %v857_v0  ;;  %v4875_v46 = vcombine.low %v854_v1, %v858_v4  ;;  %v969_v36 = vld [vmem:[%s6724_s4 + $0x3e8] sm:$0xff]  ;;  %v966_v0 = vld [vmem:[%s6724_s4 + $0x3d0] sm:$0xff] }
  0x74   :  { %1719 = vmatprep.subr.bf16.mxu0 %v4806_v32  ;;  %v7026_v32 = vmov 0   ;;  %v970_v1 = vld [vmem:[%s6724_s4 + $0x3f0] sm:$0xff] }
  0x75   :  { %760 = vmatmul.mubr.bf16.gmra.mxu1 %v4461_v44  ;;  %7027 = vst [vmem:[#allocation59_spill] sm:$0xff] %v4851_v23  ;;  %v845_v44 = vld [vmem:[%s6724_s4 + $0x8] sm:$0xff]  ;;  %7030 = vst [vmem:[#allocation62_spill] sm:$0xff] %v4871_v43 }
  0x76   :  { %1679 = vmatpush1.bf16.msra.mxu1 %v4821_v47  ;;  %769 = vmatprep.mubr.bf16.mxu1 %v7026_v32  ;;  %v849_v32 = vld [vmem:[%s6724_s4 + $0x28] sm:$0xff]  ;;  %7031 = vst [vmem:[#allocation63_spill] sm:$0xff] %v4875_v46 }
  0x77   :  { %1720 = vmatpush1.bf16.msra.mxu0 %v4825_v3  ;;  %1680 = vmatprep.subr.bf16.mxu1 %v4827_v57  ;;  %v4880_v3 = vcombine.high %v846_v27, %v850_v38  ;;  %v4896_v4 = vcombine.low %v845_v44, %v849_v32 }
  0x78   :  { %1721 = vmatprep.subr.bf16.mxu0 %v4830_v53  ;;  %v4877_v53 = vcombine.high %v845_v44, %v849_v32  ;;  %v961_v44 = vld [vmem:[%s6724_s4 + $0x3a8] sm:$0xff]  ;;  %v958_v32 = vld [vmem:[%s6724_s4 + $0x390] sm:$0xff] }
  0x79   :  { %7033 = vst [vmem:[#allocation65_spill] sm:$0xff] %v4880_v3  ;;  %7034 = vst [vmem:[#allocation66_spill] sm:$0xff] %v4896_v4 }
  0x7a   :  { %1681 = vmatpush1.bf16.msra.mxu1 %v4846_v6  ;;  %7032 = vst [vmem:[#allocation64_spill] sm:$0xff] %v4877_v53 }
  0x7b   :  { %1722 = vmatpush1.bf16.msra.mxu0 %v4851_v23  ;;  %1682 = vmatprep.subr.bf16.mxu1 %v4853_v35  ;;  %v4903_v23 = vcombine.high %v965_v17, %v969_v36  ;;  %v4906_v35 = vcombine.high %v966_v0, %v970_v1 }
  0x7c   :  { %1723 = vmatprep.subr.bf16.mxu0 %v4856_v20  ;;  %v4901_v20 = vcombine.low %v846_v27, %v850_v38  ;;  %v962_v27 = vld [vmem:[%s6724_s4 + $0x3b0] sm:$0xff]  ;;  %v4921_v38 = vcombine.low %v965_v17, %v969_v36  ;;  %v953_v17 = vld [vmem:[%s6724_s4 + $0x368] sm:$0xff] }
  0x7d   :  { %770 = vmatmul.mubr.bf16.gmra.mxu1 %v4506_v61  ;;  %7036 = vst [vmem:[#allocation68_spill] sm:$0xff] %v4903_v23  ;;  %7037 = vst [vmem:[#allocation69_spill] sm:$0xff] %v4906_v35  ;;  %v957_v61 = vld [vmem:[%s6724_s4 + $0x388] sm:$0xff]  ;;  %v950_v36 = vld [vmem:[%s6724_s4 + $0x350] sm:$0xff] }
  0x7e   :  { %1683 = vmatpush1.bf16.msra.mxu1 %v4871_v43  ;;  %1702 = vmatprep.mubr.bf16.mxu1 %v4537_v12  ;;  %7035 = vst [vmem:[#allocation67_spill] sm:$0xff] %v4901_v20  ;;  %7038 = vst [vmem:[#allocation70_spill] sm:$0xff] %v4921_v38  ;;  %v949_v43 = vld [vmem:[%s6724_s4 + $0x348] sm:$0xff] }
  0x7f   :  { %1724 = vmatpush1.bf16.msra.mxu0 %v4875_v46  ;;  %1684 = vmatprep.subr.bf16.mxu1 %v4877_v53  ;;  %v4927_v46 = vcombine.high %v957_v61, %v961_v44  ;;  %v4930_v53 = vcombine.high %v958_v32, %v962_v27 }
  0x80   :  { %1725 = vmatprep.subr.bf16.mxu0 %v4880_v3  ;;  %v4925_v3 = vcombine.low %v966_v0, %v970_v1  ;;  %v954_v0 = vld [vmem:[%s6724_s4 + $0x370] sm:$0xff]  ;;  %v4945_v1 = vcombine.low %v957_v61, %v961_v44  ;;  %v945_v61 = vld [vmem:[%s6724_s4 + $0x328] sm:$0xff] }
  0x81   :  { %7040 = vst [vmem:[#allocation72_spill] sm:$0xff] %v4927_v46  ;;  %7041 = vst [vmem:[#allocation73_spill] sm:$0xff] %v4930_v53  ;;  %v942_v44 = vld [vmem:[%s6724_s4 + $0x310] sm:$0xff] }
  0x82   :  { %1685 = vmatpush1.bf16.msra.mxu1 %v4896_v4  ;;  %7039 = vst [vmem:[#allocation71_spill] sm:$0xff] %v4925_v3  ;;  %7042 = vst [vmem:[#allocation74_spill] sm:$0xff] %v4945_v1  ;;  %v941_v4 = vld [vmem:[%s6724_s4 + $0x308] sm:$0xff] }
  0x83   :  { %1726 = vmatpush1.bf16.msra.mxu0 %v4901_v20  ;;  %1686 = vmatprep.subr.bf16.mxu1 %v4903_v23  ;;  %v4951_v20 = vcombine.high %v949_v43, %v953_v17  ;;  %v4954_v23 = vcombine.high %v950_v36, %v954_v0 }
  0x84   :  { %1727 = vmatprep.subr.bf16.mxu0 %v4906_v35  ;;  %v4949_v35 = vcombine.low %v958_v32, %v962_v27  ;;  %v946_v32 = vld [vmem:[%s6724_s4 + $0x330] sm:$0xff]  ;;  %v4969_v27 = vcombine.low %v949_v43, %v953_v17  ;;  %v937_v43 = vld [vmem:[%s6724_s4 + $0x2e8] sm:$0xff] }
  0x85   :  { %7044 = vst [vmem:[#allocation76_spill] sm:$0xff] %v4951_v20  ;;  %7045 = vst [vmem:[#allocation77_spill] sm:$0xff] %v4954_v23  ;;  %v934_v17 = vld [vmem:[%s6724_s4 + $0x2d0] sm:$0xff] }
  0x86   :  { %1687 = vmatpush2.bf16.msra.mxu1 %v4921_v38  ;;  %7043 = vst [vmem:[#allocation75_spill] sm:$0xff] %v4949_v35  ;;  %7046 = vst [vmem:[#allocation78_spill] sm:$0xff] %v4969_v27  ;;  %v933_v38 = vld [vmem:[%s6724_s4 + $0x2c8] sm:$0xff] }
  0x87   :  { %1728 = vmatpush2.bf16.msra.mxu0 %v4925_v3  ;;  %1688 = vmatprep.subr.bf16.mxu1 %v4927_v46  ;;  %v4975_v3 = vcombine.high %v941_v4, %v945_v61  ;;  %v4978_v46 = vcombine.high %v942_v44, %v946_v32 }
  0x88   :  { %1729 = vmatprep.subr.bf16.mxu0 %v4930_v53  ;;  %v4973_v53 = vcombine.low %v950_v36, %v954_v0  ;;  %v938_v36 = vld [vmem:[%s6724_s4 + $0x2f0] sm:$0xff]  ;;  %v4993_v0 = vcombine.low %v941_v4, %v945_v61  ;;  %v929_v4 = vld [vmem:[%s6724_s4 + $0x2a8] sm:$0xff] }
  0x89   :  { %7048 = vst [vmem:[#allocation80_spill] sm:$0xff] %v4975_v3  ;;  %7049 = vst [vmem:[#allocation81_spill] sm:$0xff] %v4978_v46  ;;  %v926_v61 = vld [vmem:[%s6724_s4 + $0x290] sm:$0xff] }
  0x8a   :  { %1689 = vmatpush2.bf16.msra.mxu1 %v4945_v1  ;;  %7047 = vst [vmem:[#allocation79_spill] sm:$0xff] %v4973_v53  ;;  %7050 = vst [vmem:[#allocation82_spill] sm:$0xff] %v4993_v0  ;;  %v925_v1 = vld [vmem:[%s6724_s4 + $0x288] sm:$0xff] }
  0x8b   :  { %1730 = vmatpush2.bf16.msra.mxu0 %v4949_v35  ;;  %1690 = vmatprep.subr.bf16.mxu1 %v4951_v20  ;;  %v4999_v35 = vcombine.high %v933_v38, %v937_v43  ;;  %v5002_v20 = vcombine.high %v934_v17, %v938_v36 }
  0x8c   :  { %1731 = vmatprep.subr.bf16.mxu0 %v4954_v23  ;;  %v4997_v23 = vcombine.low %v942_v44, %v946_v32  ;;  %v930_v44 = vld [vmem:[%s6724_s4 + $0x2b0] sm:$0xff]  ;;  %v5017_v32 = vcombine.low %v933_v38, %v937_v43  ;;  %v921_v38 = vld [vmem:[%s6724_s4 + $0x268] sm:$0xff] }
  0x8d   :  { %7052 = vst [vmem:[#allocation84_spill] sm:$0xff] %v4999_v35  ;;  %7053 = vst [vmem:[#allocation85_spill] sm:$0xff] %v5002_v20  ;;  %v918_v43 = vld [vmem:[%s6724_s4 + $0x250] sm:$0xff] }
  0x8e   :  { %1691 = vmatpush2.bf16.msra.mxu1 %v4969_v27  ;;  %7051 = vst [vmem:[#allocation83_spill] sm:$0xff] %v4997_v23  ;;  %7054 = vst [vmem:[#allocation86_spill] sm:$0xff] %v5017_v32  ;;  %v917_v27 = vld [vmem:[%s6724_s4 + $0x248] sm:$0xff] }
  0x8f   :  { %1732 = vmatpush2.bf16.msra.mxu0 %v4973_v53  ;;  %1692 = vmatprep.subr.bf16.mxu1 %v4975_v3  ;;  %v5023_v53 = vcombine.high %v925_v1, %v929_v4  ;;  %v5026_v3 = vcombine.high %v926_v61, %v930_v44 }
  0x90   :  { %1733 = vmatprep.subr.bf16.mxu0 %v4978_v46  ;;  %v5021_v46 = vcombine.low %v934_v17, %v938_v36  ;;  %v922_v17 = vld [vmem:[%s6724_s4 + $0x270] sm:$0xff]  ;;  %v5041_v36 = vcombine.low %v925_v1, %v929_v4  ;;  %v913_v1 = vld [vmem:[%s6724_s4 + $0x228] sm:$0xff] }
  0x91   :  { %7056 = vst [vmem:[#allocation88_spill] sm:$0xff] %v5023_v53  ;;  %7057 = vst [vmem:[#allocation89_spill] sm:$0xff] %v5026_v3  ;;  %v910_v4 = vld [vmem:[%s6724_s4 + $0x210] sm:$0xff] }
  0x92   :  { %1693 = vmatpush2.bf16.msra.mxu1 %v4993_v0  ;;  %7055 = vst [vmem:[#allocation87_spill] sm:$0xff] %v5021_v46  ;;  %7058 = vst [vmem:[#allocation90_spill] sm:$0xff] %v5041_v36  ;;  %v909_v0 = vld [vmem:[%s6724_s4 + $0x208] sm:$0xff] }
  0x93   :  { %1734 = vmatpush2.bf16.msra.mxu0 %v4997_v23  ;;  %1694 = vmatprep.subr.bf16.mxu1 %v4999_v35  ;;  %v5047_v23 = vcombine.high %v917_v27, %v921_v38  ;;  %v5050_v35 = vcombine.high %v918_v43, %v922_v17 }
  0x94   :  { %1735 = vmatprep.subr.bf16.mxu0 %v5002_v20  ;;  %v5045_v20 = vcombine.low %v926_v61, %v930_v44  ;;  %v914_v61 = vld [vmem:[%s6724_s4 + $0x230] sm:$0xff]  ;;  %v5065_v44 = vcombine.low %v917_v27, %v921_v38  ;;  %v907_v27 = vld [vmem:[%s6724_s4 + $0x1f8] sm:$0xff]  ;;  %v5083_v38 = vcombine.low %v909_v0, %v913_v1 }
  0x95   :  { %7060 = vst [vmem:[#allocation92_spill] sm:$0xff] %v5047_v23  ;;  %7061 = vst [vmem:[#allocation93_spill] sm:$0xff] %v5050_v35 }
  0x96   :  { %1695 = vmatpush2.bf16.msra.mxu1 %v5017_v32  ;;  %7059 = vst [vmem:[#allocation91_spill] sm:$0xff] %v5045_v20  ;;  %7062 = vst [vmem:[#allocation94_spill] sm:$0xff] %v5065_v44  ;;  %v903_v32 = vld [vmem:[%s6724_s4 + $0x1d8] sm:$0xff] }
  0x97   :  { %1736 = vmatpush2.bf16.msra.mxu0 %v5021_v46  ;;  %1696 = vmatprep.subr.bf16.mxu1 %v5023_v53  ;;  %v5071_v46 = vcombine.high %v909_v0, %v913_v1  ;;  %v5074_v53 = vcombine.high %v910_v4, %v914_v61  ;;  %7066 = vst [vmem:[#allocation98_spill] sm:$0xff] %v5083_v38 }
  0x98   :  { %1737 = vmatprep.subr.bf16.mxu0 %v5026_v3  ;;  %v5069_v3 = vcombine.low %v918_v43, %v922_v17  ;;  %v5087_v43 = vcombine.low %v910_v4, %v914_v61  ;;  %v5089_v17 = vcombine.high %v903_v32, %v907_v27  ;;  %v5099_v0 = vcombine.low %v903_v32, %v907_v27  ;;  %v887_v4 = vld [vmem:[%s6724_s4 + $0x158] sm:$0xff] }
  0x99   :  { %7064 = vst [vmem:[#allocation96_spill] sm:$0xff] %v5071_v46  ;;  %7065 = vst [vmem:[#allocation97_spill] sm:$0xff] %v5074_v53  ;;  %v891_v61 = vld [vmem:[%s6724_s4 + $0x178] sm:$0xff] }
  0x9a   :  { %1697 = vmatpush2.bf16.msra.mxu1 %v5041_v36  ;;  %7063 = vst [vmem:[#allocation95_spill] sm:$0xff] %v5069_v3  ;;  %7067 = vst [vmem:[#allocation99_spill] sm:$0xff] %v5087_v43  ;;  %v5118_v27 = vcombine.high %v887_v4, %v891_v61 }
  0x9b   :  { %1738 = vmatpush2.bf16.msra.mxu0 %v5045_v20  ;;  %1698 = vmatprep.subr.bf16.mxu1 %v5047_v23  ;;  %7068 = vst [vmem:[#allocation100_spill] sm:$0xff] %v5089_v17  ;;  %v899_v20 = vld [vmem:[%s6724_s4 + $0x1b8] sm:$0xff] }
  0x9c   :  { %1739 = vmatprep.subr.bf16.mxu0 %v5050_v35  ;;  %v895_v35 = vld [vmem:[%s6724_s4 + $0x198] sm:$0xff] }
  0x9d   :  { %v5103_v1 = vcombine.high %v895_v35, %v899_v20  ;;  %v5115_v32 = vcombine.low %v895_v35, %v899_v20  ;;  %v5130_v20 = vcombine.low %v887_v4, %v891_v61 }
  0x9e   :  { %1699 = vmatpush2.bf16.msra.mxu1 %v5065_v44 }
  0x9f   :  { %1740 = vmatpush2.bf16.msra.mxu0 %v5069_v3  ;;  %1700 = vmatprep.subr.bf16.mxu1 %v5071_v46 }
  0xa0   :  { %1741 = vmatprep.subr.bf16.mxu0 %v5074_v53  ;;  %v875_v53 = vld [vmem:[%s6724_s4 + $0xf8] sm:$0xff] }
  0xa2   :  { %1701 = vmatpush2.bf16.msra.mxu1 %v5083_v38 }
  0xa3   :  { %1742 = vmatpush2.bf16.msra.mxu0 %v5087_v43  ;;  %1752 = vmatprep.subr.bf16.mxu1 %v5089_v17  ;;  %v879_v43 = vld [vmem:[%s6724_s4 + $0x118] sm:$0xff] }
  0xa4   :  { %1860 = vmatprep.subr.bf16.mxu0 %v4362_v7  ;;  %v883_v7 = vld [vmem:[%s6724_s4 + $0x138] sm:$0xff] }
  0xa5   :  { %1703 = vmatmul.mubr.bf16.vlgmr.msra.gmra.mxu1 %v4717_v8  ;;  %v5133_v35 = vcombine.high %v879_v43, %v883_v7  ;;  %v5144_v4 = vcombine.low %v879_v43, %v883_v7 }
  0xa6   :  { %1744 = vmatmul.mubr.bf16.vlgmr.msra.gmra.mxu0 %v4717_v8  ;;  %1753 = vmatpush1.bf16.msra.mxu1 %v5099_v0 }
  0xa7   :  { %1754 = vmatprep.subr.bf16.mxu1 %v5103_v1  ;;  %1784 = vmatprep.mubr.bf16.mxu1 %v4537_v12  ;;  %v871_v12 = vld [vmem:[%s6724_s4 + $0xd8] sm:$0xff] }
  0xa8   :  { %1861 = vmatpush1.bf16.msra.mxu0 %v4381_v14  ;;  %v5147_v61 = vcombine.high %v871_v12, %v875_v53  ;;  %v867_v14 = vld [vmem:[%s6724_s4 + $0xb8] sm:$0xff]  ;;  %v5158_v7 = vcombine.low %v871_v12, %v875_v53 }
  0xa9   :  { %1862 = vmatprep.subr.bf16.mxu0 %v4384_v16  ;;  %v863_v16 = vld [vmem:[%s6724_s4 + $0x98] sm:$0xff] }
  0xaa   :  { %1755 = vmatpush1.bf16.msra.mxu1 %v5115_v32  ;;  %v5161_v43 = vcombine.high %v863_v16, %v867_v14  ;;  %v5172_v53 = vcombine.low %v863_v16, %v867_v14 }
  0xab   :  { %1756 = vmatprep.subr.bf16.mxu1 %v5118_v27 }
  0xac   :  { %1863 = vmatpush1.bf16.msra.mxu0 %v4401_v22  ;;  %v859_v22 = vld [vmem:[%s6724_s4 + $0x78] sm:$0xff] }
  0xad   :  { %1864 = vmatprep.subr.bf16.mxu0 %v4405_v24  ;;  %v855_v24 = vld [vmem:[%s6724_s4 + $0x58] sm:$0xff] }
  0xae   :  { %1757 = vmatpush1.bf16.msra.mxu1 %v5130_v20  ;;  %v5175_v12 = vcombine.high %v855_v24, %v859_v22  ;;  %v5186_v14 = vcombine.low %v855_v24, %v859_v22 }
  0xaf   :  { %1758 = vmatprep.subr.bf16.mxu1 %v5133_v35 }
  0xb0   :  { %1865 = vmatpush1.bf16.msra.mxu0 %v4426_v31  ;;  %v851_v31 = vld [vmem:[%s6724_s4 + $0x38] sm:$0xff] }
  0xb1   :  { %1866 = vmatprep.subr.bf16.mxu0 %v4429_v33  ;;  %v847_v33 = vld [vmem:[%s6724_s4 + $0x18] sm:$0xff] }
  0xb2   :  { %1759 = vmatpush1.bf16.msra.mxu1 %v5144_v4  ;;  %v5189_v16 = vcombine.high %v847_v33, %v851_v31  ;;  %v5200_v22 = vcombine.low %v847_v33, %v851_v31 }
  0xb3   :  { %1760 = vmatprep.subr.bf16.mxu1 %v5147_v61 }
  0xb4   :  { %1867 = vmatpush1.bf16.msra.mxu0 %v4446_v39  ;;  %v971_v39 = vld [vmem:[%s6724_s4 + $0x3f8] sm:$0xff] }
  0xb5   :  { %1868 = vmatprep.subr.bf16.mxu0 %v4449_v41  ;;  %v967_v41 = vld [vmem:[%s6724_s4 + $0x3d8] sm:$0xff] }
  0xb6   :  { %1761 = vmatpush1.bf16.msra.mxu1 %v5158_v7  ;;  %v5203_v24 = vcombine.high %v967_v41, %v971_v39  ;;  %v5214_v31 = vcombine.low %v967_v41, %v971_v39 }
  0xb7   :  { %1762 = vmatprep.subr.bf16.mxu1 %v5161_v43 }
  0xb8   :  { %1869 = vmatpush1.bf16.msra.mxu0 %v4471_v48  ;;  %v963_v48 = vld [vmem:[%s6724_s4 + $0x3b8] sm:$0xff] }
  0xb9   :  { %1870 = vmatprep.subr.bf16.mxu0 %v4474_v50  ;;  %v959_v50 = vld [vmem:[%s6724_s4 + $0x398] sm:$0xff] }
  0xba   :  { %1763 = vmatpush1.bf16.msra.mxu1 %v5172_v53  ;;  %v5217_v33 = vcombine.high %v959_v50, %v963_v48  ;;  %v5228_v39 = vcombine.low %v959_v50, %v963_v48 }
  0xbb   :  { %1764 = vmatprep.subr.bf16.mxu1 %v5175_v12 }
  0xbc   :  { %1871 = vmatpush1.bf16.msra.mxu0 %v4491_v56  ;;  %7069 = vst [vmem:[#allocation101_spill] sm:$0xff] %v5217_v33  ;;  %v955_v56 = vld [vmem:[%s6724_s4 + $0x378] sm:$0xff]  ;;  %7070 = vst [vmem:[#allocation102_spill] sm:$0xff] %v5228_v39 }
  0xbd   :  { %1872 = vmatprep.subr.bf16.mxu0 %v4494_v58  ;;  %v951_v58 = vld [vmem:[%s6724_s4 + $0x358] sm:$0xff] }
  0xbe   :  { %1765 = vmatpush1.bf16.msra.mxu1 %v5186_v14  ;;  %v5231_v41 = vcombine.high %v951_v58, %v955_v56  ;;  %v5242_v48 = vcombine.low %v951_v58, %v955_v56 }
  0xbf   :  { %1766 = vmatprep.subr.bf16.mxu1 %v5189_v16 }
  0xc0   :  { %1873 = vmatpush1.bf16.msra.mxu0 %v4519_v2  ;;  %7071 = vst [vmem:[#allocation103_spill] sm:$0xff] %v5231_v41  ;;  %v947_v2 = vld [vmem:[%s6724_s4 + $0x338] sm:$0xff]  ;;  %7072 = vst [vmem:[#allocation104_spill] sm:$0xff] %v5242_v48 }
  0xc1   :  { %1874 = vmatprep.subr.bf16.mxu0 %v4522_v5  ;;  %v943_v5 = vld [vmem:[%s6724_s4 + $0x318] sm:$0xff] }
  0xc2   :  { %1767 = vmatpush1.bf16.msra.mxu1 %v5200_v22  ;;  %v5245_v50 = vcombine.high %v943_v5, %v947_v2  ;;  %v5256_v56 = vcombine.low %v943_v5, %v947_v2 }
  0xc3   :  { %1768 = vmatprep.subr.bf16.mxu1 %v5203_v24 }
  0xc4   :  { %1875 = vmatpush1.bf16.msra.mxu0 %v4541_v15  ;;  %7073 = vst [vmem:[#allocation105_spill] sm:$0xff] %v5245_v50  ;;  %v939_v15 = vld [vmem:[%s6724_s4 + $0x2f8] sm:$0xff]  ;;  %7074 = vst [vmem:[#allocation106_spill] sm:$0xff] %v5256_v56 }
  0xc5   :  { %1876 = vmatprep.subr.bf16.mxu0 %v4544_v18  ;;  %v935_v18 = vld [vmem:[%s6724_s4 + $0x2d8] sm:$0xff] }
  0xc6   :  { %1769 = vmatpush2.bf16.msra.mxu1 %v5214_v31  ;;  %v5259_v58 = vcombine.high %v935_v18, %v939_v15  ;;  %v5270_v2 = vcombine.low %v935_v18, %v939_v15 }
  0xc7   :  { %1770 = vmatprep.subr.bf16.mxu1 %v5217_v33 }
  0xc8   :  { %1877 = vmatpush2.bf16.msra.mxu0 %v4561_v26  ;;  %7075 = vst [vmem:[#allocation107_spill] sm:$0xff] %v5259_v58  ;;  %v931_v26 = vld [vmem:[%s6724_s4 + $0x2b8] sm:$0xff]  ;;  %7076 = vst [vmem:[#allocation108_spill] sm:$0xff] %v5270_v2 }
  0xc9   :  { %1878 = vmatprep.subr.bf16.mxu0 %v4564_v29  ;;  %v927_v29 = vld [vmem:[%s6724_s4 + $0x298] sm:$0xff] }
  0xca   :  { %1771 = vmatpush2.bf16.msra.mxu1 %v5228_v39  ;;  %v5273_v5 = vcombine.high %v927_v29, %v931_v26  ;;  %v5284_v15 = vcombine.low %v927_v29, %v931_v26 }
  0xcb   :  { %1772 = vmatprep.subr.bf16.mxu1 %v5231_v41 }
  0xcc   :  { %1879 = vmatpush2.bf16.msra.mxu0 %v4581_v37  ;;  %7077 = vst [vmem:[#allocation109_spill] sm:$0xff] %v5273_v5  ;;  %v923_v37 = vld [vmem:[%s6724_s4 + $0x278] sm:$0xff]  ;;  %7078 = vst [vmem:[#allocation110_spill] sm:$0xff] %v5284_v15 }
  0xcd   :  { %1880 = vmatprep.subr.bf16.mxu0 %v4584_v40  ;;  %v919_v40 = vld [vmem:[%s6724_s4 + $0x258] sm:$0xff] }
  0xce   :  { %1773 = vmatpush2.bf16.msra.mxu1 %v5242_v48  ;;  %v5287_v18 = vcombine.high %v919_v40, %v923_v37  ;;  %v5298_v26 = vcombine.low %v919_v40, %v923_v37 }
  0xcf   :  { %1774 = vmatprep.subr.bf16.mxu1 %v5245_v50 }
  0xd0   :  { %1881 = vmatpush2.bf16.msra.mxu0 %v4599_v49  ;;  %7079 = vst [vmem:[#allocation111_spill] sm:$0xff] %v5287_v18  ;;  %v915_v49 = vld [vmem:[%s6724_s4 + $0x238] sm:$0xff]  ;;  %7080 = vst [vmem:[#allocation112_spill] sm:$0xff] %v5298_v26 }
  0xd1   :  { %1882 = vmatprep.subr.bf16.mxu0 %v4602_v52  ;;  %v911_v52 = vld [vmem:[%s6724_s4 + $0x218] sm:$0xff] }
  0xd2   :  { %1775 = vmatpush2.bf16.msra.mxu1 %v5256_v56  ;;  %v5301_v29 = vcombine.high %v911_v52, %v915_v49 }
  0xd3   :  { %1776 = vmatprep.subr.bf16.mxu1 %v5259_v58 }
  0xd4   :  { %1883 = vmatpush2.bf16.msra.mxu0 %v4619_v60  ;;  %7081 = vst [vmem:[#allocation113_spill] sm:$0xff] %v5301_v29  ;;  %v5306_v60 = vcombine.low %v911_v52, %v915_v49  ;;  %v5321_v49 = vld [vmem:[%s6726_s5] sm:$0xff] }
  0xd5   :  { %1884 = vmatprep.subr.bf16.mxu0 %v4622_v63  ;;  %v104_v63 = vlaneseq }
  0xd6   :  { %1777 = vmatpush2.bf16.msra.mxu1 %v5270_v2  ;;  %7082 = vst [vmem:[#allocation114_spill] sm:$0xff] %v5306_v60 }
  0xd7   :  { %1778 = vmatprep.subr.bf16.mxu1 %v5273_v5 }
  0xd8   :  { %1885 = vmatpush2.bf16.msra.mxu0 %v4637_v9 }
  0xd9   :  { %1886 = vmatprep.subr.bf16.mxu0 %v4640_v13  ;;  %v5309_v13 = vshrl.u32 %v104_v63, 7 }
  0xda   :  { %1779 = vmatpush2.bf16.msra.mxu1 %v5284_v15 }
  0xdb   :  { %1780 = vmatprep.subr.bf16.mxu1 %v5287_v18  ;;  %v122_v37 = vsub.s32 4, %v5309_v13  ;;  %v106_v40 = vsub.s32 0, %v5309_v13  ;;  %v126_v63 = vsub.s32 5, %v5309_v13 }
  0xdc   :  { %1887 = vmatpush2.bf16.msra.mxu0 %v4657_v25 }
  0xdd   :  { %1888 = vmatprep.subr.bf16.mxu0 %v4660_v30  ;;  %v5335_v30 = vrot.slane %v5321_v49, %v122_v37  ;;  %v5339_v25 = vrot.slane %v5321_v49, %v106_v40 }
  0xde   :  { %1781 = vmatpush2.bf16.msra.mxu1 %v5298_v26 }
  0xdf   :  { %1782 = vmatprep.subr.bf16.mxu1 %v5301_v29 }
  0xe0   :  { %1889 = vmatpush2.bf16.msra.mxu0 %v4675_v42 }
  0xe1   :  { %1890 = vmatprep.subr.bf16.mxu0 %v4678_v45  ;;  %v110_v45 = vsub.s32 1, %v5309_v13 }
  0xe2   :  { %1783 = vmatpush2.bf16.msra.mxu1 %v5306_v60 }
  0xe3   :  { %1901 = vmatprep.subr.bf16.mxu1 %v4700_v59  ;;  %v5347_v59 = vrot.slane %v5321_v49, %v110_v45 }
  0xe4   :  { %1891 = vmatpush2.bf16.msra.mxu0 %v4695_v55 }
  0xe5   :  { %v5323_v52 = vpop.f32.mrf.mxu1  ;;  %1785 = vmatmul.mubr.bf16.vlgmr.msra.gmra.mxu1 %v4717_v8  ;;  %1942 = vmatprep.subr.bf16.mxu0 %v4703_v62  ;;  %v5329_v42 = vpop.f32.mrf.mxu0  ;;  %v5344_v62 = vrot.slane %v5321_v49, %v126_v63 }
  0xe6   :  { %1902 = vmatpush1.bf16.msra.mxu1 %v4719_v11 }
  0xe7   :  { %v5332_v55 = vpop.f32.mrf.mxu1  ;;  %1903 = vmatprep.subr.bf16.mxu1 %v4725_v19  ;;  %v5341_v8 = vpop.f32.mrf.mxu0 }
  0xe9   :  { %v526_v9 = vpop.f32.mrf.mxu1  ;;  %v672_v60 = vpop.f32.mrf.mxu0 }
  0xea   :  { %v5350_v11 = vadd.f32 %v526_v9, %v5339_v25  ;;  %1904 = vmatpush1.bf16.msra.mxu1 %v4745_v34  ;;  %v5354_v19 = vadd.f32 %v672_v60, %v5335_v30 }
  0xeb   :  { %v528_v37 = vpop.f32.mrf.mxu1  ;;  %1905 = vmatprep.subr.bf16.mxu1 %v4751_v10  ;;  %v674_v63 = vpop.f32.mrf.mxu0 }
  0xec   :  { %7083 = vst [vmem:[#allocation115_spill] sm:$0xff] %v5350_v11  ;;  %7084 = vst [vmem:[#allocation116_spill] sm:$0xff] %v5354_v19  ;;  %v5358_v40 = vadd.f32 %v528_v37, %v5347_v59  ;;  %v5361_v45 = vadd.f32 %v674_v63, %v5344_v62 }
  0xed   :  { %v532_v29 = vpop.f32.mrf.mxu1  ;;  %v678_v19 = vpop.f32.mrf.mxu0 }
  0xee   :  { %7085 = vst [vmem:[#allocation117_spill] sm:$0xff] %v5358_v40  ;;  %7086 = vst [vmem:[#allocation118_spill] sm:$0xff] %v5361_v45  ;;  %v5364_v9 = vadd.f32 %v532_v29, %v5339_v25  ;;  %1906 = vmatpush1.bf16.msra.mxu1 %v4771_v51  ;;  %v5372_v37 = vadd.f32 %v678_v19, %v5335_v30 }
  0xef   :  { %v534_v11 = vpop.f32.mrf.mxu1  ;;  %1907 = vmatprep.subr.bf16.mxu1 %v4777_v54  ;;  %v680_v63 = vpop.f32.mrf.mxu0 }
  0xf0   :  { %7087 = vst [vmem:[#allocation119_spill] sm:$0xff] %v5364_v9  ;;  %v5369_v60 = vadd.f32 %v534_v11, %v5347_v59  ;;  %7089 = vst [vmem:[#allocation121_spill] sm:$0xff] %v5372_v37  ;;  %v5379_v9 = vadd.f32 %v680_v63, %v5344_v62 }
  0xf1   :  { %v536_v10 = vpop.f32.mrf.mxu1 }
  0xf2   :  { %7088 = vst [vmem:[#allocation120_spill] sm:$0xff] %v5369_v60  ;;  %v5375_v40 = vadd.f32 %v536_v10, %v5339_v25  ;;  %1908 = vmatpush1.bf16.msra.mxu1 %v4796_v21  ;;  %7091 = vst [vmem:[#allocation123_spill] sm:$0xff] %v5379_v9  ;;  %v682_v60 = vpop.f32.mrf.mxu0 }
  0xf3   :  { %v538_v29 = vpop.f32.mrf.mxu1  ;;  %1909 = vmatprep.subr.bf16.mxu1 %v4803_v28  ;;  %v5386_v19 = vadd.f32 %v682_v60, %v5335_v30  ;;  %v7120_v28 = vld [vmem:[#allocation76_spill] sm:$0xff] }
  0xf4   :  { %7090 = vst [vmem:[#allocation122_spill] sm:$0xff] %v5375_v40  ;;  %v5383_v11 = vadd.f32 %v538_v29, %v5347_v59  ;;  %v684_v40 = vpop.f32.mrf.mxu0 }
  0xf5   :  { %v542_v45 = vpop.f32.mrf.mxu1  ;;  %7093 = vst [vmem:[#allocation125_spill] sm:$0xff] %v5386_v19  ;;  %v5393_v63 = vadd.f32 %v684_v40, %v5344_v62 }
  0xf6   :  { %7092 = vst [vmem:[#allocation124_spill] sm:$0xff] %v5383_v11  ;;  %v5389_v10 = vadd.f32 %v542_v45, %v5339_v25  ;;  %1910 = vmatpush1.bf16.msra.mxu1 %v4821_v47  ;;  %v688_v11 = vpop.f32.mrf.mxu0 }
  0xf7   :  { %v544_v37 = vpop.f32.mrf.mxu1  ;;  %7095 = vst [vmem:[#allocation127_spill] sm:$0xff] %v5393_v63  ;;  %1911 = vmatprep.subr.bf16.mxu1 %v4827_v57  ;;  %v5400_v60 = vadd.f32 %v688_v11, %v5335_v30  ;;  %v7100_v63 = vld [vmem:[#allocation60_spill] sm:$0xff] }
  0xf8   :  { %7094 = vst [vmem:[#allocation126_spill] sm:$0xff] %v5389_v10  ;;  %v5397_v29 = vadd.f32 %v544_v37, %v5347_v59  ;;  %v690_v10 = vpop.f32.mrf.mxu0 }
  0xf9   :  { %v546_v9 = vpop.f32.mrf.mxu1  ;;  %7097 = vst [vmem:[#allocation129_spill] sm:$0xff] %v5400_v60  ;;  %v5407_v40 = vadd.f32 %v690_v10, %v5344_v62  ;;  %v7104_v60 = vld [vmem:[#allocation62_spill] sm:$0xff] }
  0xfa   :  { %7096 = vst [vmem:[#allocation128_spill] sm:$0xff] %v5397_v29  ;;  %v5403_v45 = vadd.f32 %v546_v9, %v5339_v25  ;;  %1912 = vmatpush1.bf16.msra.mxu1 %v4846_v6  ;;  %v692_v29 = vpop.f32.mrf.mxu0 }
  0xfb   :  { %v548_v19 = vpop.f32.mrf.mxu1  ;;  %7099 = vst [vmem:[#allocation131_spill] sm:$0xff] %v5407_v40  ;;  %1913 = vmatprep.subr.bf16.mxu1 %v7100_v63  ;;  %v5414_v11 = vadd.f32 %v692_v29, %v5335_v30  ;;  %v7106_v40 = vld [vmem:[#allocation64_spill] sm:$0xff] }
  0xfc   :  { %7098 = vst [vmem:[#allocation130_spill] sm:$0xff] %v5403_v45  ;;  %v5411_v37 = vadd.f32 %v548_v19, %v5347_v59  ;;  %v694_v45 = vpop.f32.mrf.mxu0 }
  0xfd   :  { %v552_v57 = vpop.f32.mrf.mxu1  ;;  %7102 = vst [vmem:[#allocation133_spill] sm:$0xff] %v5414_v11  ;;  %v5421_v10 = vadd.f32 %v694_v45, %v5344_v62  ;;  %v7110_v11 = vld [vmem:[#allocation66_spill] sm:$0xff] }
  0xfe   :  { %7101 = vst [vmem:[#allocation132_spill] sm:$0xff] %v5411_v37  ;;  %v5417_v9 = vadd.f32 %v552_v57, %v5339_v25  ;;  %1914 = vmatpush1.bf16.msra.mxu1 %v7104_v60  ;;  %v698_v37 = vpop.f32.mrf.mxu0 }
  0xff   :  { %v554_v6 = vpop.f32.mrf.mxu1  ;;  %7105 = vst [vmem:[#allocation135_spill] sm:$0xff] %v5421_v10  ;;  %1915 = vmatprep.subr.bf16.mxu1 %v7106_v40  ;;  %v5428_v29 = vadd.f32 %v698_v37, %v5335_v30  ;;  %v7112_v10 = vld [vmem:[#allocation68_spill] sm:$0xff] }
 0x100   :  { %7103 = vst [vmem:[#allocation134_spill] sm:$0xff] %v5417_v9  ;;  %v5425_v19 = vadd.f32 %v554_v6, %v5347_v59  ;;  %v700_v9 = vpop.f32.mrf.mxu0 }
 0x101   :  { %v556_v63 = vpop.f32.mrf.mxu1  ;;  %7108 = vst [vmem:[#allocation137_spill] sm:$0xff] %v5428_v29  ;;  %v5435_v45 = vadd.f32 %v700_v9, %v5344_v62 }
 0x102   :  { %7107 = vst [vmem:[#allocation136_spill] sm:$0xff] %v5425_v19  ;;  %v5431_v57 = vadd.f32 %v556_v63, %v5339_v25  ;;  %1916 = vmatpush1.bf16.msra.mxu1 %v7110_v11  ;;  %v114_v19 = vsub.s32 2, %v5309_v13  ;;  %v702_v40 = vpop.f32.mrf.mxu0  ;;  %v7115_v11 = vld [vmem:[#allocation70_spill] sm:$0xff] }
 0x103   :  { %v558_v60 = vpop.f32.mrf.mxu1  ;;  %7111 = vst [vmem:[#allocation139_spill] sm:$0xff] %v5435_v45  ;;  %1917 = vmatprep.subr.bf16.mxu1 %v7112_v10  ;;  %v5445_v63 = vadd.f32 %v702_v40, %v5335_v30 }
 0x104   :  { %7109 = vst [vmem:[#allocation138_spill] sm:$0xff] %v5431_v57  ;;  %v5439_v6 = vadd.f32 %v558_v60, %v5347_v59  ;;  %v118_v57 = vsub.s32 3, %v5309_v13  ;;  %v704_v29 = vpop.f32.mrf.mxu0  ;;  %v7117_v60 = vld [vmem:[#allocation72_spill] sm:$0xff] }
 0x105   :  { %v5442_v37 = vpop.f32.mrf.mxu1  ;;  %7114 = vst [vmem:[#allocation141_spill] sm:$0xff] %v5445_v63  ;;  %v5452_v45 = vadd.f32 %v704_v29, %v5344_v62  ;;  %v7119_v63 = vld [vmem:[#allocation74_spill] sm:$0xff] }
 0x106   :  { %7113 = vst [vmem:[#allocation140_spill] sm:$0xff] %v5439_v6  ;;  %1918 = vmatpush2.bf16.msra.mxu1 %v7115_v11  ;;  %v5456_v6 = vrot.slane %v5321_v49, %v114_v19  ;;  %v5459_v47 = vrot.slane %v5321_v49, %v118_v57  ;;  %v7123_v19 = vld [vmem:[#allocation78_spill] sm:$0xff]  ;;  %v7124_v57 = vld [vmem:[#allocation80_spill] sm:$0xff] }
 0x107   :  { %v5449_v9 = vpop.f32.mrf.mxu1  ;;  %7116 = vst [vmem:[#allocation142_spill] sm:$0xff] %v5452_v45  ;;  %1919 = vmatprep.subr.bf16.mxu1 %v7117_v60 }
 0x109   :  { %v599_v10 = vpop.f32.mrf.mxu1 }
 0x10a   :  { %v5462_v40 = vadd.f32 %v599_v10, %v5456_v6  ;;  %1920 = vmatpush2.bf16.msra.mxu1 %v7119_v63 }
 0x10b   :  { %v601_v11 = vpop.f32.mrf.mxu1  ;;  %1921 = vmatprep.subr.bf16.mxu1 %v7120_v28  ;;  %v7127_v28 = vld [vmem:[#allocation82_spill] sm:$0xff] }
 0x10c   :  { %7118 = vst [vmem:[#allocation143_spill] sm:$0xff] %v5462_v40  ;;  %v5467_v29 = vadd.f32 %v601_v11, %v5459_v47 }
 0x10d   :  { %v605_v45 = vpop.f32.mrf.mxu1 }
 0x10e   :  { %7121 = vst [vmem:[#allocation144_spill] sm:$0xff] %v5467_v29  ;;  %v5470_v60 = vadd.f32 %v605_v45, %v5456_v6  ;;  %1922 = vmatpush2.bf16.msra.mxu1 %v7123_v19  ;;  %v7128_v29 = vld [vmem:[#allocation84_spill] sm:$0xff] }
 0x10f   :  { %v607_v21 = vpop.f32.mrf.mxu1  ;;  %1923 = vmatprep.subr.bf16.mxu1 %v7124_v57  ;;  %v7131_v57 = vld [vmem:[#allocation86_spill] sm:$0xff] }
 0x110   :  { %7122 = vst [vmem:[#allocation145_spill] sm:$0xff] %v5470_v60  ;;  %v5475_v10 = vadd.f32 %v607_v21, %v5459_v47 }
 0x111   :  { %v609_v40 = vpop.f32.mrf.mxu1 }
 0x112   :  { %7125 = vst [vmem:[#allocation146_spill] sm:$0xff] %v5475_v10  ;;  %v5478_v63 = vadd.f32 %v609_v40, %v5456_v6  ;;  %1924 = vmatpush2.bf16.msra.mxu1 %v7127_v28  ;;  %v7132_v10 = vld [vmem:[#allocation88_spill] sm:$0xff] }
 0x113   :  { %v611_v11 = vpop.f32.mrf.mxu1  ;;  %1925 = vmatprep.subr.bf16.mxu1 %v7128_v29 }
 0x114   :  { %7126 = vst [vmem:[#allocation147_spill] sm:$0xff] %v5478_v63  ;;  %v5483_v45 = vadd.f32 %v611_v11, %v5459_v47 }
 0x115   :  { %v615_v60 = vpop.f32.mrf.mxu1 }
 0x116   :  { %7129 = vst [vmem:[#allocation148_spill] sm:$0xff] %v5483_v45  ;;  %v5486_v19 = vadd.f32 %v615_v60, %v5456_v6  ;;  %1926 = vmatpush2.bf16.msra.mxu1 %v7131_v57 }
 0x117   :  { %v617_v21 = vpop.f32.mrf.mxu1  ;;  %1927 = vmatprep.subr.bf16.mxu1 %v7132_v10 }
 0x118   :  { %7130 = vst [vmem:[#allocation149_spill] sm:$0xff] %v5486_v19  ;;  %v5491_v40 = vadd.f32 %v617_v21, %v5459_v47 }
 0x119   :  { %v619_v63 = vpop.f32.mrf.mxu1 }
 0x11a   :  { %7133 = vst [vmem:[#allocation150_spill] sm:$0xff] %v5491_v40  ;;  %v5494_v28 = vadd.f32 %v619_v63, %v5456_v6  ;;  %1928 = vmatpush2.bf16.msra.mxu1 %v5041_v36 }
 0x11b   :  { %v621_v11 = vpop.f32.mrf.mxu1  ;;  %1929 = vmatprep.subr.bf16.mxu1 %v5047_v23 }
 0x11c   :  { %7134 = vst [vmem:[#allocation151_spill] sm:$0xff] %v5494_v28  ;;  %v5499_v60 = vadd.f32 %v621_v11, %v5459_v47 }
 0x11d   :  { %v625_v19 = vpop.f32.mrf.mxu1 }
 0x11e   :  { %7135 = vst [vmem:[#allocation152_spill] sm:$0xff] %v5499_v60  ;;  %v5502_v45 = vadd.f32 %v625_v19, %v5456_v6  ;;  %1930 = vmatpush2.bf16.msra.mxu1 %v5065_v44  ;;  %v523_v60 = vadd.f32 %v5323_v52, %v5339_v25 }
 0x11f   :  { %v627_v21 = vpop.f32.mrf.mxu1  ;;  %1931 = vmatprep.subr.bf16.mxu1 %v5071_v46 }
 0x120   :  { %7136 = vst [vmem:[#allocation153_spill] sm:$0xff] %v5502_v45  ;;  %v5507_v63 = vadd.f32 %v627_v21, %v5459_v47  ;;  %v130_v45 = vsub.s32 6, %v5309_v13 }
 0x121   :  { %v629_v28 = vpop.f32.mrf.mxu1 }
 0x122   :  { %7137 = vst [vmem:[#allocation154_spill] sm:$0xff] %v5507_v63  ;;  %v5510_v40 = vadd.f32 %v629_v28, %v5456_v6  ;;  %1932 = vmatpush2.bf16.msra.mxu1 %v5083_v38  ;;  %v134_v63 = vsub.s32 7, %v5309_v13  ;;  %v525_v28 = vadd.f32 %v5332_v55, %v5347_v59 }
 0x123   :  { %v631_v11 = vpop.f32.mrf.mxu1  ;;  %1983 = vmatprep.subr.bf16.mxu1 %v5089_v17  ;;  %v5528_v17 = vrot.slane %v5321_v49, %v130_v45 }
 0x124   :  { %7138 = vst [vmem:[#allocation155_spill] sm:$0xff] %v5510_v40  ;;  %v5515_v19 = vadd.f32 %v631_v11, %v5459_v47  ;;  %v5531_v23 = vrot.slane %v5321_v49, %v134_v63 }
 0x125   :  { %v5520_v46 = vpop.f32.mrf.mxu1 }
 0x126   :  { %7139 = vst [vmem:[#allocation156_spill] sm:$0xff] %v5515_v19  ;;  %v1663_v21 = vpop.f32.mrf.mxu0 }
 0x127   :  { %v1793_v40 = vadd.f32 %v1663_v21, %v523_v60  ;;  %v5525_v38 = vpop.f32.mrf.mxu1 }
 0x128   :  { %v1665_v11 = vpop.f32.mrf.mxu0 }
 0x129   :  { %v1794_v19 = vadd.f32 %v1665_v11, %v525_v28  ;;  %v745_v44 = vpop.f32.mrf.mxu1 }
 0x12a   :  { %v5534_v25 = vadd.f32 %v745_v44, %v5528_v17  ;;  %v1667_v52 = vpop.f32.mrf.mxu0 }
 0x12b   :  { %v747_v13 = vpop.f32.mrf.mxu1 }
 0x12c   :  { %v5537_v36 = vadd.f32 %v747_v13, %v5531_v23  ;;  %v1668_v55 = vpop.f32.mrf.mxu0 }
 0x12d   :  { %v751_v59 = vpop.f32.mrf.mxu1 }
 0x12e   :  { %v5540_v60 = vadd.f32 %v751_v59, %v5528_v17 }
 0x12f   :  { %v753_v45 = vpop.f32.mrf.mxu1 }
 0x130   :  { %7140 = vst [vmem:[#allocation157_spill] sm:$0xff] %v5540_v60  ;;  %v5543_v21 = vadd.f32 %v753_v45, %v5531_v23  ;;  %v1802_v60 = vmul.f32 0.5, %v1794_v19 }
 0x131   :  { %v755_v28 = vpop.f32.mrf.mxu1 }
 0x132   :  { %7141 = vst [vmem:[#allocation158_spill] sm:$0xff] %v5543_v21  ;;  %v5546_v49 = vadd.f32 %v755_v28, %v5528_v17 }
 0x133   :  { %v757_v44 = vpop.f32.mrf.mxu1 }
 0x134   :  { %7142 = vst [vmem:[#allocation159_spill] sm:$0xff] %v5546_v49  ;;  %v5549_v63 = vadd.f32 %v757_v44, %v5531_v23 }
 0x135   :  { %v761_v11 = vpop.f32.mrf.mxu1 }
 0x136   :  { %7143 = vst [vmem:[#allocation160_spill] sm:$0xff] %v5549_v63  ;;  %v5552_v52 = vadd.f32 %v761_v11, %v5528_v17 }
 0x137   :  { %v763_v13 = vpop.f32.mrf.mxu1 }
 0x138   :  { %7144 = vst [vmem:[#allocation161_spill] sm:$0xff] %v5552_v52  ;;  %v5555_v55 = vadd.f32 %v763_v13, %v5531_v23 }
 0x139   :  { %v765_v59 = vpop.f32.mrf.mxu1 }
 0x13a   :  { %7145 = vst [vmem:[#allocation162_spill] sm:$0xff] %v5555_v55  ;;  %v5558_v45 = vadd.f32 %v765_v59, %v5528_v17 }
 0x13b   :  { %v767_v21 = vpop.f32.mrf.mxu1 }
 0x13c   :  { %7146 = vst [vmem:[#allocation163_spill] sm:$0xff] %v5558_v45  ;;  %v5561_v28 = vadd.f32 %v767_v21, %v5531_v23  ;;  %v1801_v45 = vmul.f32 0.5, %v1793_v40  ;;  %v596_v21 = vadd.f32 %v5442_v37, %v5456_v6 }
 0x13d   :  { %v771_v49 = vpop.f32.mrf.mxu1 }
 0x13e   :  { %7147 = vst [vmem:[#allocation164_spill] sm:$0xff] %v5561_v28  ;;  %v5564_v44 = vadd.f32 %v771_v49, %v5528_v17  ;;  %4046 = vtanh.f32 %v1801_v45  ;;  %v669_v49 = vadd.f32 %v5329_v42, %v5335_v30 }
 0x13f   :  { %v773_v63 = vpop.f32.mrf.mxu1  ;;  %4048 = vtanh.f32 %v1802_v60 }
 0x140   :  { %7148 = vst [vmem:[#allocation165_spill] sm:$0xff] %v5564_v44  ;;  %v5567_v11 = vadd.f32 %v773_v63, %v5531_v23 }
 0x141   :  { %v775_v52 = vpop.f32.mrf.mxu1 }
 0x142   :  { %7149 = vst [vmem:[#allocation166_spill] sm:$0xff] %v5567_v11  ;;  %v5570_v13 = vadd.f32 %v775_v52, %v5528_v17  ;;  %v598_v11 = vadd.f32 %v5449_v9, %v5459_v47 }
 0x143   :  { %v777_v55 = vpop.f32.mrf.mxu1 }
 0x144   :  { %7150 = vst [vmem:[#allocation167_spill] sm:$0xff] %v5570_v13  ;;  %v5573_v59 = vadd.f32 %v777_v55, %v5531_v23  ;;  %v671_v55 = vadd.f32 %v5341_v8, %v5344_v62 }
 0x146   :  { %7151 = vst [vmem:[#allocation168_spill] sm:$0xff] %v5573_v59 }
 0x14b   :  { %v4047_v9 = vpop.eup %4046 }
 0x165   :  { %v1704_v63 = vpop.f32.mrf.mxu1 }
 0x166   :  { %v1795_v52 = vadd.f32 %v1704_v63, %v596_v21  ;;  %v1745_v13 = vpop.f32.mrf.mxu0  ;;  %v4049_v21 = vpop.eup %4048  ;;  %v1805_v63 = vmul.f32 0.5, %v4047_v9 }
 0x167   :  { %v1797_v59 = vadd.f32 %v1745_v13, %v669_v49  ;;  %v1706_v40 = vpop.f32.mrf.mxu1  ;;  %v1806_v28 = vmul.f32 0.5, %v4049_v21  ;;  %v744_v21 = vadd.f32 %v5525_v38, %v5531_v23 }
 0x168   :  { %v1809_v19 = vmul.f32 0.5, %v1795_v52  ;;  %v1796_v45 = vadd.f32 %v1706_v40, %v598_v11  ;;  %v1747_v60 = vpop.f32.mrf.mxu0  ;;  %v1807_v62 = vadd.f32 0.5, %v1805_v63  ;;  %v974_v40 = vld [vmem:[%s6727_s2] sm:$0xff] }
 0x169   :  { %4050 = vtanh.f32 %v1797_v59  ;;  %v1798_v44 = vadd.f32 %v1747_v60, %v671_v55  ;;  %v1708_v6 = vpop.f32.mrf.mxu1  ;;  %v1808_v49 = vadd.f32 0.5, %v1806_v28  ;;  %v975_v60 = vld [vmem:[%s6727_s2 + $0x8] sm:$0xff] }
 0x16a   :  { %4052 = vtanh.f32 %v1809_v19  ;;  %v1810_v37 = vmul.f32 0.5, %v1796_v45  ;;  %v1749_v30 = vpop.f32.mrf.mxu0 }
 0x16b   :  { %4054 = vtanh.f32 %v1798_v44  ;;  %v1709_v42 = vpop.f32.mrf.mxu1 }
 0x16c   :  { %4056 = vtanh.f32 %v1810_v37  ;;  %v1750_v47 = vpop.f32.mrf.mxu0 }
 0x16d   :  { %v742_v47 = vadd.f32 %v5520_v46, %v5528_v17 }
 0x176   :  { %v4051_v8 = vpop.eup %4050 }
 0x177   :  { %v4053_v13 = vpop.eup %4052  ;;  %v1829_v11 = vmul.f32 %v4051_v8, %v1807_v62 }
 0x178   :  { %v4055_v52 = vpop.eup %4054  ;;  %v1813_v59 = vmul.f32 0.5, %v4053_v13 }
 0x179   :  { %v4057_v55 = vpop.eup %4056  ;;  %v1830_v44 = vmul.f32 %v4055_v52, %v1808_v49 }
 0x17a   :  { %v1815_v19 = vadd.f32 0.5, %v1813_v59  ;;  %v1814_v45 = vmul.f32 0.5, %v4057_v55 }
 0x17c   :  { %v1827_v6 = vmul.f32 %v1815_v19, %v974_v40  ;;  %v1816_v37 = vadd.f32 0.5, %v1814_v45 }
 0x17e   :  { %v5589_v30 = vadd.f32 %v1829_v11, %v1827_v6  ;;  %v1828_v28 = vmul.f32 %v1816_v37, %v975_v60  ;;  %v7154_v37 = vld [vmem:[#allocation39_spill] sm:$0xff] }
 0x180   :  { %v5591_v42 = vadd.f32 %v1830_v44, %v1828_v28  ;;  %v7155_v28 = vld [vmem:[#allocation41_spill] sm:$0xff] }
 0x1a5   :  { %v1786_v9 = vpop.f32.mrf.mxu1 }
 0x1a6   :  { %v1799_v63 = vadd.f32 %v1786_v9, %v742_v47  ;;  %v7156_v47 = vld [vmem:[#allocation43_spill] sm:$0xff]  ;;  %v7157_v9 = vld [vmem:[#allocation45_spill] sm:$0xff] }
 0x1a7   :  { %v1788_v62 = vpop.f32.mrf.mxu1 }
 0x1a8   :  { %v1819_v8 = vmul.f32 0.5, %v1799_v63  ;;  %v1800_v13 = vadd.f32 %v1788_v62, %v744_v21  ;;  %v7158_v21 = vld [vmem:[#allocation47_spill] sm:$0xff]  ;;  %v7159_v63 = vld [vmem:[#allocation49_spill] sm:$0xff] }
 0x1a9   :  { %v1790_v49 = vpop.f32.mrf.mxu1  ;;  %v7160_v62 = vld [vmem:[#allocation51_spill] sm:$0xff] }
 0x1aa   :  { %4058 = vtanh.f32 %v1819_v8  ;;  %v1820_v52 = vmul.f32 0.5, %v1800_v13  ;;  %v7161_v8 = vld [vmem:[#allocation53_spill] sm:$0xff]  ;;  %v7162_v13 = vld [vmem:[#allocation55_spill] sm:$0xff] }
 0x1ab   :  { %v1791_v59 = vpop.f32.mrf.mxu1  ;;  %v7163_v49 = vld [vmem:[#allocation57_spill] sm:$0xff] }
 0x1ac   :  { %4060 = vtanh.f32 %v1820_v52  ;;  %v7164_v52 = vld [vmem:[#allocation59_spill] sm:$0xff]  ;;  %v7165_v59 = vld [vmem:[#allocation61_spill] sm:$0xff] }
 0x1ad   :  { %4062 = vtanh.f32 %v5589_v30 }
 0x1ae   :  { %4064 = vtanh.f32 %v5591_v42 }
 0x1b7   :  { %v4059_v11 = vpop.eup %4058 }
 0x1b8   :  { %v1823_v55 = vmul.f32 0.5, %v4059_v11  ;;  %v7166_v11 = vld [vmem:[#allocation63_spill] sm:$0xff] }
 0x1b9   :  { %v4061_v46 = vpop.eup %4060 }
 0x1ba   :  { %v1825_v17 = vadd.f32 0.5, %v1823_v55  ;;  %v1824_v40 = vmul.f32 0.5, %v4061_v46  ;;  %v4063_v44 = vpop.eup %4062  ;;  %v7167_v55 = vld [vmem:[#allocation65_spill] sm:$0xff]  ;;  %v7168_v46 = vld [vmem:[#allocation67_spill] sm:$0xff] }
 0x1bb   :  { %v4065_v38 = vpop.eup %4064 }
 0x1bc   :  { %v1826_v23 = vadd.f32 0.5, %v1824_v40  ;;  %v5599_v19 = vmul.f32 %v4063_v44, %v1825_v17  ;;  %v7169_v17 = vld [vmem:[#allocation69_spill] sm:$0xff]  ;;  %v7170_v40 = vld [vmem:[#allocation71_spill] sm:$0xff] }
 0x1bd   :  { %v7171_v44 = vld [vmem:[#allocation73_spill] sm:$0xff] }
 0x1be   :  { %7152 = vst [vmem:[#allocation169_spill] sm:$0xff] %v5599_v19  ;;  %v5601_v45 = vmul.f32 %v4065_v38, %v1826_v23  ;;  %v5607_v6 = vpack.c.bf16 %v5599_v19, %v5599_v19  ;;  %v7172_v23 = vld [vmem:[#allocation75_spill] sm:$0xff]  ;;  %v7173_v38 = vld [vmem:[#allocation77_spill] sm:$0xff] }
 0x1bf   :  { %v7175_v19 = vld [vmem:[#allocation81_spill] sm:$0xff] }
 0x1c0   :  { %7153 = vst [vmem:[#allocation170_spill] sm:$0xff] %v5601_v45  ;;  %v1838_v60 = vpack.c.bf16 %v5601_v45, %v5601_v45  ;;  %v7176_v45 = vld [vmem:[#allocation83_spill] sm:$0xff] }
 0x1c2   :  { %1892 = vmatprep.mubr.bf16.mxu0 %v1838_v60  ;;  %1933 = vmatprep.mubr.bf16.mxu1 %v1838_v60 }
 0x1c3   :  { %1893 = vmatmul.mubr.bf16.vlgmr.msra.gmra.mxu0 %v5607_v6  ;;  %1934 = vmatmul.mubr.bf16.vlgmr.msra.gmra.mxu1 %v5607_v6 }
 0x1c4   :  { %1943 = vmatpush1.bf16.msra.mxu0 %v7154_v37  ;;  %1984 = vmatpush1.bf16.msra.mxu1 %v5099_v0 }
 0x1c5   :  { %1974 = vmatprep.mubr.bf16.mxu0 %v1838_v60  ;;  %2015 = vmatprep.mubr.bf16.mxu1 %v1838_v60  ;;  %v7174_v60 = vld [vmem:[#allocation79_spill] sm:$0xff] }
 0x1c6   :  { %1944 = vmatprep.subr.bf16.mxu0 %v7155_v28  ;;  %1985 = vmatprep.subr.bf16.mxu1 %v5103_v1 }
 0x1c8   :  { %1945 = vmatpush1.bf16.msra.mxu0 %v7156_v47  ;;  %1986 = vmatpush1.bf16.msra.mxu1 %v5115_v32 }
 0x1c9   :  { %1946 = vmatprep.subr.bf16.mxu0 %v7157_v9  ;;  %1987 = vmatprep.subr.bf16.mxu1 %v5118_v27 }
 0x1cc   :  { %1947 = vmatpush1.bf16.msra.mxu0 %v7158_v21  ;;  %1988 = vmatpush1.bf16.msra.mxu1 %v5130_v20 }
 0x1cd   :  { %1948 = vmatprep.subr.bf16.mxu0 %v7159_v63  ;;  %1989 = vmatprep.subr.bf16.mxu1 %v5133_v35 }
 0x1d0   :  { %1949 = vmatpush1.bf16.msra.mxu0 %v7160_v62  ;;  %1990 = vmatpush1.bf16.msra.mxu1 %v5144_v4 }
 0x1d1   :  { %1950 = vmatprep.subr.bf16.mxu0 %v7161_v8  ;;  %1991 = vmatprep.subr.bf16.mxu1 %v5147_v61 }
 0x1d4   :  { %1951 = vmatpush1.bf16.msra.mxu0 %v7162_v13  ;;  %1992 = vmatpush1.bf16.msra.mxu1 %v5158_v7 }
 0x1d5   :  { %1952 = vmatprep.subr.bf16.mxu0 %v7163_v49  ;;  %1993 = vmatprep.subr.bf16.mxu1 %v5161_v43 }
 0x1d8   :  { %1953 = vmatpush1.bf16.msra.mxu0 %v7164_v52  ;;  %1994 = vmatpush1.bf16.msra.mxu1 %v5172_v53 }
 0x1d9   :  { %1954 = vmatprep.subr.bf16.mxu0 %v7165_v59  ;;  %1995 = vmatprep.subr.bf16.mxu1 %v5175_v12 }
 0x1dc   :  { %1955 = vmatpush1.bf16.msra.mxu0 %v7166_v11  ;;  %1996 = vmatpush1.bf16.msra.mxu1 %v5186_v14 }
 0x1dd   :  { %1956 = vmatprep.subr.bf16.mxu0 %v7167_v55  ;;  %1997 = vmatprep.subr.bf16.mxu1 %v5189_v16 }
 0x1e0   :  { %1957 = vmatpush1.bf16.msra.mxu0 %v7168_v46  ;;  %1998 = vmatpush1.bf16.msra.mxu1 %v5200_v22 }
 0x1e1   :  { %1958 = vmatprep.subr.bf16.mxu0 %v7169_v17  ;;  %1999 = vmatprep.subr.bf16.mxu1 %v5203_v24 }
 0x1e4   :  { %1959 = vmatpush2.bf16.msra.mxu0 %v7170_v40  ;;  %2000 = vmatpush2.bf16.msra.mxu1 %v5214_v31 }
 0x1e5   :  { %1960 = vmatprep.subr.bf16.mxu0 %v7171_v44  ;;  %2001 = vmatprep.subr.bf16.mxu1 %v5217_v33  ;;  %v7177_v33 = vld [vmem:[#allocation85_spill] sm:$0xff] }
 0x1e8   :  { %1961 = vmatpush2.bf16.msra.mxu0 %v7172_v23  ;;  %2002 = vmatpush2.bf16.msra.mxu1 %v5228_v39  ;;  %v7178_v39 = vld [vmem:[#allocation87_spill] sm:$0xff] }
 0x1e9   :  { %1962 = vmatprep.subr.bf16.mxu0 %v7173_v38  ;;  %2003 = vmatprep.subr.bf16.mxu1 %v5231_v41  ;;  %v7179_v41 = vld [vmem:[#allocation89_spill] sm:$0xff] }
 0x1ec   :  { %1963 = vmatpush2.bf16.msra.mxu0 %v7174_v60  ;;  %2004 = vmatpush2.bf16.msra.mxu1 %v5242_v48  ;;  %v7180_v48 = vld [vmem:[#allocation91_spill] sm:$0xff] }
 0x1ed   :  { %1964 = vmatprep.subr.bf16.mxu0 %v7175_v19  ;;  %2005 = vmatprep.subr.bf16.mxu1 %v5245_v50  ;;  %v7181_v50 = vld [vmem:[#allocation93_spill] sm:$0xff] }
 0x1f0   :  { %1965 = vmatpush2.bf16.msra.mxu0 %v7176_v45  ;;  %2006 = vmatpush2.bf16.msra.mxu1 %v5256_v56 }
 0x1f1   :  { %1966 = vmatprep.subr.bf16.mxu0 %v7177_v33  ;;  %2007 = vmatprep.subr.bf16.mxu1 %v5259_v58  ;;  %v7182_v58 = vld [vmem:[#allocation97_spill] sm:$0xff] }
 0x1f4   :  { %1967 = vmatpush2.bf16.msra.mxu0 %v7178_v39  ;;  %2008 = vmatpush2.bf16.msra.mxu1 %v5270_v2  ;;  %v7183_v39 = vld [vmem:[#allocation113_spill] sm:$0xff]  ;;  %v7184_v2 = vld [vmem:[#allocation99_spill] sm:$0xff] }
 0x1f5   :  { %1968 = vmatprep.subr.bf16.mxu0 %v7179_v41  ;;  %2009 = vmatprep.subr.bf16.mxu1 %v5273_v5  ;;  %v7185_v41 = vld [vmem:[#allocation114_spill] sm:$0xff]  ;;  %v7186_v5 = vld [vmem:[#allocation4_spill] sm:$0xff] }
 0x1f8   :  { %1969 = vmatpush2.bf16.msra.mxu0 %v7180_v48  ;;  %2010 = vmatpush2.bf16.msra.mxu1 %v5284_v15  ;;  %v7187_v48 = vld [vmem:[#allocation36_spill] sm:$0xff] }
 0x1f9   :  { %1970 = vmatprep.subr.bf16.mxu0 %v7181_v50  ;;  %2011 = vmatprep.subr.bf16.mxu1 %v5287_v18  ;;  %v7188_v18 = vld [vmem:[#allocation5_spill] sm:$0xff]  ;;  %v7248_v50 = vld [vmem:[#allocation144_spill] sm:$0xff] }
 0x1fc   :  { %1971 = vmatpush2.bf16.msra.mxu0 %v5069_v3  ;;  %2012 = vmatpush2.bf16.msra.mxu1 %v5298_v26  ;;  %v7189_v3 = vld [vmem:[#allocation38_spill] sm:$0xff] }
 0x1fd   :  { %1972 = vmatprep.subr.bf16.mxu0 %v7182_v58  ;;  %2013 = vmatprep.subr.bf16.mxu1 %v7183_v39  ;;  %v7190_v26 = vld [vmem:[#allocation6_spill] sm:$0xff]  ;;  %v7191_v58 = vld [vmem:[#allocation40_spill] sm:$0xff]  ;;  %v7192_v39 = vld [vmem:[#allocation7_spill] sm:$0xff] }
 0x200   :  { %1973 = vmatpush2.bf16.msra.mxu0 %v7184_v2  ;;  %2014 = vmatpush2.bf16.msra.mxu1 %v7185_v41  ;;  %v7193_v41 = vld [vmem:[#allocation8_spill] sm:$0xff]  ;;  %v7247_v2 = vld [vmem:[#allocation115_spill] sm:$0xff] }
 0x201   :  { %2091 = vmatprep.subr.bf16.mxu0 %v7186_v5  ;;  %2132 = vmatprep.subr.bf16.mxu1 %v7187_v48  ;;  %v7194_v5 = vld [vmem:[#allocation44_spill] sm:$0xff]  ;;  %v7195_v48 = vld [vmem:[#allocation9_spill] sm:$0xff] }
 0x203   :  { %1975 = vmatmul.mubr.bf16.vlgmr.msra.gmra.mxu0 %v5607_v6  ;;  %2016 = vmatmul.mubr.bf16.vlgmr.msra.gmra.mxu1 %v5607_v6  ;;  %v7196_v6 = vld [vmem:[#allocation10_spill] sm:$0xff] }
 0x204   :  { %2092 = vmatpush1.bf16.msra.mxu0 %v7188_v18  ;;  %2133 = vmatpush1.bf16.msra.mxu1 %v7189_v3  ;;  %v7197_v3 = vld [vmem:[#allocation11_spill] sm:$0xff] }
 0x205   :  { %2093 = vmatprep.subr.bf16.mxu0 %v7190_v26  ;;  %2134 = vmatprep.subr.bf16.mxu1 %v7191_v58  ;;  %v7198_v26 = vld [vmem:[#allocation50_spill] sm:$0xff]  ;;  %v7199_v58 = vld [vmem:[#allocation12_spill] sm:$0xff]  ;;  %v7246_v18 = vld [vmem:[#allocation143_spill] sm:$0xff] }
 0x208   :  { %2094 = vmatpush1.bf16.msra.mxu0 %v7192_v39  ;;  %2135 = vmatpush1.bf16.msra.mxu1 %v4745_v34  ;;  %v7200_v39 = vld [vmem:[#allocation52_spill] sm:$0xff]  ;;  %v7201_v34 = vld [vmem:[#allocation13_spill] sm:$0xff] }
 0x209   :  { %2095 = vmatprep.subr.bf16.mxu0 %v7193_v41  ;;  %2136 = vmatprep.subr.bf16.mxu1 %v7194_v5  ;;  %v7202_v41 = vld [vmem:[#allocation54_spill] sm:$0xff] }
 0x20a   :  { %v7203_v5 = vld [vmem:[#allocation14_spill] sm:$0xff] }
 0x20c   :  { %2096 = vmatpush1.bf16.msra.mxu0 %v7195_v48  ;;  %2137 = vmatpush1.bf16.msra.mxu1 %v4771_v51  ;;  %v7204_v48 = vld [vmem:[#allocation56_spill] sm:$0xff]  ;;  %v7205_v51 = vld [vmem:[#allocation15_spill] sm:$0xff] }
 0x20d   :  { %2097 = vmatprep.subr.bf16.mxu0 %v7196_v6  ;;  %2138 = vmatprep.subr.bf16.mxu1 %v4777_v54  ;;  %v7206_v6 = vld [vmem:[#allocation58_spill] sm:$0xff]  ;;  %v7207_v54 = vld [vmem:[#allocation16_spill] sm:$0xff] }
 0x210   :  { %2098 = vmatpush1.bf16.msra.mxu0 %v7197_v3  ;;  %2139 = vmatpush1.bf16.msra.mxu1 %v7198_v26  ;;  %v7208_v3 = vld [vmem:[#allocation60_spill] sm:$0xff]  ;;  %v7209_v26 = vld [vmem:[#allocation17_spill] sm:$0xff] }
 0x211   :  { %2099 = vmatprep.subr.bf16.mxu0 %v7199_v58  ;;  %2140 = vmatprep.subr.bf16.mxu1 %v7200_v39  ;;  %v7210_v58 = vld [vmem:[#allocation62_spill] sm:$0xff] }
 0x212   :  { %v7211_v39 = vld [vmem:[#allocation18_spill] sm:$0xff] }
 0x214   :  { %2100 = vmatpush1.bf16.msra.mxu0 %v7201_v34  ;;  %2141 = vmatpush1.bf16.msra.mxu1 %v7202_v41  ;;  %v7212_v34 = vld [vmem:[#allocation64_spill] sm:$0xff]  ;;  %v7213_v41 = vld [vmem:[#allocation19_spill] sm:$0xff] }
 0x215   :  { %2101 = vmatprep.subr.bf16.mxu0 %v7203_v5  ;;  %2142 = vmatprep.subr.bf16.mxu1 %v7204_v48  ;;  %v7214_v5 = vld [vmem:[#allocation66_spill] sm:$0xff]  ;;  %v7215_v48 = vld [vmem:[#allocation20_spill] sm:$0xff] }
 0x218   :  { %2102 = vmatpush1.bf16.msra.mxu0 %v7205_v51  ;;  %2143 = vmatpush1.bf16.msra.mxu1 %v7206_v6  ;;  %v7216_v51 = vld [vmem:[#allocation68_spill] sm:$0xff]  ;;  %v7217_v6 = vld [vmem:[#allocation21_spill] sm:$0xff] }
 0x219   :  { %2103 = vmatprep.subr.bf16.mxu0 %v7207_v54  ;;  %2144 = vmatprep.subr.bf16.mxu1 %v7208_v3  ;;  %v7218_v54 = vld [vmem:[#allocation70_spill] sm:$0xff] }
 0x21a   :  { %v7219_v3 = vld [vmem:[#allocation22_spill] sm:$0xff] }
 0x21c   :  { %2104 = vmatpush1.bf16.msra.mxu0 %v7209_v26  ;;  %2145 = vmatpush1.bf16.msra.mxu1 %v7210_v58  ;;  %v7220_v26 = vld [vmem:[#allocation72_spill] sm:$0xff]  ;;  %v7221_v58 = vld [vmem:[#allocation23_spill] sm:$0xff] }
 0x21d   :  { %2105 = vmatprep.subr.bf16.mxu0 %v7211_v39  ;;  %2146 = vmatprep.subr.bf16.mxu1 %v7212_v34  ;;  %v7222_v39 = vld [vmem:[#allocation74_spill] sm:$0xff]  ;;  %v7223_v34 = vld [vmem:[#allocation24_spill] sm:$0xff] }
 0x220   :  { %2106 = vmatpush1.bf16.msra.mxu0 %v7213_v41  ;;  %2147 = vmatpush1.bf16.msra.mxu1 %v7214_v5  ;;  %v7224_v41 = vld [vmem:[#allocation76_spill] sm:$0xff]  ;;  %v7225_v5 = vld [vmem:[#allocation25_spill] sm:$0xff] }
 0x221   :  { %2107 = vmatprep.subr.bf16.mxu0 %v7215_v48  ;;  %2148 = vmatprep.subr.bf16.mxu1 %v7216_v51  ;;  %v7226_v48 = vld [vmem:[#allocation78_spill] sm:$0xff] }
 0x222   :  { %v7227_v51 = vld [vmem:[#allocation26_spill] sm:$0xff] }
 0x224   :  { %2108 = vmatpush2.bf16.msra.mxu0 %v7217_v6  ;;  %2149 = vmatpush2.bf16.msra.mxu1 %v7218_v54  ;;  %v7228_v6 = vld [vmem:[#allocation80_spill] sm:$0xff]  ;;  %v7229_v54 = vld [vmem:[#allocation27_spill] sm:$0xff] }
 0x225   :  { %2109 = vmatprep.subr.bf16.mxu0 %v7219_v3  ;;  %2150 = vmatprep.subr.bf16.mxu1 %v7220_v26  ;;  %v7230_v3 = vld [vmem:[#allocation82_spill] sm:$0xff]  ;;  %v7231_v26 = vld [vmem:[#allocation28_spill] sm:$0xff] }
 0x228   :  { %2110 = vmatpush2.bf16.msra.mxu0 %v7221_v58  ;;  %2151 = vmatpush2.bf16.msra.mxu1 %v7222_v39  ;;  %v7232_v39 = vld [vmem:[#allocation29_spill] sm:$0xff] }
 0x229   :  { %2111 = vmatprep.subr.bf16.mxu0 %v7223_v34  ;;  %2152 = vmatprep.subr.bf16.mxu1 %v7224_v41  ;;  %v7233_v41 = vld [vmem:[#allocation30_spill] sm:$0xff] }
 0x22c   :  { %2112 = vmatpush2.bf16.msra.mxu0 %v7225_v5  ;;  %2153 = vmatpush2.bf16.msra.mxu1 %v7226_v48  ;;  %v7234_v48 = vld [vmem:[#allocation31_spill] sm:$0xff] }
 0x22d   :  { %2113 = vmatprep.subr.bf16.mxu0 %v7227_v51  ;;  %2154 = vmatprep.subr.bf16.mxu1 %v7228_v6  ;;  %v7235_v51 = vld [vmem:[#allocation90_spill] sm:$0xff]  ;;  %v7236_v6 = vld [vmem:[#allocation32_spill] sm:$0xff] }
 0x230   :  { %2114 = vmatpush2.bf16.msra.mxu0 %v7229_v54  ;;  %2155 = vmatpush2.bf16.msra.mxu1 %v7230_v3  ;;  %v7237_v54 = vld [vmem:[#allocation92_spill] sm:$0xff]  ;;  %v7238_v3 = vld [vmem:[#allocation33_spill] sm:$0xff] }
 0x231   :  { %2115 = vmatprep.subr.bf16.mxu0 %v7231_v26  ;;  %2156 = vmatprep.subr.bf16.mxu1 %v7128_v29  ;;  %v7239_v26 = vld [vmem:[#allocation94_spill] sm:$0xff] }
 0x232   :  { %v7240_v29 = vld [vmem:[#allocation34_spill] sm:$0xff] }
 0x234   :  { %2116 = vmatpush2.bf16.msra.mxu0 %v7232_v39  ;;  %2157 = vmatpush2.bf16.msra.mxu1 %v7131_v57  ;;  %v7241_v39 = vld [vmem:[#allocation96_spill] sm:$0xff]  ;;  %v7242_v57 = vld [vmem:[#allocation35_spill] sm:$0xff] }
 0x235   :  { %2117 = vmatprep.subr.bf16.mxu0 %v7233_v41  ;;  %2158 = vmatprep.subr.bf16.mxu1 %v7132_v10  ;;  %v7243_v41 = vld [vmem:[#allocation98_spill] sm:$0xff]  ;;  %v7244_v10 = vld [vmem:[#allocation37_spill] sm:$0xff] }
 0x238   :  { %2118 = vmatpush2.bf16.msra.mxu0 %v7234_v48  ;;  %2159 = vmatpush2.bf16.msra.mxu1 %v7235_v51  ;;  %v7245_v48 = vld [vmem:[#allocation100_spill] sm:$0xff] }
 0x239   :  { %2119 = vmatprep.subr.bf16.mxu0 %v7236_v6  ;;  %2160 = vmatprep.subr.bf16.mxu1 %v7237_v54 }
 0x23c   :  { %2120 = vmatpush2.bf16.msra.mxu0 %v7238_v3  ;;  %2161 = vmatpush2.bf16.msra.mxu1 %v7239_v26 }
 0x23d   :  { %2121 = vmatprep.subr.bf16.mxu0 %v7240_v29  ;;  %2162 = vmatprep.subr.bf16.mxu1 %v7241_v39 }
 0x240   :  { %2122 = vmatpush2.bf16.msra.mxu0 %v7242_v57  ;;  %2163 = vmatpush2.bf16.msra.mxu1 %v7243_v41  ;;  %v7249_v41 = vld [vmem:[#allocation117_spill] sm:$0xff] }
 0x241   :  { %2173 = vmatprep.subr.bf16.mxu0 %v7244_v10  ;;  %2214 = vmatprep.subr.bf16.mxu1 %v7245_v48 }
 0x283   :  { %v1894_v51 = vpop.f32.mrf.mxu0  ;;  %v1935_v6 = vpop.f32.mrf.mxu1 }
 0x284   :  { %v2026_v29 = vadd.f32 %v1935_v6, %v7246_v18  ;;  %v2024_v39 = vadd.f32 %v1894_v51, %v7247_v2  ;;  %v7251_v51 = vld [vmem:[#allocation118_spill] sm:$0xff] }
 0x285   :  { %v1896_v5 = vpop.f32.mrf.mxu0  ;;  %v1937_v54 = vpop.f32.mrf.mxu1 }
 0x286   :  { %v2027_v57 = vadd.f32 %v1937_v54, %v7248_v50  ;;  %v2040_v15 = vmul.f32 0.5, %v2026_v29  ;;  %v2025_v33 = vadd.f32 %v1896_v5, %v7249_v41  ;;  %v2032_v10 = vmul.f32 0.5, %v2024_v39 }
 0x287   :  { %v1898_v34 = vpop.f32.mrf.mxu0  ;;  %v1939_v3 = vpop.f32.mrf.mxu1 }
 0x288   :  { %v2041_v56 = vmul.f32 0.5, %v2027_v57  ;;  %4066 = vtanh.f32 %v2040_v15  ;;  %v2033_v48 = vmul.f32 0.5, %v2025_v33 }
 0x289   :  { %v1899_v58 = vpop.f32.mrf.mxu0  ;;  %v1940_v26 = vpop.f32.mrf.mxu1  ;;  %4068 = vtanh.f32 %v2032_v10 }
 0x28a   :  { %4070 = vtanh.f32 %v2041_v56  ;;  %v7250_v58 = vld [vmem:[#allocation116_spill] sm:$0xff] }
 0x28b   :  { %4072 = vtanh.f32 %v2033_v48 }
 0x295   :  { %v4067_v29 = vpop.eup %4066 }
 0x296   :  { %v4069_v5 = vpop.eup %4068  ;;  %v2044_v15 = vmul.f32 0.5, %v4067_v29 }
 0x297   :  { %v4071_v56 = vpop.eup %4070  ;;  %v2036_v10 = vmul.f32 0.5, %v4069_v5 }
 0x298   :  { %v4073_v57 = vpop.eup %4072 }
 0x2c3   :  { %v1976_v34 = vpop.f32.mrf.mxu0  ;;  %v2017_v3 = vpop.f32.mrf.mxu1 }
 0x2c4   :  { %v2028_v26 = vadd.f32 %v1976_v34, %v7250_v58  ;;  %v2030_v33 = vadd.f32 %v2017_v3, %v5534_v25  ;;  %v2045_v34 = vmul.f32 0.5, %v4071_v56 }
 0x2c5   :  { %v1978_v45 = vpop.f32.mrf.mxu0  ;;  %v2019_v18 = vpop.f32.mrf.mxu1 }
 0x2c6   :  { %4074 = vtanh.f32 %v2028_v26  ;;  %v2029_v2 = vadd.f32 %v1978_v45, %v7251_v51  ;;  %v2031_v48 = vadd.f32 %v2019_v18, %v5537_v36  ;;  %v2050_v6 = vmul.f32 0.5, %v2030_v33 }
 0x2c7   :  { %v1980_v54 = vpop.f32.mrf.mxu0  ;;  %v2021_v50 = vpop.f32.mrf.mxu1  ;;  %v2046_v26 = vadd.f32 0.5, %v2044_v15  ;;  %v2037_v45 = vmul.f32 0.5, %v4073_v57  ;;  %v2038_v51 = vadd.f32 0.5, %v2036_v10 }
 0x2c8   :  { %4076 = vtanh.f32 %v2029_v2  ;;  %v2051_v58 = vmul.f32 0.5, %v2031_v48  ;;  %v2047_v2 = vadd.f32 0.5, %v2045_v34 }
 0x2c9   :  { %v1981_v39 = vpop.f32.mrf.mxu0  ;;  %v2022_v41 = vpop.f32.mrf.mxu1  ;;  %4078 = vtanh.f32 %v2050_v6  ;;  %v2058_v50 = vmul.f32 %v2046_v26, %v5589_v30  ;;  %v2039_v3 = vadd.f32 0.5, %v2037_v45  ;;  %v7254_v26 = vld [vmem:[#allocation101_spill] sm:$0xff]  ;;  %v7255_v45 = vld [vmem:[#allocation102_spill] sm:$0xff] }
 0x2ca   :  { %4080 = vtanh.f32 %v2051_v58  ;;  %v2059_v18 = vmul.f32 %v2047_v2, %v5591_v42  ;;  %v7258_v2 = vld [vmem:[#allocation105_spill] sm:$0xff] }
 0x2d3   :  { %v4075_v54 = vpop.eup %4074 }
 0x2d4   :  { %v2060_v25 = vmul.f32 %v4075_v54, %v2038_v51  ;;  %v7256_v51 = vld [vmem:[#allocation103_spill] sm:$0xff]  ;;  %v7257_v54 = vld [vmem:[#allocation104_spill] sm:$0xff] }
 0x2d5   :  { %v4077_v39 = vpop.eup %4076 }
 0x2d6   :  { %v5750_v36 = vadd.f32 %v2060_v25, %v2058_v50  ;;  %v2061_v29 = vmul.f32 %v4077_v39, %v2039_v3  ;;  %v4079_v33 = vpop.eup %4078  ;;  %v7259_v50 = vld [vmem:[#allocation83_spill] sm:$0xff]  ;;  %v7260_v25 = vld [vmem:[#allocation106_spill] sm:$0xff]  ;;  %v7261_v3 = vld [vmem:[#allocation85_spill] sm:$0xff] }
 0x2d7   :  { %v4081_v5 = vpop.eup %4080  ;;  %v2054_v48 = vmul.f32 0.5, %v4079_v33  ;;  %v7262_v39 = vld [vmem:[#allocation107_spill] sm:$0xff]  ;;  %v7265_v33 = vld [vmem:[#allocation89_spill] sm:$0xff] }
 0x2d8   :  { %4082 = vtanh.f32 %v5750_v36  ;;  %v5754_v41 = vadd.f32 %v2061_v29, %v2059_v18  ;;  %v2055_v56 = vmul.f32 0.5, %v4081_v5  ;;  %v7263_v18 = vld [vmem:[#allocation87_spill] sm:$0xff]  ;;  %v7264_v29 = vld [vmem:[#allocation108_spill] sm:$0xff]  ;;  %v7266_v5 = vld [vmem:[#allocation109_spill] sm:$0xff] }
 0x2d9   :  { %v2056_v30 = vadd.f32 0.5, %v2054_v48  ;;  %v7267_v48 = vld [vmem:[#allocation91_spill] sm:$0xff] }
 0x2da   :  { %4084 = vtanh.f32 %v5754_v41  ;;  %v2057_v57 = vadd.f32 0.5, %v2055_v56  ;;  %v7268_v56 = vld [vmem:[#allocation110_spill] sm:$0xff] }
 0x2e5   :  { %v4083_v15 = vpop.eup %4082 }
 0x2e6   :  { %v5757_v6 = vmul.f32 %v4083_v15, %v2056_v30  ;;  %v7269_v15 = vld [vmem:[#allocation93_spill] sm:$0xff]  ;;  %v7270_v30 = vld [vmem:[#allocation111_spill] sm:$0xff] }
 0x2e7   :  { %v4085_v10 = vpop.eup %4084 }
 0x2e8   :  { %7252 = vst [vmem:[#allocation39_spill] sm:$0xff] %v5757_v6  ;;  %v5759_v34 = vmul.f32 %v4085_v10, %v2057_v57  ;;  %v5765_v58 = vpack.c.bf16 %v5757_v6, %v5757_v6  ;;  %v7271_v57 = vld [vmem:[#allocation95_spill] sm:$0xff]  ;;  %v7272_v10 = vld [vmem:[#allocation112_spill] sm:$0xff]  ;;  %v7274_v6 = vld [vmem:[#allocation113_spill] sm:$0xff] }
 0x2ea   :  { %7253 = vst [vmem:[#allocation41_spill] sm:$0xff] %v5759_v34  ;;  %v2069_v42 = vpack.c.bf16 %v5759_v34, %v5759_v34  ;;  %v7275_v34 = vld [vmem:[#allocation99_spill] sm:$0xff] }
 0x2ec   :  { %2123 = vmatprep.mubr.bf16.mxu0 %v2069_v42  ;;  %2164 = vmatprep.mubr.bf16.mxu1 %v2069_v42 }
 0x2ed   :  { %2124 = vmatmul.mubr.bf16.vlgmr.msra.gmra.mxu0 %v5765_v58  ;;  %2165 = vmatmul.mubr.bf16.vlgmr.msra.gmra.mxu1 %v5765_v58 }
 0x2ee   :  { %2174 = vmatpush1.bf16.msra.mxu0 %v7154_v37  ;;  %2215 = vmatpush1.bf16.msra.mxu1 %v5099_v0 }
 0x2ef   :  { %2205 = vmatprep.mubr.bf16.mxu0 %v2069_v42  ;;  %2246 = vmatprep.mubr.bf16.mxu1 %v2069_v42  ;;  %v7273_v42 = vld [vmem:[#allocation97_spill] sm:$0xff] }
 0x2f0   :  { %2175 = vmatprep.subr.bf16.mxu0 %v7155_v28  ;;  %2216 = vmatprep.subr.bf16.mxu1 %v5103_v1 }
 0x2f2   :  { %2176 = vmatpush1.bf16.msra.mxu0 %v7156_v47  ;;  %2217 = vmatpush1.bf16.msra.mxu1 %v5115_v32 }
 0x2f3   :  { %2177 = vmatprep.subr.bf16.mxu0 %v7157_v9  ;;  %2218 = vmatprep.subr.bf16.mxu1 %v5118_v27 }
 0x2f6   :  { %2178 = vmatpush1.bf16.msra.mxu0 %v7158_v21  ;;  %2219 = vmatpush1.bf16.msra.mxu1 %v5130_v20 }
 0x2f7   :  { %2179 = vmatprep.subr.bf16.mxu0 %v7159_v63  ;;  %2220 = vmatprep.subr.bf16.mxu1 %v5133_v35 }
 0x2fa   :  { %2180 = vmatpush1.bf16.msra.mxu0 %v7160_v62  ;;  %2221 = vmatpush1.bf16.msra.mxu1 %v5144_v4 }
 0x2fb   :  { %2181 = vmatprep.subr.bf16.mxu0 %v7161_v8  ;;  %2222 = vmatprep.subr.bf16.mxu1 %v5147_v61 }
 0x2fe   :  { %2182 = vmatpush1.bf16.msra.mxu0 %v7162_v13  ;;  %2223 = vmatpush1.bf16.msra.mxu1 %v5158_v7 }
 0x2ff   :  { %2183 = vmatprep.subr.bf16.mxu0 %v7163_v49  ;;  %2224 = vmatprep.subr.bf16.mxu1 %v5161_v43 }
 0x302   :  { %2184 = vmatpush1.bf16.msra.mxu0 %v7164_v52  ;;  %2225 = vmatpush1.bf16.msra.mxu1 %v5172_v53 }
 0x303   :  { %2185 = vmatprep.subr.bf16.mxu0 %v7165_v59  ;;  %2226 = vmatprep.subr.bf16.mxu1 %v5175_v12 }
 0x306   :  { %2186 = vmatpush1.bf16.msra.mxu0 %v7166_v11  ;;  %2227 = vmatpush1.bf16.msra.mxu1 %v5186_v14 }
 0x307   :  { %2187 = vmatprep.subr.bf16.mxu0 %v7167_v55  ;;  %2228 = vmatprep.subr.bf16.mxu1 %v5189_v16 }
 0x30a   :  { %2188 = vmatpush1.bf16.msra.mxu0 %v7168_v46  ;;  %2229 = vmatpush1.bf16.msra.mxu1 %v5200_v22 }
 0x30b   :  { %2189 = vmatprep.subr.bf16.mxu0 %v7169_v17  ;;  %2230 = vmatprep.subr.bf16.mxu1 %v5203_v24 }
 0x30e   :  { %2190 = vmatpush2.bf16.msra.mxu0 %v7170_v40  ;;  %2231 = vmatpush2.bf16.msra.mxu1 %v5214_v31 }
 0x30f   :  { %2191 = vmatprep.subr.bf16.mxu0 %v7171_v44  ;;  %2232 = vmatprep.subr.bf16.mxu1 %v7254_v26 }
 0x312   :  { %2192 = vmatpush2.bf16.msra.mxu0 %v7172_v23  ;;  %2233 = vmatpush2.bf16.msra.mxu1 %v7255_v45 }
 0x313   :  { %2193 = vmatprep.subr.bf16.mxu0 %v7173_v38  ;;  %2234 = vmatprep.subr.bf16.mxu1 %v7256_v51 }
 0x316   :  { %2194 = vmatpush2.bf16.msra.mxu0 %v7174_v60  ;;  %2235 = vmatpush2.bf16.msra.mxu1 %v7257_v54 }
 0x317   :  { %2195 = vmatprep.subr.bf16.mxu0 %v7175_v19  ;;  %2236 = vmatprep.subr.bf16.mxu1 %v7258_v2 }
 0x31a   :  { %2196 = vmatpush2.bf16.msra.mxu0 %v7259_v50  ;;  %2237 = vmatpush2.bf16.msra.mxu1 %v7260_v25  ;;  %v7345_v25 = vld [vmem:[#allocation146_spill] sm:$0xff] }
 0x31b   :  { %2197 = vmatprep.subr.bf16.mxu0 %v7261_v3  ;;  %2238 = vmatprep.subr.bf16.mxu1 %v7262_v39  ;;  %v7343_v39 = vld [vmem:[#allocation145_spill] sm:$0xff]  ;;  %v7344_v3 = vld [vmem:[#allocation119_spill] sm:$0xff] }
 0x31e   :  { %2198 = vmatpush2.bf16.msra.mxu0 %v7263_v18  ;;  %2239 = vmatpush2.bf16.msra.mxu1 %v7264_v29 }
 0x31f   :  { %2199 = vmatprep.subr.bf16.mxu0 %v7265_v33  ;;  %2240 = vmatprep.subr.bf16.mxu1 %v7266_v5  ;;  %v7276_v33 = vld [vmem:[#allocation114_spill] sm:$0xff]  ;;  %v7277_v5 = vld [vmem:[#allocation4_spill] sm:$0xff] }
 0x322   :  { %2200 = vmatpush2.bf16.msra.mxu0 %v7267_v48  ;;  %2241 = vmatpush2.bf16.msra.mxu1 %v7268_v56  ;;  %v7278_v48 = vld [vmem:[#allocation36_spill] sm:$0xff] }
 0x323   :  { %2201 = vmatprep.subr.bf16.mxu0 %v7269_v15  ;;  %2242 = vmatprep.subr.bf16.mxu1 %v7270_v30  ;;  %v7279_v30 = vld [vmem:[#allocation5_spill] sm:$0xff]  ;;  %v7288_v15 = vld [vmem:[#allocation46_spill] sm:$0xff] }
 0x326   :  { %2202 = vmatpush2.bf16.msra.mxu0 %v7271_v57  ;;  %2243 = vmatpush2.bf16.msra.mxu1 %v7272_v10  ;;  %v7280_v57 = vld [vmem:[#allocation38_spill] sm:$0xff] }
 0x327   :  { %2203 = vmatprep.subr.bf16.mxu0 %v7273_v42  ;;  %2244 = vmatprep.subr.bf16.mxu1 %v7274_v6  ;;  %v7281_v10 = vld [vmem:[#allocation6_spill] sm:$0xff]  ;;  %v7282_v42 = vld [vmem:[#allocation40_spill] sm:$0xff]  ;;  %v7283_v6 = vld [vmem:[#allocation7_spill] sm:$0xff] }
 0x32a   :  { %2204 = vmatpush2.bf16.msra.mxu0 %v7275_v34  ;;  %2245 = vmatpush2.bf16.msra.mxu1 %v7276_v33  ;;  %v7284_v34 = vld [vmem:[#allocation42_spill] sm:$0xff]  ;;  %v7285_v33 = vld [vmem:[#allocation8_spill] sm:$0xff] }
 0x32b   :  { %2322 = vmatprep.subr.bf16.mxu0 %v7277_v5  ;;  %2363 = vmatprep.subr.bf16.mxu1 %v7278_v48  ;;  %v7286_v5 = vld [vmem:[#allocation44_spill] sm:$0xff]  ;;  %v7287_v48 = vld [vmem:[#allocation9_spill] sm:$0xff] }
 0x32d   :  { %2206 = vmatmul.mubr.bf16.vlgmr.msra.gmra.mxu0 %v5765_v58  ;;  %2247 = vmatmul.mubr.bf16.vlgmr.msra.gmra.mxu1 %v5765_v58  ;;  %v7289_v58 = vld [vmem:[#allocation10_spill] sm:$0xff] }
 0x32e   :  { %2323 = vmatpush1.bf16.msra.mxu0 %v7279_v30  ;;  %2364 = vmatpush1.bf16.msra.mxu1 %v7280_v57  ;;  %v7290_v30 = vld [vmem:[#allocation48_spill] sm:$0xff]  ;;  %v7291_v57 = vld [vmem:[#allocation11_spill] sm:$0xff] }
 0x32f   :  { %2324 = vmatprep.subr.bf16.mxu0 %v7281_v10  ;;  %2365 = vmatprep.subr.bf16.mxu1 %v7282_v42  ;;  %v7292_v10 = vld [vmem:[#allocation50_spill] sm:$0xff]  ;;  %v7293_v42 = vld [vmem:[#allocation12_spill] sm:$0xff] }
 0x332   :  { %2325 = vmatpush1.bf16.msra.mxu0 %v7283_v6  ;;  %2366 = vmatpush1.bf16.msra.mxu1 %v7284_v34  ;;  %v7294_v6 = vld [vmem:[#allocation52_spill] sm:$0xff]  ;;  %v7295_v34 = vld [vmem:[#allocation13_spill] sm:$0xff] }
 0x333   :  { %2326 = vmatprep.subr.bf16.mxu0 %v7285_v33  ;;  %2367 = vmatprep.subr.bf16.mxu1 %v7286_v5  ;;  %v7296_v33 = vld [vmem:[#allocation54_spill] sm:$0xff] }
 0x334   :  { %v7297_v5 = vld [vmem:[#allocation14_spill] sm:$0xff] }
 0x336   :  { %2327 = vmatpush1.bf16.msra.mxu0 %v7287_v48  ;;  %2368 = vmatpush1.bf16.msra.mxu1 %v7288_v15  ;;  %v7298_v48 = vld [vmem:[#allocation56_spill] sm:$0xff]  ;;  %v7299_v15 = vld [vmem:[#allocation15_spill] sm:$0xff] }
 0x337   :  { %2328 = vmatprep.subr.bf16.mxu0 %v7289_v58  ;;  %2369 = vmatprep.subr.bf16.mxu1 %v7290_v30  ;;  %v7300_v58 = vld [vmem:[#allocation58_spill] sm:$0xff]  ;;  %v7301_v30 = vld [vmem:[#allocation16_spill] sm:$0xff] }
 0x33a   :  { %2329 = vmatpush1.bf16.msra.mxu0 %v7291_v57  ;;  %2370 = vmatpush1.bf16.msra.mxu1 %v7292_v10  ;;  %v7302_v57 = vld [vmem:[#allocation60_spill] sm:$0xff]  ;;  %v7303_v10 = vld [vmem:[#allocation17_spill] sm:$0xff] }
 0x33b   :  { %2330 = vmatprep.subr.bf16.mxu0 %v7293_v42  ;;  %2371 = vmatprep.subr.bf16.mxu1 %v7294_v6  ;;  %v7304_v42 = vld [vmem:[#allocation62_spill] sm:$0xff] }
 0x33c   :  { %v7305_v6 = vld [vmem:[#allocation18_spill] sm:$0xff] }
 0x33e   :  { %2331 = vmatpush1.bf16.msra.mxu0 %v7295_v34  ;;  %2372 = vmatpush1.bf16.msra.mxu1 %v7296_v33  ;;  %v7306_v34 = vld [vmem:[#allocation64_spill] sm:$0xff]  ;;  %v7307_v33 = vld [vmem:[#allocation19_spill] sm:$0xff] }
 0x33f   :  { %2332 = vmatprep.subr.bf16.mxu0 %v7297_v5  ;;  %2373 = vmatprep.subr.bf16.mxu1 %v7298_v48  ;;  %v7308_v5 = vld [vmem:[#allocation66_spill] sm:$0xff]  ;;  %v7309_v48 = vld [vmem:[#allocation20_spill] sm:$0xff] }
 0x342   :  { %2333 = vmatpush1.bf16.msra.mxu0 %v7299_v15  ;;  %2374 = vmatpush1.bf16.msra.mxu1 %v7300_v58  ;;  %v7310_v15 = vld [vmem:[#allocation68_spill] sm:$0xff]  ;;  %v7311_v58 = vld [vmem:[#allocation21_spill] sm:$0xff] }
 0x343   :  { %2334 = vmatprep.subr.bf16.mxu0 %v7301_v30  ;;  %2375 = vmatprep.subr.bf16.mxu1 %v7302_v57  ;;  %v7312_v30 = vld [vmem:[#allocation70_spill] sm:$0xff] }
 0x344   :  { %v7313_v57 = vld [vmem:[#allocation22_spill] sm:$0xff] }
 0x346   :  { %2335 = vmatpush1.bf16.msra.mxu0 %v7303_v10  ;;  %2376 = vmatpush1.bf16.msra.mxu1 %v7304_v42  ;;  %v7314_v10 = vld [vmem:[#allocation72_spill] sm:$0xff]  ;;  %v7315_v42 = vld [vmem:[#allocation23_spill] sm:$0xff] }
 0x347   :  { %2336 = vmatprep.subr.bf16.mxu0 %v7305_v6  ;;  %2377 = vmatprep.subr.bf16.mxu1 %v7306_v34  ;;  %v7316_v6 = vld [vmem:[#allocation74_spill] sm:$0xff]  ;;  %v7317_v34 = vld [vmem:[#allocation24_spill] sm:$0xff] }
 0x34a   :  { %2337 = vmatpush1.bf16.msra.mxu0 %v7307_v33  ;;  %2378 = vmatpush1.bf16.msra.mxu1 %v7308_v5  ;;  %v7318_v33 = vld [vmem:[#allocation76_spill] sm:$0xff]  ;;  %v7319_v5 = vld [vmem:[#allocation25_spill] sm:$0xff] }
 0x34b   :  { %2338 = vmatprep.subr.bf16.mxu0 %v7309_v48  ;;  %2379 = vmatprep.subr.bf16.mxu1 %v7310_v15  ;;  %v7320_v48 = vld [vmem:[#allocation78_spill] sm:$0xff] }
 0x34c   :  { %v7321_v15 = vld [vmem:[#allocation26_spill] sm:$0xff] }
 0x34e   :  { %2339 = vmatpush2.bf16.msra.mxu0 %v7311_v58  ;;  %2380 = vmatpush2.bf16.msra.mxu1 %v7312_v30  ;;  %v7322_v58 = vld [vmem:[#allocation80_spill] sm:$0xff]  ;;  %v7323_v30 = vld [vmem:[#allocation27_spill] sm:$0xff] }
 0x34f   :  { %2340 = vmatprep.subr.bf16.mxu0 %v7313_v57  ;;  %2381 = vmatprep.subr.bf16.mxu1 %v7314_v10  ;;  %v7324_v57 = vld [vmem:[#allocation82_spill] sm:$0xff]  ;;  %v7325_v10 = vld [vmem:[#allocation28_spill] sm:$0xff] }
 0x352   :  { %2341 = vmatpush2.bf16.msra.mxu0 %v7315_v42  ;;  %2382 = vmatpush2.bf16.msra.mxu1 %v7316_v6  ;;  %v7326_v42 = vld [vmem:[#allocation84_spill] sm:$0xff]  ;;  %v7327_v6 = vld [vmem:[#allocation29_spill] sm:$0xff] }
 0x353   :  { %2342 = vmatprep.subr.bf16.mxu0 %v7317_v34  ;;  %2383 = vmatprep.subr.bf16.mxu1 %v7318_v33  ;;  %v7328_v34 = vld [vmem:[#allocation86_spill] sm:$0xff] }
 0x354   :  { %v7329_v33 = vld [vmem:[#allocation30_spill] sm:$0xff] }
 0x356   :  { %2343 = vmatpush2.bf16.msra.mxu0 %v7319_v5  ;;  %2384 = vmatpush2.bf16.msra.mxu1 %v7320_v48  ;;  %v7330_v5 = vld [vmem:[#allocation88_spill] sm:$0xff]  ;;  %v7331_v48 = vld [vmem:[#allocation31_spill] sm:$0xff] }
 0x357   :  { %2344 = vmatprep.subr.bf16.mxu0 %v7321_v15  ;;  %2385 = vmatprep.subr.bf16.mxu1 %v7322_v58  ;;  %v7332_v15 = vld [vmem:[#allocation90_spill] sm:$0xff]  ;;  %v7333_v58 = vld [vmem:[#allocation32_spill] sm:$0xff] }
 0x35a   :  { %2345 = vmatpush2.bf16.msra.mxu0 %v7323_v30  ;;  %2386 = vmatpush2.bf16.msra.mxu1 %v7324_v57  ;;  %v7334_v30 = vld [vmem:[#allocation92_spill] sm:$0xff]  ;;  %v7335_v57 = vld [vmem:[#allocation33_spill] sm:$0xff] }
 0x35b   :  { %2346 = vmatprep.subr.bf16.mxu0 %v7325_v10  ;;  %2387 = vmatprep.subr.bf16.mxu1 %v7326_v42  ;;  %v7336_v10 = vld [vmem:[#allocation94_spill] sm:$0xff] }
 0x35c   :  { %v7337_v42 = vld [vmem:[#allocation34_spill] sm:$0xff] }
 0x35e   :  { %2347 = vmatpush2.bf16.msra.mxu0 %v7327_v6  ;;  %2388 = vmatpush2.bf16.msra.mxu1 %v7328_v34  ;;  %v7338_v6 = vld [vmem:[#allocation96_spill] sm:$0xff]  ;;  %v7339_v34 = vld [vmem:[#allocation35_spill] sm:$0xff] }
 0x35f   :  { %2348 = vmatprep.subr.bf16.mxu0 %v7329_v33  ;;  %2389 = vmatprep.subr.bf16.mxu1 %v7330_v5  ;;  %v7340_v33 = vld [vmem:[#allocation98_spill] sm:$0xff]  ;;  %v7341_v5 = vld [vmem:[#allocation37_spill] sm:$0xff] }
 0x362   :  { %2349 = vmatpush2.bf16.msra.mxu0 %v7331_v48  ;;  %2390 = vmatpush2.bf16.msra.mxu1 %v7332_v15  ;;  %v7342_v48 = vld [vmem:[#allocation100_spill] sm:$0xff] }
 0x363   :  { %2350 = vmatprep.subr.bf16.mxu0 %v7333_v58  ;;  %2391 = vmatprep.subr.bf16.mxu1 %v7334_v30 }
 0x366   :  { %2351 = vmatpush2.bf16.msra.mxu0 %v7335_v57  ;;  %2392 = vmatpush2.bf16.msra.mxu1 %v7336_v10 }
 0x367   :  { %2352 = vmatprep.subr.bf16.mxu0 %v7337_v42  ;;  %2393 = vmatprep.subr.bf16.mxu1 %v7338_v6 }
 0x36a   :  { %2353 = vmatpush2.bf16.msra.mxu0 %v7339_v34  ;;  %2394 = vmatpush2.bf16.msra.mxu1 %v7340_v33  ;;  %v7346_v33 = vld [vmem:[#allocation120_spill] sm:$0xff] }
 0x36b   :  { %2404 = vmatprep.subr.bf16.mxu0 %v7341_v5  ;;  %2445 = vmatprep.subr.bf16.mxu1 %v7342_v48 }
 0x3ad   :  { %v2125_v15 = vpop.f32.mrf.mxu0  ;;  %v2166_v58 = vpop.f32.mrf.mxu1 }
 0x3ae   :  { %v2257_v42 = vadd.f32 %v2166_v58, %v7343_v39  ;;  %v2255_v6 = vadd.f32 %v2125_v15, %v7344_v3  ;;  %v7348_v3 = vld [vmem:[#allocation123_spill] sm:$0xff] }
 0x3af   :  { %v2127_v56 = vpop.f32.mrf.mxu0  ;;  %v2168_v30 = vpop.f32.mrf.mxu1 }
 0x3b0   :  { %v2258_v34 = vadd.f32 %v2168_v30, %v7345_v25  ;;  %v2271_v50 = vmul.f32 0.5, %v2257_v42  ;;  %v2256_v2 = vadd.f32 %v2127_v56, %v7346_v33  ;;  %v2263_v5 = vmul.f32 0.5, %v2255_v6 }
 0x3b1   :  { %v2129_v29 = vpop.f32.mrf.mxu0  ;;  %v2170_v57 = vpop.f32.mrf.mxu1 }
 0x3b2   :  { %v2272_v19 = vmul.f32 0.5, %v2258_v34  ;;  %4086 = vtanh.f32 %v2271_v50  ;;  %v2264_v48 = vmul.f32 0.5, %v2256_v2  ;;  %v7349_v50 = vld [vmem:[#allocation157_spill] sm:$0xff] }
 0x3b3   :  { %v2130_v18 = vpop.f32.mrf.mxu0  ;;  %v2171_v10 = vpop.f32.mrf.mxu1  ;;  %4088 = vtanh.f32 %v2263_v5 }
 0x3b4   :  { %4090 = vtanh.f32 %v2272_v19  ;;  %v7347_v18 = vld [vmem:[#allocation121_spill] sm:$0xff]  ;;  %v7350_v19 = vld [vmem:[#allocation158_spill] sm:$0xff] }
 0x3b5   :  { %4092 = vtanh.f32 %v2264_v48 }
 0x3bf   :  { %v4087_v42 = vpop.eup %4086 }
 0x3c0   :  { %v4089_v33 = vpop.eup %4088  ;;  %v2275_v56 = vmul.f32 0.5, %v4087_v42 }
 0x3c1   :  { %v4091_v48 = vpop.eup %4090 }
 0x3c2   :  { %v4093_v58 = vpop.eup %4092  ;;  %v2276_v60 = vmul.f32 0.5, %v4091_v48  ;;  %v2277_v51 = vadd.f32 0.5, %v2275_v56 }
 0x3ed   :  { %v2207_v29 = vpop.f32.mrf.mxu0  ;;  %v2248_v57 = vpop.f32.mrf.mxu1 }
 0x3ee   :  { %v2259_v10 = vadd.f32 %v2207_v29, %v7347_v18  ;;  %v2261_v2 = vadd.f32 %v2248_v57, %v7349_v50  ;;  %v2267_v29 = vmul.f32 0.5, %v4089_v33 }
 0x3ef   :  { %v2209_v54 = vpop.f32.mrf.mxu0  ;;  %v2250_v39 = vpop.f32.mrf.mxu1 }
 0x3f0   :  { %4094 = vtanh.f32 %v2259_v10  ;;  %v2260_v15 = vadd.f32 %v2209_v54, %v7348_v3  ;;  %v2262_v5 = vadd.f32 %v2250_v39, %v7350_v19  ;;  %v2281_v18 = vmul.f32 0.5, %v2261_v2 }
 0x3f1   :  { %v2211_v25 = vpop.f32.mrf.mxu0  ;;  %v2252_v30 = vpop.f32.mrf.mxu1  ;;  %v2268_v54 = vmul.f32 0.5, %v4093_v58  ;;  %v2269_v3 = vadd.f32 0.5, %v2267_v29 }
 0x3f2   :  { %4096 = vtanh.f32 %v2260_v15  ;;  %v2282_v10 = vmul.f32 0.5, %v2262_v5  ;;  %v2278_v15 = vadd.f32 0.5, %v2276_v60  ;;  %v2289_v30 = vmul.f32 %v2277_v51, %v5750_v36 }
 0x3f3   :  { %v2212_v6 = vpop.f32.mrf.mxu0  ;;  %v2253_v34 = vpop.f32.mrf.mxu1  ;;  %4098 = vtanh.f32 %v2281_v18 }
 0x3f4   :  { %4100 = vtanh.f32 %v2282_v10  ;;  %v2270_v6 = vadd.f32 0.5, %v2268_v54  ;;  %v2290_v42 = vmul.f32 %v2278_v15, %v5754_v41  ;;  %v7353_v10 = vld [vmem:[#allocation103_spill] sm:$0xff]  ;;  %v7357_v15 = vld [vmem:[#allocation105_spill] sm:$0xff] }
 0x3f5   :  { %v7354_v54 = vld [vmem:[#allocation79_spill] sm:$0xff] }
 0x3fd   :  { %v4095_v25 = vpop.eup %4094 }
 0x3fe   :  { %v2291_v57 = vmul.f32 %v4095_v25, %v2269_v3  ;;  %v7355_v3 = vld [vmem:[#allocation104_spill] sm:$0xff]  ;;  %v7356_v25 = vld [vmem:[#allocation81_spill] sm:$0xff] }
 0x3ff   :  { %v4097_v34 = vpop.eup %4096 }
 0x400   :  { %v5908_v39 = vadd.f32 %v2291_v57, %v2289_v30  ;;  %v2292_v50 = vmul.f32 %v4097_v34, %v2270_v6  ;;  %v4099_v33 = vpop.eup %4098  ;;  %v7358_v30 = vld [vmem:[#allocation83_spill] sm:$0xff]  ;;  %v7359_v57 = vld [vmem:[#allocation106_spill] sm:$0xff]  ;;  %v7360_v6 = vld [vmem:[#allocation85_spill] sm:$0xff] }
 0x401   :  { %v4101_v19 = vpop.eup %4100  ;;  %v2285_v60 = vmul.f32 0.5, %v4099_v33  ;;  %v7361_v34 = vld [vmem:[#allocation107_spill] sm:$0xff]  ;;  %v7364_v33 = vld [vmem:[#allocation89_spill] sm:$0xff] }
 0x402   :  { %4102 = vtanh.f32 %v5908_v39  ;;  %v5912_v2 = vadd.f32 %v2292_v50, %v2290_v42  ;;  %v2286_v5 = vmul.f32 0.5, %v4101_v19  ;;  %v7362_v42 = vld [vmem:[#allocation87_spill] sm:$0xff]  ;;  %v7363_v50 = vld [vmem:[#allocation108_spill] sm:$0xff]  ;;  %v7365_v19 = vld [vmem:[#allocation109_spill] sm:$0xff] }
 0x403   :  { %v2287_v36 = vadd.f32 0.5, %v2285_v60  ;;  %v7366_v60 = vld [vmem:[#allocation91_spill] sm:$0xff] }
 0x404   :  { %4104 = vtanh.f32 %v5912_v2  ;;  %v2288_v51 = vadd.f32 0.5, %v2286_v5  ;;  %v7367_v5 = vld [vmem:[#allocation110_spill] sm:$0xff] }
 0x40f   :  { %v4103_v48 = vpop.eup %4102 }
 0x410   :  { %v5915_v58 = vmul.f32 %v4103_v48, %v2287_v36  ;;  %v7368_v48 = vld [vmem:[#allocation93_spill] sm:$0xff]  ;;  %v7369_v36 = vld [vmem:[#allocation111_spill] sm:$0xff] }
 0x411   :  { %v4105_v56 = vpop.eup %4104 }
 0x412   :  { %7351 = vst [vmem:[#allocation43_spill] sm:$0xff] %v5915_v58  ;;  %v5917_v29 = vmul.f32 %v4105_v56, %v2288_v51  ;;  %v5923_v18 = vpack.c.bf16 %v5915_v58, %v5915_v58  ;;  %v7370_v51 = vld [vmem:[#allocation95_spill] sm:$0xff]  ;;  %v7371_v56 = vld [vmem:[#allocation112_spill] sm:$0xff]  ;;  %v7373_v58 = vld [vmem:[#allocation113_spill] sm:$0xff] }
 0x414   :  { %7352 = vst [vmem:[#allocation45_spill] sm:$0xff] %v5917_v29  ;;  %v2300_v41 = vpack.c.bf16 %v5917_v29, %v5917_v29  ;;  %v7374_v29 = vld [vmem:[#allocation99_spill] sm:$0xff] }
 0x416   :  { %2354 = vmatprep.mubr.bf16.mxu0 %v2300_v41  ;;  %2395 = vmatprep.mubr.bf16.mxu1 %v2300_v41 }
 0x417   :  { %2355 = vmatmul.mubr.bf16.vlgmr.msra.gmra.mxu0 %v5923_v18  ;;  %2396 = vmatmul.mubr.bf16.vlgmr.msra.gmra.mxu1 %v5923_v18 }
 0x418   :  { %2405 = vmatpush1.bf16.msra.mxu0 %v7154_v37  ;;  %2446 = vmatpush1.bf16.msra.mxu1 %v5099_v0 }
 0x419   :  { %2436 = vmatprep.mubr.bf16.mxu0 %v2300_v41  ;;  %2477 = vmatprep.mubr.bf16.mxu1 %v2300_v41  ;;  %v7372_v41 = vld [vmem:[#allocation97_spill] sm:$0xff] }
 0x41a   :  { %2406 = vmatprep.subr.bf16.mxu0 %v7155_v28  ;;  %2447 = vmatprep.subr.bf16.mxu1 %v5103_v1 }
 0x41c   :  { %2407 = vmatpush1.bf16.msra.mxu0 %v7156_v47  ;;  %2448 = vmatpush1.bf16.msra.mxu1 %v5115_v32 }
 0x41d   :  { %2408 = vmatprep.subr.bf16.mxu0 %v7157_v9  ;;  %2449 = vmatprep.subr.bf16.mxu1 %v5118_v27 }
 0x420   :  { %2409 = vmatpush1.bf16.msra.mxu0 %v7158_v21  ;;  %2450 = vmatpush1.bf16.msra.mxu1 %v5130_v20 }
 0x421   :  { %2410 = vmatprep.subr.bf16.mxu0 %v7159_v63  ;;  %2451 = vmatprep.subr.bf16.mxu1 %v5133_v35 }
 0x424   :  { %2411 = vmatpush1.bf16.msra.mxu0 %v7160_v62  ;;  %2452 = vmatpush1.bf16.msra.mxu1 %v5144_v4 }
 0x425   :  { %2412 = vmatprep.subr.bf16.mxu0 %v7161_v8  ;;  %2453 = vmatprep.subr.bf16.mxu1 %v5147_v61 }
 0x428   :  { %2413 = vmatpush1.bf16.msra.mxu0 %v7162_v13  ;;  %2454 = vmatpush1.bf16.msra.mxu1 %v5158_v7 }
 0x429   :  { %2414 = vmatprep.subr.bf16.mxu0 %v7163_v49  ;;  %2455 = vmatprep.subr.bf16.mxu1 %v5161_v43 }
 0x42c   :  { %2415 = vmatpush1.bf16.msra.mxu0 %v7164_v52  ;;  %2456 = vmatpush1.bf16.msra.mxu1 %v5172_v53 }
 0x42d   :  { %2416 = vmatprep.subr.bf16.mxu0 %v7165_v59  ;;  %2457 = vmatprep.subr.bf16.mxu1 %v5175_v12 }
 0x430   :  { %2417 = vmatpush1.bf16.msra.mxu0 %v7166_v11  ;;  %2458 = vmatpush1.bf16.msra.mxu1 %v5186_v14 }
 0x431   :  { %2418 = vmatprep.subr.bf16.mxu0 %v7167_v55  ;;  %2459 = vmatprep.subr.bf16.mxu1 %v5189_v16 }
 0x434   :  { %2419 = vmatpush1.bf16.msra.mxu0 %v7168_v46  ;;  %2460 = vmatpush1.bf16.msra.mxu1 %v5200_v22 }
 0x435   :  { %2420 = vmatprep.subr.bf16.mxu0 %v7169_v17  ;;  %2461 = vmatprep.subr.bf16.mxu1 %v5203_v24 }
 0x438   :  { %2421 = vmatpush2.bf16.msra.mxu0 %v7170_v40  ;;  %2462 = vmatpush2.bf16.msra.mxu1 %v5214_v31 }
 0x439   :  { %2422 = vmatprep.subr.bf16.mxu0 %v7171_v44  ;;  %2463 = vmatprep.subr.bf16.mxu1 %v7254_v26 }
 0x43c   :  { %2423 = vmatpush2.bf16.msra.mxu0 %v7172_v23  ;;  %2464 = vmatpush2.bf16.msra.mxu1 %v7255_v45 }
 0x43d   :  { %2424 = vmatprep.subr.bf16.mxu0 %v7173_v38  ;;  %2465 = vmatprep.subr.bf16.mxu1 %v7353_v10 }
 0x440   :  { %2425 = vmatpush2.bf16.msra.mxu0 %v7354_v54  ;;  %2466 = vmatpush2.bf16.msra.mxu1 %v7355_v3 }
 0x441   :  { %2426 = vmatprep.subr.bf16.mxu0 %v7356_v25  ;;  %2467 = vmatprep.subr.bf16.mxu1 %v7357_v15 }
 0x444   :  { %2427 = vmatpush2.bf16.msra.mxu0 %v7358_v30  ;;  %2468 = vmatpush2.bf16.msra.mxu1 %v7359_v57  ;;  %v7444_v57 = vld [vmem:[#allocation148_spill] sm:$0xff] }
 0x445   :  { %2428 = vmatprep.subr.bf16.mxu0 %v7360_v6  ;;  %2469 = vmatprep.subr.bf16.mxu1 %v7361_v34  ;;  %v7442_v34 = vld [vmem:[#allocation147_spill] sm:$0xff]  ;;  %v7443_v6 = vld [vmem:[#allocation122_spill] sm:$0xff] }
 0x448   :  { %2429 = vmatpush2.bf16.msra.mxu0 %v7362_v42  ;;  %2470 = vmatpush2.bf16.msra.mxu1 %v7363_v50 }
 0x449   :  { %2430 = vmatprep.subr.bf16.mxu0 %v7364_v33  ;;  %2471 = vmatprep.subr.bf16.mxu1 %v7365_v19  ;;  %v7375_v33 = vld [vmem:[#allocation114_spill] sm:$0xff]  ;;  %v7376_v19 = vld [vmem:[#allocation4_spill] sm:$0xff] }
 0x44c   :  { %2431 = vmatpush2.bf16.msra.mxu0 %v7366_v60  ;;  %2472 = vmatpush2.bf16.msra.mxu1 %v7367_v5  ;;  %v7377_v60 = vld [vmem:[#allocation36_spill] sm:$0xff] }
 0x44d   :  { %2432 = vmatprep.subr.bf16.mxu0 %v7368_v48  ;;  %2473 = vmatprep.subr.bf16.mxu1 %v7369_v36  ;;  %v7378_v36 = vld [vmem:[#allocation5_spill] sm:$0xff]  ;;  %v7387_v48 = vld [vmem:[#allocation46_spill] sm:$0xff] }
 0x450   :  { %2433 = vmatpush2.bf16.msra.mxu0 %v7370_v51  ;;  %2474 = vmatpush2.bf16.msra.mxu1 %v7371_v56  ;;  %v7379_v51 = vld [vmem:[#allocation38_spill] sm:$0xff] }
 0x451   :  { %2434 = vmatprep.subr.bf16.mxu0 %v7372_v41  ;;  %2475 = vmatprep.subr.bf16.mxu1 %v7373_v58  ;;  %v7380_v56 = vld [vmem:[#allocation6_spill] sm:$0xff]  ;;  %v7381_v41 = vld [vmem:[#allocation40_spill] sm:$0xff]  ;;  %v7382_v58 = vld [vmem:[#allocation7_spill] sm:$0xff] }
 0x454   :  { %2435 = vmatpush2.bf16.msra.mxu0 %v7374_v29  ;;  %2476 = vmatpush2.bf16.msra.mxu1 %v7375_v33  ;;  %v7383_v29 = vld [vmem:[#allocation42_spill] sm:$0xff]  ;;  %v7384_v33 = vld [vmem:[#allocation8_spill] sm:$0xff] }
 0x455   :  { %2553 = vmatprep.subr.bf16.mxu0 %v7376_v19  ;;  %2594 = vmatprep.subr.bf16.mxu1 %v7377_v60  ;;  %v7385_v19 = vld [vmem:[#allocation44_spill] sm:$0xff]  ;;  %v7386_v60 = vld [vmem:[#allocation9_spill] sm:$0xff] }
 0x457   :  { %2437 = vmatmul.mubr.bf16.vlgmr.msra.gmra.mxu0 %v5923_v18  ;;  %2478 = vmatmul.mubr.bf16.vlgmr.msra.gmra.mxu1 %v5923_v18  ;;  %v7388_v18 = vld [vmem:[#allocation10_spill] sm:$0xff] }
 0x458   :  { %2554 = vmatpush1.bf16.msra.mxu0 %v7378_v36  ;;  %2595 = vmatpush1.bf16.msra.mxu1 %v7379_v51  ;;  %v7389_v36 = vld [vmem:[#allocation48_spill] sm:$0xff]  ;;  %v7390_v51 = vld [vmem:[#allocation11_spill] sm:$0xff] }
 0x459   :  { %2555 = vmatprep.subr.bf16.mxu0 %v7380_v56  ;;  %2596 = vmatprep.subr.bf16.mxu1 %v7381_v41  ;;  %v7391_v56 = vld [vmem:[#allocation50_spill] sm:$0xff]  ;;  %v7392_v41 = vld [vmem:[#allocation12_spill] sm:$0xff] }
 0x45c   :  { %2556 = vmatpush1.bf16.msra.mxu0 %v7382_v58  ;;  %2597 = vmatpush1.bf16.msra.mxu1 %v7383_v29  ;;  %v7393_v58 = vld [vmem:[#allocation52_spill] sm:$0xff]  ;;  %v7394_v29 = vld [vmem:[#allocation13_spill] sm:$0xff] }
 0x45d   :  { %2557 = vmatprep.subr.bf16.mxu0 %v7384_v33  ;;  %2598 = vmatprep.subr.bf16.mxu1 %v7385_v19  ;;  %v7395_v33 = vld [vmem:[#allocation54_spill] sm:$0xff] }
 0x45e   :  { %v7396_v19 = vld [vmem:[#allocation14_spill] sm:$0xff] }
 0x460   :  { %2558 = vmatpush1.bf16.msra.mxu0 %v7386_v60  ;;  %2599 = vmatpush1.bf16.msra.mxu1 %v7387_v48  ;;  %v7397_v60 = vld [vmem:[#allocation56_spill] sm:$0xff]  ;;  %v7398_v48 = vld [vmem:[#allocation15_spill] sm:$0xff] }
 0x461   :  { %2559 = vmatprep.subr.bf16.mxu0 %v7388_v18  ;;  %2600 = vmatprep.subr.bf16.mxu1 %v7389_v36  ;;  %v7399_v18 = vld [vmem:[#allocation58_spill] sm:$0xff]  ;;  %v7400_v36 = vld [vmem:[#allocation16_spill] sm:$0xff] }
 0x464   :  { %2560 = vmatpush1.bf16.msra.mxu0 %v7390_v51  ;;  %2601 = vmatpush1.bf16.msra.mxu1 %v7391_v56  ;;  %v7401_v51 = vld [vmem:[#allocation60_spill] sm:$0xff]  ;;  %v7402_v56 = vld [vmem:[#allocation17_spill] sm:$0xff] }
 0x465   :  { %2561 = vmatprep.subr.bf16.mxu0 %v7392_v41  ;;  %2602 = vmatprep.subr.bf16.mxu1 %v7393_v58  ;;  %v7403_v41 = vld [vmem:[#allocation62_spill] sm:$0xff] }
 0x466   :  { %v7404_v58 = vld [vmem:[#allocation18_spill] sm:$0xff] }
 0x468   :  { %2562 = vmatpush1.bf16.msra.mxu0 %v7394_v29  ;;  %2603 = vmatpush1.bf16.msra.mxu1 %v7395_v33  ;;  %v7405_v29 = vld [vmem:[#allocation64_spill] sm:$0xff]  ;;  %v7406_v33 = vld [vmem:[#allocation19_spill] sm:$0xff] }
 0x469   :  { %2563 = vmatprep.subr.bf16.mxu0 %v7396_v19  ;;  %2604 = vmatprep.subr.bf16.mxu1 %v7397_v60  ;;  %v7407_v19 = vld [vmem:[#allocation66_spill] sm:$0xff]  ;;  %v7408_v60 = vld [vmem:[#allocation20_spill] sm:$0xff] }
 0x46c   :  { %2564 = vmatpush1.bf16.msra.mxu0 %v7398_v48  ;;  %2605 = vmatpush1.bf16.msra.mxu1 %v7399_v18  ;;  %v7409_v48 = vld [vmem:[#allocation68_spill] sm:$0xff]  ;;  %v7410_v18 = vld [vmem:[#allocation21_spill] sm:$0xff] }
 0x46d   :  { %2565 = vmatprep.subr.bf16.mxu0 %v7400_v36  ;;  %2606 = vmatprep.subr.bf16.mxu1 %v7401_v51  ;;  %v7411_v36 = vld [vmem:[#allocation70_spill] sm:$0xff] }
 0x46e   :  { %v7412_v51 = vld [vmem:[#allocation22_spill] sm:$0xff] }
 0x470   :  { %2566 = vmatpush1.bf16.msra.mxu0 %v7402_v56  ;;  %2607 = vmatpush1.bf16.msra.mxu1 %v7403_v41  ;;  %v7413_v56 = vld [vmem:[#allocation72_spill] sm:$0xff]  ;;  %v7414_v41 = vld [vmem:[#allocation23_spill] sm:$0xff] }
 0x471   :  { %2567 = vmatprep.subr.bf16.mxu0 %v7404_v58  ;;  %2608 = vmatprep.subr.bf16.mxu1 %v7405_v29  ;;  %v7415_v58 = vld [vmem:[#allocation74_spill] sm:$0xff]  ;;  %v7416_v29 = vld [vmem:[#allocation24_spill] sm:$0xff] }
 0x474   :  { %2568 = vmatpush1.bf16.msra.mxu0 %v7406_v33  ;;  %2609 = vmatpush1.bf16.msra.mxu1 %v7407_v19  ;;  %v7417_v33 = vld [vmem:[#allocation76_spill] sm:$0xff]  ;;  %v7418_v19 = vld [vmem:[#allocation25_spill] sm:$0xff] }
 0x475   :  { %2569 = vmatprep.subr.bf16.mxu0 %v7408_v60  ;;  %2610 = vmatprep.subr.bf16.mxu1 %v7409_v48  ;;  %v7419_v60 = vld [vmem:[#allocation78_spill] sm:$0xff] }
 0x476   :  { %v7420_v48 = vld [vmem:[#allocation26_spill] sm:$0xff] }
 0x478   :  { %2570 = vmatpush2.bf16.msra.mxu0 %v7410_v18  ;;  %2611 = vmatpush2.bf16.msra.mxu1 %v7411_v36  ;;  %v7421_v18 = vld [vmem:[#allocation80_spill] sm:$0xff]  ;;  %v7422_v36 = vld [vmem:[#allocation27_spill] sm:$0xff] }
 0x479   :  { %2571 = vmatprep.subr.bf16.mxu0 %v7412_v51  ;;  %2612 = vmatprep.subr.bf16.mxu1 %v7413_v56  ;;  %v7423_v51 = vld [vmem:[#allocation82_spill] sm:$0xff]  ;;  %v7424_v56 = vld [vmem:[#allocation28_spill] sm:$0xff] }
 0x47c   :  { %2572 = vmatpush2.bf16.msra.mxu0 %v7414_v41  ;;  %2613 = vmatpush2.bf16.msra.mxu1 %v7415_v58  ;;  %v7425_v41 = vld [vmem:[#allocation84_spill] sm:$0xff]  ;;  %v7426_v58 = vld [vmem:[#allocation29_spill] sm:$0xff] }
 0x47d   :  { %2573 = vmatprep.subr.bf16.mxu0 %v7416_v29  ;;  %2614 = vmatprep.subr.bf16.mxu1 %v7417_v33  ;;  %v7427_v29 = vld [vmem:[#allocation86_spill] sm:$0xff] }
 0x47e   :  { %v7428_v33 = vld [vmem:[#allocation30_spill] sm:$0xff] }
 0x480   :  { %2574 = vmatpush2.bf16.msra.mxu0 %v7418_v19  ;;  %2615 = vmatpush2.bf16.msra.mxu1 %v7419_v60  ;;  %v7429_v19 = vld [vmem:[#allocation88_spill] sm:$0xff]  ;;  %v7430_v60 = vld [vmem:[#allocation31_spill] sm:$0xff] }
 0x481   :  { %2575 = vmatprep.subr.bf16.mxu0 %v7420_v48  ;;  %2616 = vmatprep.subr.bf16.mxu1 %v7421_v18  ;;  %v7431_v48 = vld [vmem:[#allocation90_spill] sm:$0xff]  ;;  %v7432_v18 = vld [vmem:[#allocation32_spill] sm:$0xff] }
 0x484   :  { %2576 = vmatpush2.bf16.msra.mxu0 %v7422_v36  ;;  %2617 = vmatpush2.bf16.msra.mxu1 %v7423_v51  ;;  %v7433_v36 = vld [vmem:[#allocation92_spill] sm:$0xff]  ;;  %v7434_v51 = vld [vmem:[#allocation33_spill] sm:$0xff] }
 0x485   :  { %2577 = vmatprep.subr.bf16.mxu0 %v7424_v56  ;;  %2618 = vmatprep.subr.bf16.mxu1 %v7425_v41  ;;  %v7435_v56 = vld [vmem:[#allocation94_spill] sm:$0xff] }
 0x486   :  { %v7436_v41 = vld [vmem:[#allocation34_spill] sm:$0xff] }
 0x488   :  { %2578 = vmatpush2.bf16.msra.mxu0 %v7426_v58  ;;  %2619 = vmatpush2.bf16.msra.mxu1 %v7427_v29  ;;  %v7437_v58 = vld [vmem:[#allocation96_spill] sm:$0xff]  ;;  %v7438_v29 = vld [vmem:[#allocation35_spill] sm:$0xff] }
 0x489   :  { %2579 = vmatprep.subr.bf16.mxu0 %v7428_v33  ;;  %2620 = vmatprep.subr.bf16.mxu1 %v7429_v19  ;;  %v7439_v33 = vld [vmem:[#allocation98_spill] sm:$0xff]  ;;  %v7440_v19 = vld [vmem:[#allocation37_spill] sm:$0xff] }
 0x48c   :  { %2580 = vmatpush2.bf16.msra.mxu0 %v7430_v60  ;;  %2621 = vmatpush2.bf16.msra.mxu1 %v7431_v48  ;;  %v7441_v60 = vld [vmem:[#allocation100_spill] sm:$0xff] }
 0x48d   :  { %2581 = vmatprep.subr.bf16.mxu0 %v7432_v18  ;;  %2622 = vmatprep.subr.bf16.mxu1 %v7433_v36 }
 0x490   :  { %2582 = vmatpush2.bf16.msra.mxu0 %v7434_v51  ;;  %2623 = vmatpush2.bf16.msra.mxu1 %v7435_v56 }
 0x491   :  { %2583 = vmatprep.subr.bf16.mxu0 %v7436_v41  ;;  %2624 = vmatprep.subr.bf16.mxu1 %v7437_v58 }
 0x494   :  { %2584 = vmatpush2.bf16.msra.mxu0 %v7438_v29  ;;  %2625 = vmatpush2.bf16.msra.mxu1 %v7439_v33  ;;  %v7445_v33 = vld [vmem:[#allocation124_spill] sm:$0xff] }
 0x495   :  { %2635 = vmatprep.subr.bf16.mxu0 %v7440_v19  ;;  %2676 = vmatprep.subr.bf16.mxu1 %v7441_v60 }
 0x4d7   :  { %v2356_v48 = vpop.f32.mrf.mxu0  ;;  %v2397_v18 = vpop.f32.mrf.mxu1 }
 0x4d8   :  { %v2488_v41 = vadd.f32 %v2397_v18, %v7442_v34  ;;  %v2486_v58 = vadd.f32 %v2356_v48, %v7443_v6  ;;  %v7447_v6 = vld [vmem:[#allocation127_spill] sm:$0xff] }
 0x4d9   :  { %v2358_v5 = vpop.f32.mrf.mxu0  ;;  %v2399_v36 = vpop.f32.mrf.mxu1 }
 0x4da   :  { %v2489_v29 = vadd.f32 %v2399_v36, %v7444_v57  ;;  %v2502_v30 = vmul.f32 0.5, %v2488_v41  ;;  %v2487_v15 = vadd.f32 %v2358_v5, %v7445_v33  ;;  %v2494_v19 = vmul.f32 0.5, %v2486_v58 }
 0x4db   :  { %v2360_v50 = vpop.f32.mrf.mxu0  ;;  %v2401_v51 = vpop.f32.mrf.mxu1 }
 0x4dc   :  { %v2503_v25 = vmul.f32 0.5, %v2489_v29  ;;  %4106 = vtanh.f32 %v2502_v30  ;;  %v2495_v60 = vmul.f32 0.5, %v2487_v15  ;;  %v7448_v30 = vld [vmem:[#allocation159_spill] sm:$0xff] }
 0x4dd   :  { %v2361_v42 = vpop.f32.mrf.mxu0  ;;  %v2402_v56 = vpop.f32.mrf.mxu1  ;;  %4108 = vtanh.f32 %v2494_v19 }
 0x4de   :  { %4110 = vtanh.f32 %v2503_v25  ;;  %v7446_v42 = vld [vmem:[#allocation125_spill] sm:$0xff]  ;;  %v7449_v25 = vld [vmem:[#allocation160_spill] sm:$0xff] }
 0x4df   :  { %4112 = vtanh.f32 %v2495_v60 }
 0x4e9   :  { %v4107_v41 = vpop.eup %4106 }
 0x4ea   :  { %v4109_v33 = vpop.eup %4108  ;;  %v2506_v5 = vmul.f32 0.5, %v4107_v41 }
 0x4eb   :  { %v4111_v60 = vpop.eup %4110 }
 0x4ec   :  { %v4113_v18 = vpop.eup %4112  ;;  %v2507_v54 = vmul.f32 0.5, %v4111_v60  ;;  %v2508_v10 = vadd.f32 0.5, %v2506_v5 }
 0x517   :  { %v2438_v50 = vpop.f32.mrf.mxu0  ;;  %v2479_v51 = vpop.f32.mrf.mxu1 }
 0x518   :  { %v2490_v56 = vadd.f32 %v2438_v50, %v7446_v42  ;;  %v2492_v15 = vadd.f32 %v2479_v51, %v7448_v30  ;;  %v2498_v50 = vmul.f32 0.5, %v4109_v33 }
 0x519   :  { %v2440_v3 = vpop.f32.mrf.mxu0  ;;  %v2481_v34 = vpop.f32.mrf.mxu1 }
 0x51a   :  { %4114 = vtanh.f32 %v2490_v56  ;;  %v2491_v48 = vadd.f32 %v2440_v3, %v7447_v6  ;;  %v2493_v19 = vadd.f32 %v2481_v34, %v7449_v25  ;;  %v2512_v42 = vmul.f32 0.5, %v2492_v15 }
 0x51b   :  { %v2442_v57 = vpop.f32.mrf.mxu0  ;;  %v2483_v36 = vpop.f32.mrf.mxu1  ;;  %v2499_v3 = vmul.f32 0.5, %v4113_v18  ;;  %v2500_v6 = vadd.f32 0.5, %v2498_v50 }
 0x51c   :  { %4116 = vtanh.f32 %v2491_v48  ;;  %v2513_v56 = vmul.f32 0.5, %v2493_v19  ;;  %v2509_v48 = vadd.f32 0.5, %v2507_v54  ;;  %v2520_v36 = vmul.f32 %v2508_v10, %v5908_v39 }
 0x51d   :  { %v2443_v58 = vpop.f32.mrf.mxu0  ;;  %v2484_v29 = vpop.f32.mrf.mxu1  ;;  %4118 = vtanh.f32 %v2512_v42 }
 0x51e   :  { %4120 = vtanh.f32 %v2513_v56  ;;  %v2501_v58 = vadd.f32 0.5, %v2499_v3  ;;  %v2521_v41 = vmul.f32 %v2509_v48, %v5912_v2  ;;  %v7452_v56 = vld [vmem:[#allocation103_spill] sm:$0xff]  ;;  %v7456_v48 = vld [vmem:[#allocation105_spill] sm:$0xff] }
 0x51f   :  { %v7453_v3 = vld [vmem:[#allocation79_spill] sm:$0xff] }
 0x527   :  { %v4115_v57 = vpop.eup %4114 }
 0x528   :  { %v2522_v51 = vmul.f32 %v4115_v57, %v2500_v6  ;;  %v7454_v6 = vld [vmem:[#allocation104_spill] sm:$0xff]  ;;  %v7455_v57 = vld [vmem:[#allocation81_spill] sm:$0xff] }
 0x529   :  { %v4117_v29 = vpop.eup %4116 }
 0x52a   :  { %v6066_v34 = vadd.f32 %v2522_v51, %v2520_v36  ;;  %v2523_v30 = vmul.f32 %v4117_v29, %v2501_v58  ;;  %v4119_v33 = vpop.eup %4118  ;;  %v7457_v36 = vld [vmem:[#allocation83_spill] sm:$0xff]  ;;  %v7458_v51 = vld [vmem:[#allocation106_spill] sm:$0xff]  ;;  %v7459_v58 = vld [vmem:[#allocation85_spill] sm:$0xff] }
 0x52b   :  { %v4121_v25 = vpop.eup %4120  ;;  %v2516_v54 = vmul.f32 0.5, %v4119_v33  ;;  %v7460_v29 = vld [vmem:[#allocation107_spill] sm:$0xff]  ;;  %v7463_v33 = vld [vmem:[#allocation89_spill] sm:$0xff] }
 0x52c   :  { %4122 = vtanh.f32 %v6066_v34  ;;  %v6070_v15 = vadd.f32 %v2523_v30, %v2521_v41  ;;  %v2517_v19 = vmul.f32 0.5, %v4121_v25  ;;  %v7461_v41 = vld [vmem:[#allocation87_spill] sm:$0xff]  ;;  %v7462_v30 = vld [vmem:[#allocation108_spill] sm:$0xff]  ;;  %v7464_v25 = vld [vmem:[#allocation109_spill] sm:$0xff] }
 0x52d   :  { %v2518_v39 = vadd.f32 0.5, %v2516_v54  ;;  %v7465_v54 = vld [vmem:[#allocation91_spill] sm:$0xff] }
 0x52e   :  { %4124 = vtanh.f32 %v6070_v15  ;;  %v2519_v10 = vadd.f32 0.5, %v2517_v19  ;;  %v7466_v19 = vld [vmem:[#allocation110_spill] sm:$0xff] }
 0x539   :  { %v4123_v60 = vpop.eup %4122 }
 0x53a   :  { %v6073_v18 = vmul.f32 %v4123_v60, %v2518_v39  ;;  %v7467_v60 = vld [vmem:[#allocation93_spill] sm:$0xff]  ;;  %v7468_v39 = vld [vmem:[#allocation111_spill] sm:$0xff] }
 0x53b   :  { %v4125_v5 = vpop.eup %4124 }
 0x53c   :  { %7450 = vst [vmem:[#allocation47_spill] sm:$0xff] %v6073_v18  ;;  %v6075_v50 = vmul.f32 %v4125_v5, %v2519_v10  ;;  %v6081_v42 = vpack.c.bf16 %v6073_v18, %v6073_v18  ;;  %v7469_v10 = vld [vmem:[#allocation95_spill] sm:$0xff]  ;;  %v7470_v5 = vld [vmem:[#allocation112_spill] sm:$0xff]  ;;  %v7472_v18 = vld [vmem:[#allocation113_spill] sm:$0xff] }
 0x53e   :  { %7451 = vst [vmem:[#allocation49_spill] sm:$0xff] %v6075_v50  ;;  %v2531_v2 = vpack.c.bf16 %v6075_v50, %v6075_v50  ;;  %v7473_v50 = vld [vmem:[#allocation99_spill] sm:$0xff] }
 0x540   :  { %2585 = vmatprep.mubr.bf16.mxu0 %v2531_v2  ;;  %2626 = vmatprep.mubr.bf16.mxu1 %v2531_v2 }
 0x541   :  { %2586 = vmatmul.mubr.bf16.vlgmr.msra.gmra.mxu0 %v6081_v42  ;;  %2627 = vmatmul.mubr.bf16.vlgmr.msra.gmra.mxu1 %v6081_v42 }
 0x542   :  { %2636 = vmatpush1.bf16.msra.mxu0 %v7154_v37  ;;  %2677 = vmatpush1.bf16.msra.mxu1 %v5099_v0 }
 0x543   :  { %2667 = vmatprep.mubr.bf16.mxu0 %v2531_v2  ;;  %2708 = vmatprep.mubr.bf16.mxu1 %v2531_v2  ;;  %v7471_v2 = vld [vmem:[#allocation97_spill] sm:$0xff] }
 0x544   :  { %2637 = vmatprep.subr.bf16.mxu0 %v7155_v28  ;;  %2678 = vmatprep.subr.bf16.mxu1 %v5103_v1 }
 0x546   :  { %2638 = vmatpush1.bf16.msra.mxu0 %v7156_v47  ;;  %2679 = vmatpush1.bf16.msra.mxu1 %v5115_v32 }
 0x547   :  { %2639 = vmatprep.subr.bf16.mxu0 %v7157_v9  ;;  %2680 = vmatprep.subr.bf16.mxu1 %v5118_v27 }
 0x54a   :  { %2640 = vmatpush1.bf16.msra.mxu0 %v7158_v21  ;;  %2681 = vmatpush1.bf16.msra.mxu1 %v5130_v20 }
 0x54b   :  { %2641 = vmatprep.subr.bf16.mxu0 %v7159_v63  ;;  %2682 = vmatprep.subr.bf16.mxu1 %v5133_v35 }
 0x54e   :  { %2642 = vmatpush1.bf16.msra.mxu0 %v7160_v62  ;;  %2683 = vmatpush1.bf16.msra.mxu1 %v5144_v4 }
 0x54f   :  { %2643 = vmatprep.subr.bf16.mxu0 %v7161_v8  ;;  %2684 = vmatprep.subr.bf16.mxu1 %v5147_v61 }
 0x552   :  { %2644 = vmatpush1.bf16.msra.mxu0 %v7162_v13  ;;  %2685 = vmatpush1.bf16.msra.mxu1 %v5158_v7 }
 0x553   :  { %2645 = vmatprep.subr.bf16.mxu0 %v7163_v49  ;;  %2686 = vmatprep.subr.bf16.mxu1 %v5161_v43 }
 0x556   :  { %2646 = vmatpush1.bf16.msra.mxu0 %v7164_v52  ;;  %2687 = vmatpush1.bf16.msra.mxu1 %v5172_v53 }
 0x557   :  { %2647 = vmatprep.subr.bf16.mxu0 %v7165_v59  ;;  %2688 = vmatprep.subr.bf16.mxu1 %v5175_v12 }
 0x55a   :  { %2648 = vmatpush1.bf16.msra.mxu0 %v7166_v11  ;;  %2689 = vmatpush1.bf16.msra.mxu1 %v5186_v14 }
 0x55b   :  { %2649 = vmatprep.subr.bf16.mxu0 %v7167_v55  ;;  %2690 = vmatprep.subr.bf16.mxu1 %v5189_v16 }
 0x55e   :  { %2650 = vmatpush1.bf16.msra.mxu0 %v7168_v46  ;;  %2691 = vmatpush1.bf16.msra.mxu1 %v5200_v22 }
 0x55f   :  { %2651 = vmatprep.subr.bf16.mxu0 %v7169_v17  ;;  %2692 = vmatprep.subr.bf16.mxu1 %v5203_v24 }
 0x562   :  { %2652 = vmatpush2.bf16.msra.mxu0 %v7170_v40  ;;  %2693 = vmatpush2.bf16.msra.mxu1 %v5214_v31 }
 0x563   :  { %2653 = vmatprep.subr.bf16.mxu0 %v7171_v44  ;;  %2694 = vmatprep.subr.bf16.mxu1 %v7254_v26 }
 0x566   :  { %2654 = vmatpush2.bf16.msra.mxu0 %v7172_v23  ;;  %2695 = vmatpush2.bf16.msra.mxu1 %v7255_v45 }
 0x567   :  { %2655 = vmatprep.subr.bf16.mxu0 %v7173_v38  ;;  %2696 = vmatprep.subr.bf16.mxu1 %v7452_v56 }
 0x56a   :  { %2656 = vmatpush2.bf16.msra.mxu0 %v7453_v3  ;;  %2697 = vmatpush2.bf16.msra.mxu1 %v7454_v6 }
 0x56b   :  { %2657 = vmatprep.subr.bf16.mxu0 %v7455_v57  ;;  %2698 = vmatprep.subr.bf16.mxu1 %v7456_v48 }
 0x56e   :  { %2658 = vmatpush2.bf16.msra.mxu0 %v7457_v36  ;;  %2699 = vmatpush2.bf16.msra.mxu1 %v7458_v51  ;;  %v7543_v51 = vld [vmem:[#allocation150_spill] sm:$0xff] }
 0x56f   :  { %2659 = vmatprep.subr.bf16.mxu0 %v7459_v58  ;;  %2700 = vmatprep.subr.bf16.mxu1 %v7460_v29  ;;  %v7541_v29 = vld [vmem:[#allocation149_spill] sm:$0xff]  ;;  %v7542_v58 = vld [vmem:[#allocation126_spill] sm:$0xff] }
 0x572   :  { %2660 = vmatpush2.bf16.msra.mxu0 %v7461_v41  ;;  %2701 = vmatpush2.bf16.msra.mxu1 %v7462_v30 }
 0x573   :  { %2661 = vmatprep.subr.bf16.mxu0 %v7463_v33  ;;  %2702 = vmatprep.subr.bf16.mxu1 %v7464_v25  ;;  %v7474_v33 = vld [vmem:[#allocation114_spill] sm:$0xff]  ;;  %v7475_v25 = vld [vmem:[#allocation4_spill] sm:$0xff] }
 0x576   :  { %2662 = vmatpush2.bf16.msra.mxu0 %v7465_v54  ;;  %2703 = vmatpush2.bf16.msra.mxu1 %v7466_v19  ;;  %v7476_v54 = vld [vmem:[#allocation36_spill] sm:$0xff] }
 0x577   :  { %2663 = vmatprep.subr.bf16.mxu0 %v7467_v60  ;;  %2704 = vmatprep.subr.bf16.mxu1 %v7468_v39  ;;  %v7477_v39 = vld [vmem:[#allocation5_spill] sm:$0xff]  ;;  %v7486_v60 = vld [vmem:[#allocation46_spill] sm:$0xff] }
 0x57a   :  { %2664 = vmatpush2.bf16.msra.mxu0 %v7469_v10  ;;  %2705 = vmatpush2.bf16.msra.mxu1 %v7470_v5  ;;  %v7478_v10 = vld [vmem:[#allocation38_spill] sm:$0xff] }
 0x57b   :  { %2665 = vmatprep.subr.bf16.mxu0 %v7471_v2  ;;  %2706 = vmatprep.subr.bf16.mxu1 %v7472_v18  ;;  %v7479_v5 = vld [vmem:[#allocation6_spill] sm:$0xff]  ;;  %v7480_v2 = vld [vmem:[#allocation40_spill] sm:$0xff]  ;;  %v7481_v18 = vld [vmem:[#allocation7_spill] sm:$0xff] }
 0x57e   :  { %2666 = vmatpush2.bf16.msra.mxu0 %v7473_v50  ;;  %2707 = vmatpush2.bf16.msra.mxu1 %v7474_v33  ;;  %v7482_v50 = vld [vmem:[#allocation42_spill] sm:$0xff]  ;;  %v7483_v33 = vld [vmem:[#allocation8_spill] sm:$0xff] }
 0x57f   :  { %2784 = vmatprep.subr.bf16.mxu0 %v7475_v25  ;;  %2825 = vmatprep.subr.bf16.mxu1 %v7476_v54  ;;  %v7484_v25 = vld [vmem:[#allocation44_spill] sm:$0xff]  ;;  %v7485_v54 = vld [vmem:[#allocation9_spill] sm:$0xff] }
 0x581   :  { %2668 = vmatmul.mubr.bf16.vlgmr.msra.gmra.mxu0 %v6081_v42  ;;  %2709 = vmatmul.mubr.bf16.vlgmr.msra.gmra.mxu1 %v6081_v42  ;;  %v7487_v42 = vld [vmem:[#allocation10_spill] sm:$0xff] }
 0x582   :  { %2785 = vmatpush1.bf16.msra.mxu0 %v7477_v39  ;;  %2826 = vmatpush1.bf16.msra.mxu1 %v7478_v10  ;;  %v7488_v39 = vld [vmem:[#allocation48_spill] sm:$0xff]  ;;  %v7489_v10 = vld [vmem:[#allocation11_spill] sm:$0xff] }
 0x583   :  { %2786 = vmatprep.subr.bf16.mxu0 %v7479_v5  ;;  %2827 = vmatprep.subr.bf16.mxu1 %v7480_v2  ;;  %v7490_v5 = vld [vmem:[#allocation50_spill] sm:$0xff]  ;;  %v7491_v2 = vld [vmem:[#allocation12_spill] sm:$0xff] }
 0x586   :  { %2787 = vmatpush1.bf16.msra.mxu0 %v7481_v18  ;;  %2828 = vmatpush1.bf16.msra.mxu1 %v7482_v50  ;;  %v7492_v18 = vld [vmem:[#allocation52_spill] sm:$0xff]  ;;  %v7493_v50 = vld [vmem:[#allocation13_spill] sm:$0xff] }
 0x587   :  { %2788 = vmatprep.subr.bf16.mxu0 %v7483_v33  ;;  %2829 = vmatprep.subr.bf16.mxu1 %v7484_v25  ;;  %v7494_v33 = vld [vmem:[#allocation54_spill] sm:$0xff] }
 0x588   :  { %v7495_v25 = vld [vmem:[#allocation14_spill] sm:$0xff] }
 0x58a   :  { %2789 = vmatpush1.bf16.msra.mxu0 %v7485_v54  ;;  %2830 = vmatpush1.bf16.msra.mxu1 %v7486_v60  ;;  %v7496_v54 = vld [vmem:[#allocation56_spill] sm:$0xff]  ;;  %v7497_v60 = vld [vmem:[#allocation15_spill] sm:$0xff] }
 0x58b   :  { %2790 = vmatprep.subr.bf16.mxu0 %v7487_v42  ;;  %2831 = vmatprep.subr.bf16.mxu1 %v7488_v39  ;;  %v7498_v42 = vld [vmem:[#allocation58_spill] sm:$0xff]  ;;  %v7499_v39 = vld [vmem:[#allocation16_spill] sm:$0xff] }
 0x58e   :  { %2791 = vmatpush1.bf16.msra.mxu0 %v7489_v10  ;;  %2832 = vmatpush1.bf16.msra.mxu1 %v7490_v5  ;;  %v7500_v10 = vld [vmem:[#allocation60_spill] sm:$0xff]  ;;  %v7501_v5 = vld [vmem:[#allocation17_spill] sm:$0xff] }
 0x58f   :  { %2792 = vmatprep.subr.bf16.mxu0 %v7491_v2  ;;  %2833 = vmatprep.subr.bf16.mxu1 %v7492_v18  ;;  %v7502_v2 = vld [vmem:[#allocation62_spill] sm:$0xff] }
 0x590   :  { %v7503_v18 = vld [vmem:[#allocation18_spill] sm:$0xff] }
 0x592   :  { %2793 = vmatpush1.bf16.msra.mxu0 %v7493_v50  ;;  %2834 = vmatpush1.bf16.msra.mxu1 %v7494_v33  ;;  %v7504_v50 = vld [vmem:[#allocation64_spill] sm:$0xff]  ;;  %v7505_v33 = vld [vmem:[#allocation19_spill] sm:$0xff] }
 0x593   :  { %2794 = vmatprep.subr.bf16.mxu0 %v7495_v25  ;;  %2835 = vmatprep.subr.bf16.mxu1 %v7496_v54  ;;  %v7506_v25 = vld [vmem:[#allocation66_spill] sm:$0xff]  ;;  %v7507_v54 = vld [vmem:[#allocation20_spill] sm:$0xff] }
 0x596   :  { %2795 = vmatpush1.bf16.msra.mxu0 %v7497_v60  ;;  %2836 = vmatpush1.bf16.msra.mxu1 %v7498_v42  ;;  %v7508_v60 = vld [vmem:[#allocation68_spill] sm:$0xff]  ;;  %v7509_v42 = vld [vmem:[#allocation21_spill] sm:$0xff] }
 0x597   :  { %2796 = vmatprep.subr.bf16.mxu0 %v7499_v39  ;;  %2837 = vmatprep.subr.bf16.mxu1 %v7500_v10  ;;  %v7510_v39 = vld [vmem:[#allocation70_spill] sm:$0xff] }
 0x598   :  { %v7511_v10 = vld [vmem:[#allocation22_spill] sm:$0xff] }
 0x59a   :  { %2797 = vmatpush1.bf16.msra.mxu0 %v7501_v5  ;;  %2838 = vmatpush1.bf16.msra.mxu1 %v7502_v2  ;;  %v7512_v5 = vld [vmem:[#allocation72_spill] sm:$0xff]  ;;  %v7513_v2 = vld [vmem:[#allocation23_spill] sm:$0xff] }
 0x59b   :  { %2798 = vmatprep.subr.bf16.mxu0 %v7503_v18  ;;  %2839 = vmatprep.subr.bf16.mxu1 %v7504_v50  ;;  %v7514_v18 = vld [vmem:[#allocation74_spill] sm:$0xff]  ;;  %v7515_v50 = vld [vmem:[#allocation24_spill] sm:$0xff] }
 0x59e   :  { %2799 = vmatpush1.bf16.msra.mxu0 %v7505_v33  ;;  %2840 = vmatpush1.bf16.msra.mxu1 %v7506_v25  ;;  %v7516_v33 = vld [vmem:[#allocation76_spill] sm:$0xff]  ;;  %v7517_v25 = vld [vmem:[#allocation25_spill] sm:$0xff] }
 0x59f   :  { %2800 = vmatprep.subr.bf16.mxu0 %v7507_v54  ;;  %2841 = vmatprep.subr.bf16.mxu1 %v7508_v60  ;;  %v7518_v54 = vld [vmem:[#allocation78_spill] sm:$0xff] }
 0x5a0   :  { %v7519_v60 = vld [vmem:[#allocation26_spill] sm:$0xff] }
 0x5a2   :  { %2801 = vmatpush2.bf16.msra.mxu0 %v7509_v42  ;;  %2842 = vmatpush2.bf16.msra.mxu1 %v7510_v39  ;;  %v7520_v42 = vld [vmem:[#allocation80_spill] sm:$0xff]  ;;  %v7521_v39 = vld [vmem:[#allocation27_spill] sm:$0xff] }
 0x5a3   :  { %2802 = vmatprep.subr.bf16.mxu0 %v7511_v10  ;;  %2843 = vmatprep.subr.bf16.mxu1 %v7512_v5  ;;  %v7522_v10 = vld [vmem:[#allocation82_spill] sm:$0xff]  ;;  %v7523_v5 = vld [vmem:[#allocation28_spill] sm:$0xff] }
 0x5a6   :  { %2803 = vmatpush2.bf16.msra.mxu0 %v7513_v2  ;;  %2844 = vmatpush2.bf16.msra.mxu1 %v7514_v18  ;;  %v7524_v2 = vld [vmem:[#allocation84_spill] sm:$0xff]  ;;  %v7525_v18 = vld [vmem:[#allocation29_spill] sm:$0xff] }
 0x5a7   :  { %2804 = vmatprep.subr.bf16.mxu0 %v7515_v50  ;;  %2845 = vmatprep.subr.bf16.mxu1 %v7516_v33  ;;  %v7526_v50 = vld [vmem:[#allocation86_spill] sm:$0xff] }
 0x5a8   :  { %v7527_v33 = vld [vmem:[#allocation30_spill] sm:$0xff] }
 0x5aa   :  { %2805 = vmatpush2.bf16.msra.mxu0 %v7517_v25  ;;  %2846 = vmatpush2.bf16.msra.mxu1 %v7518_v54  ;;  %v7528_v25 = vld [vmem:[#allocation88_spill] sm:$0xff]  ;;  %v7529_v54 = vld [vmem:[#allocation31_spill] sm:$0xff] }
 0x5ab   :  { %2806 = vmatprep.subr.bf16.mxu0 %v7519_v60  ;;  %2847 = vmatprep.subr.bf16.mxu1 %v7520_v42  ;;  %v7530_v60 = vld [vmem:[#allocation90_spill] sm:$0xff]  ;;  %v7531_v42 = vld [vmem:[#allocation32_spill] sm:$0xff] }
 0x5ae   :  { %2807 = vmatpush2.bf16.msra.mxu0 %v7521_v39  ;;  %2848 = vmatpush2.bf16.msra.mxu1 %v7522_v10  ;;  %v7532_v39 = vld [vmem:[#allocation92_spill] sm:$0xff]  ;;  %v7533_v10 = vld [vmem:[#allocation33_spill] sm:$0xff] }
 0x5af   :  { %2808 = vmatprep.subr.bf16.mxu0 %v7523_v5  ;;  %2849 = vmatprep.subr.bf16.mxu1 %v7524_v2  ;;  %v7534_v5 = vld [vmem:[#allocation94_spill] sm:$0xff] }
 0x5b0   :  { %v7535_v2 = vld [vmem:[#allocation34_spill] sm:$0xff] }
 0x5b2   :  { %2809 = vmatpush2.bf16.msra.mxu0 %v7525_v18  ;;  %2850 = vmatpush2.bf16.msra.mxu1 %v7526_v50  ;;  %v7536_v18 = vld [vmem:[#allocation96_spill] sm:$0xff]  ;;  %v7537_v50 = vld [vmem:[#allocation35_spill] sm:$0xff] }
 0x5b3   :  { %2810 = vmatprep.subr.bf16.mxu0 %v7527_v33  ;;  %2851 = vmatprep.subr.bf16.mxu1 %v7528_v25  ;;  %v7538_v33 = vld [vmem:[#allocation98_spill] sm:$0xff]  ;;  %v7539_v25 = vld [vmem:[#allocation37_spill] sm:$0xff] }
 0x5b6   :  { %2811 = vmatpush2.bf16.msra.mxu0 %v7529_v54  ;;  %2852 = vmatpush2.bf16.msra.mxu1 %v7530_v60  ;;  %v7540_v54 = vld [vmem:[#allocation100_spill] sm:$0xff] }
 0x5b7   :  { %2812 = vmatprep.subr.bf16.mxu0 %v7531_v42  ;;  %2853 = vmatprep.subr.bf16.mxu1 %v7532_v39 }
 0x5ba   :  { %2813 = vmatpush2.bf16.msra.mxu0 %v7533_v10  ;;  %2854 = vmatpush2.bf16.msra.mxu1 %v7534_v5 }
 0x5bb   :  { %2814 = vmatprep.subr.bf16.mxu0 %v7535_v2  ;;  %2855 = vmatprep.subr.bf16.mxu1 %v7536_v18 }
 0x5be   :  { %2815 = vmatpush2.bf16.msra.mxu0 %v7537_v50  ;;  %2856 = vmatpush2.bf16.msra.mxu1 %v7538_v33  ;;  %v7544_v33 = vld [vmem:[#allocation128_spill] sm:$0xff] }
 0x5bf   :  { %2866 = vmatprep.subr.bf16.mxu0 %v7539_v25  ;;  %2907 = vmatprep.subr.bf16.mxu1 %v7540_v54 }
 0x601   :  { %v2587_v60 = vpop.f32.mrf.mxu0  ;;  %v2628_v42 = vpop.f32.mrf.mxu1 }
 0x602   :  { %v2719_v2 = vadd.f32 %v2628_v42, %v7541_v29  ;;  %v2717_v18 = vadd.f32 %v2587_v60, %v7542_v58  ;;  %v7546_v58 = vld [vmem:[#allocation131_spill] sm:$0xff] }
 0x603   :  { %v2589_v19 = vpop.f32.mrf.mxu0  ;;  %v2630_v39 = vpop.f32.mrf.mxu1 }
 0x604   :  { %v2720_v50 = vadd.f32 %v2630_v39, %v7543_v51  ;;  %v2733_v36 = vmul.f32 0.5, %v2719_v2  ;;  %v2718_v48 = vadd.f32 %v2589_v19, %v7544_v33  ;;  %v2725_v25 = vmul.f32 0.5, %v2717_v18 }
 0x605   :  { %v2591_v30 = vpop.f32.mrf.mxu0  ;;  %v2632_v10 = vpop.f32.mrf.mxu1 }
 0x606   :  { %v2734_v57 = vmul.f32 0.5, %v2720_v50  ;;  %4126 = vtanh.f32 %v2733_v36  ;;  %v2726_v54 = vmul.f32 0.5, %v2718_v48  ;;  %v7547_v36 = vld [vmem:[#allocation161_spill] sm:$0xff] }
 0x607   :  { %v2592_v41 = vpop.f32.mrf.mxu0  ;;  %v2633_v5 = vpop.f32.mrf.mxu1  ;;  %4128 = vtanh.f32 %v2725_v25 }
 0x608   :  { %4130 = vtanh.f32 %v2734_v57  ;;  %v7545_v41 = vld [vmem:[#allocation129_spill] sm:$0xff]  ;;  %v7548_v57 = vld [vmem:[#allocation162_spill] sm:$0xff] }
 0x609   :  { %4132 = vtanh.f32 %v2726_v54 }
 0x613   :  { %v4127_v2 = vpop.eup %4126 }
 0x614   :  { %v4129_v33 = vpop.eup %4128  ;;  %v2737_v19 = vmul.f32 0.5, %v4127_v2 }
 0x615   :  { %v4131_v54 = vpop.eup %4130 }
 0x616   :  { %v4133_v42 = vpop.eup %4132  ;;  %v2738_v3 = vmul.f32 0.5, %v4131_v54  ;;  %v2739_v56 = vadd.f32 0.5, %v2737_v19 }
 0x641   :  { %v2669_v30 = vpop.f32.mrf.mxu0  ;;  %v2710_v10 = vpop.f32.mrf.mxu1 }
 0x642   :  { %v2721_v5 = vadd.f32 %v2669_v30, %v7545_v41  ;;  %v2723_v48 = vadd.f32 %v2710_v10, %v7547_v36  ;;  %v2729_v30 = vmul.f32 0.5, %v4129_v33 }
 0x643   :  { %v2671_v6 = vpop.f32.mrf.mxu0  ;;  %v2712_v29 = vpop.f32.mrf.mxu1 }
 0x644   :  { %4134 = vtanh.f32 %v2721_v5  ;;  %v2722_v60 = vadd.f32 %v2671_v6, %v7546_v58  ;;  %v2724_v25 = vadd.f32 %v2712_v29, %v7548_v57  ;;  %v2743_v41 = vmul.f32 0.5, %v2723_v48 }
 0x645   :  { %v2673_v51 = vpop.f32.mrf.mxu0  ;;  %v2714_v39 = vpop.f32.mrf.mxu1  ;;  %v2730_v6 = vmul.f32 0.5, %v4133_v42  ;;  %v2731_v58 = vadd.f32 0.5, %v2729_v30 }
 0x646   :  { %4136 = vtanh.f32 %v2722_v60  ;;  %v2744_v5 = vmul.f32 0.5, %v2724_v25  ;;  %v2740_v60 = vadd.f32 0.5, %v2738_v3  ;;  %v2751_v39 = vmul.f32 %v2739_v56, %v6066_v34 }
 0x647   :  { %v2674_v18 = vpop.f32.mrf.mxu0  ;;  %v2715_v50 = vpop.f32.mrf.mxu1  ;;  %4138 = vtanh.f32 %v2743_v41 }
 0x648   :  { %4140 = vtanh.f32 %v2744_v5  ;;  %v2732_v18 = vadd.f32 0.5, %v2730_v6  ;;  %v2752_v2 = vmul.f32 %v2740_v60, %v6070_v15  ;;  %v7551_v5 = vld [vmem:[#allocation103_spill] sm:$0xff]  ;;  %v7555_v60 = vld [vmem:[#allocation105_spill] sm:$0xff] }
 0x649   :  { %v7552_v6 = vld [vmem:[#allocation79_spill] sm:$0xff] }
 0x651   :  { %v4135_v51 = vpop.eup %4134 }
 0x652   :  { %v2753_v10 = vmul.f32 %v4135_v51, %v2731_v58  ;;  %v7553_v58 = vld [vmem:[#allocation104_spill] sm:$0xff]  ;;  %v7554_v51 = vld [vmem:[#allocation81_spill] sm:$0xff] }
 0x653   :  { %v4137_v50 = vpop.eup %4136 }
 0x654   :  { %v6224_v29 = vadd.f32 %v2753_v10, %v2751_v39  ;;  %v2754_v36 = vmul.f32 %v4137_v50, %v2732_v18  ;;  %v4139_v33 = vpop.eup %4138  ;;  %v7556_v39 = vld [vmem:[#allocation83_spill] sm:$0xff]  ;;  %v7557_v10 = vld [vmem:[#allocation106_spill] sm:$0xff]  ;;  %v7558_v18 = vld [vmem:[#allocation85_spill] sm:$0xff] }
 0x655   :  { %v4141_v57 = vpop.eup %4140  ;;  %v2747_v3 = vmul.f32 0.5, %v4139_v33  ;;  %v7559_v50 = vld [vmem:[#allocation107_spill] sm:$0xff]  ;;  %v7562_v33 = vld [vmem:[#allocation89_spill] sm:$0xff] }
 0x656   :  { %4142 = vtanh.f32 %v6224_v29  ;;  %v6228_v48 = vadd.f32 %v2754_v36, %v2752_v2  ;;  %v2748_v25 = vmul.f32 0.5, %v4141_v57  ;;  %v7560_v2 = vld [vmem:[#allocation87_spill] sm:$0xff]  ;;  %v7561_v36 = vld [vmem:[#allocation108_spill] sm:$0xff]  ;;  %v7563_v57 = vld [vmem:[#allocation109_spill] sm:$0xff] }
 0x657   :  { %v2749_v34 = vadd.f32 0.5, %v2747_v3  ;;  %v7564_v3 = vld [vmem:[#allocation91_spill] sm:$0xff] }
 0x658   :  { %4144 = vtanh.f32 %v6228_v48  ;;  %v2750_v56 = vadd.f32 0.5, %v2748_v25  ;;  %v7565_v25 = vld [vmem:[#allocation110_spill] sm:$0xff] }
 0x663   :  { %v4143_v54 = vpop.eup %4142 }
 0x664   :  { %v6231_v42 = vmul.f32 %v4143_v54, %v2749_v34  ;;  %v7566_v54 = vld [vmem:[#allocation93_spill] sm:$0xff]  ;;  %v7567_v34 = vld [vmem:[#allocation111_spill] sm:$0xff] }
 0x665   :  { %v4145_v19 = vpop.eup %4144 }
 0x666   :  { %7549 = vst [vmem:[#allocation51_spill] sm:$0xff] %v6231_v42  ;;  %v6233_v30 = vmul.f32 %v4145_v19, %v2750_v56  ;;  %v6239_v41 = vpack.c.bf16 %v6231_v42, %v6231_v42  ;;  %v7568_v56 = vld [vmem:[#allocation95_spill] sm:$0xff]  ;;  %v7569_v19 = vld [vmem:[#allocation112_spill] sm:$0xff]  ;;  %v7571_v42 = vld [vmem:[#allocation113_spill] sm:$0xff] }
 0x668   :  { %7550 = vst [vmem:[#allocation53_spill] sm:$0xff] %v6233_v30  ;;  %v2762_v15 = vpack.c.bf16 %v6233_v30, %v6233_v30  ;;  %v7572_v30 = vld [vmem:[#allocation99_spill] sm:$0xff] }
 0x66a   :  { %2816 = vmatprep.mubr.bf16.mxu0 %v2762_v15  ;;  %2857 = vmatprep.mubr.bf16.mxu1 %v2762_v15 }
 0x66b   :  { %2817 = vmatmul.mubr.bf16.vlgmr.msra.gmra.mxu0 %v6239_v41  ;;  %2858 = vmatmul.mubr.bf16.vlgmr.msra.gmra.mxu1 %v6239_v41 }
 0x66c   :  { %2867 = vmatpush1.bf16.msra.mxu0 %v7154_v37  ;;  %2908 = vmatpush1.bf16.msra.mxu1 %v5099_v0 }
 0x66d   :  { %2898 = vmatprep.mubr.bf16.mxu0 %v2762_v15  ;;  %2939 = vmatprep.mubr.bf16.mxu1 %v2762_v15  ;;  %v7570_v15 = vld [vmem:[#allocation97_spill] sm:$0xff] }
 0x66e   :  { %2868 = vmatprep.subr.bf16.mxu0 %v7155_v28  ;;  %2909 = vmatprep.subr.bf16.mxu1 %v5103_v1 }
 0x670   :  { %2869 = vmatpush1.bf16.msra.mxu0 %v7156_v47  ;;  %2910 = vmatpush1.bf16.msra.mxu1 %v5115_v32 }
 0x671   :  { %2870 = vmatprep.subr.bf16.mxu0 %v7157_v9  ;;  %2911 = vmatprep.subr.bf16.mxu1 %v5118_v27 }
 0x674   :  { %2871 = vmatpush1.bf16.msra.mxu0 %v7158_v21  ;;  %2912 = vmatpush1.bf16.msra.mxu1 %v5130_v20 }
 0x675   :  { %2872 = vmatprep.subr.bf16.mxu0 %v7159_v63  ;;  %2913 = vmatprep.subr.bf16.mxu1 %v5133_v35 }
 0x678   :  { %2873 = vmatpush1.bf16.msra.mxu0 %v7160_v62  ;;  %2914 = vmatpush1.bf16.msra.mxu1 %v5144_v4 }
 0x679   :  { %2874 = vmatprep.subr.bf16.mxu0 %v7161_v8  ;;  %2915 = vmatprep.subr.bf16.mxu1 %v5147_v61 }
 0x67c   :  { %2875 = vmatpush1.bf16.msra.mxu0 %v7162_v13  ;;  %2916 = vmatpush1.bf16.msra.mxu1 %v5158_v7 }
 0x67d   :  { %2876 = vmatprep.subr.bf16.mxu0 %v7163_v49  ;;  %2917 = vmatprep.subr.bf16.mxu1 %v5161_v43 }
 0x680   :  { %2877 = vmatpush1.bf16.msra.mxu0 %v7164_v52  ;;  %2918 = vmatpush1.bf16.msra.mxu1 %v5172_v53 }
 0x681   :  { %2878 = vmatprep.subr.bf16.mxu0 %v7165_v59  ;;  %2919 = vmatprep.subr.bf16.mxu1 %v5175_v12 }
 0x684   :  { %2879 = vmatpush1.bf16.msra.mxu0 %v7166_v11  ;;  %2920 = vmatpush1.bf16.msra.mxu1 %v5186_v14 }
 0x685   :  { %2880 = vmatprep.subr.bf16.mxu0 %v7167_v55  ;;  %2921 = vmatprep.subr.bf16.mxu1 %v5189_v16 }
 0x688   :  { %2881 = vmatpush1.bf16.msra.mxu0 %v7168_v46  ;;  %2922 = vmatpush1.bf16.msra.mxu1 %v5200_v22 }
 0x689   :  { %2882 = vmatprep.subr.bf16.mxu0 %v7169_v17  ;;  %2923 = vmatprep.subr.bf16.mxu1 %v5203_v24 }
 0x68c   :  { %2883 = vmatpush2.bf16.msra.mxu0 %v7170_v40  ;;  %2924 = vmatpush2.bf16.msra.mxu1 %v5214_v31 }
 0x68d   :  { %2884 = vmatprep.subr.bf16.mxu0 %v7171_v44  ;;  %2925 = vmatprep.subr.bf16.mxu1 %v7254_v26 }
 0x690   :  { %2885 = vmatpush2.bf16.msra.mxu0 %v7172_v23  ;;  %2926 = vmatpush2.bf16.msra.mxu1 %v7255_v45 }
 0x691   :  { %2886 = vmatprep.subr.bf16.mxu0 %v7173_v38  ;;  %2927 = vmatprep.subr.bf16.mxu1 %v7551_v5 }
 0x694   :  { %2887 = vmatpush2.bf16.msra.mxu0 %v7552_v6  ;;  %2928 = vmatpush2.bf16.msra.mxu1 %v7553_v58 }
 0x695   :  { %2888 = vmatprep.subr.bf16.mxu0 %v7554_v51  ;;  %2929 = vmatprep.subr.bf16.mxu1 %v7555_v60 }
 0x698   :  { %2889 = vmatpush2.bf16.msra.mxu0 %v7556_v39  ;;  %2930 = vmatpush2.bf16.msra.mxu1 %v7557_v10  ;;  %v7642_v10 = vld [vmem:[#allocation152_spill] sm:$0xff] }
 0x699   :  { %2890 = vmatprep.subr.bf16.mxu0 %v7558_v18  ;;  %2931 = vmatprep.subr.bf16.mxu1 %v7559_v50  ;;  %v7640_v50 = vld [vmem:[#allocation151_spill] sm:$0xff]  ;;  %v7641_v18 = vld [vmem:[#allocation130_spill] sm:$0xff] }
 0x69c   :  { %2891 = vmatpush2.bf16.msra.mxu0 %v7560_v2  ;;  %2932 = vmatpush2.bf16.msra.mxu1 %v7561_v36 }
 0x69d   :  { %2892 = vmatprep.subr.bf16.mxu0 %v7562_v33  ;;  %2933 = vmatprep.subr.bf16.mxu1 %v7563_v57  ;;  %v7573_v33 = vld [vmem:[#allocation114_spill] sm:$0xff]  ;;  %v7574_v57 = vld [vmem:[#allocation4_spill] sm:$0xff] }
 0x6a0   :  { %2893 = vmatpush2.bf16.msra.mxu0 %v7564_v3  ;;  %2934 = vmatpush2.bf16.msra.mxu1 %v7565_v25  ;;  %v7575_v3 = vld [vmem:[#allocation36_spill] sm:$0xff] }
 0x6a1   :  { %2894 = vmatprep.subr.bf16.mxu0 %v7566_v54  ;;  %2935 = vmatprep.subr.bf16.mxu1 %v7567_v34  ;;  %v7576_v34 = vld [vmem:[#allocation5_spill] sm:$0xff]  ;;  %v7585_v54 = vld [vmem:[#allocation46_spill] sm:$0xff] }
 0x6a4   :  { %2895 = vmatpush2.bf16.msra.mxu0 %v7568_v56  ;;  %2936 = vmatpush2.bf16.msra.mxu1 %v7569_v19  ;;  %v7577_v56 = vld [vmem:[#allocation38_spill] sm:$0xff] }
 0x6a5   :  { %2896 = vmatprep.subr.bf16.mxu0 %v7570_v15  ;;  %2937 = vmatprep.subr.bf16.mxu1 %v7571_v42  ;;  %v7578_v19 = vld [vmem:[#allocation6_spill] sm:$0xff]  ;;  %v7579_v15 = vld [vmem:[#allocation40_spill] sm:$0xff]  ;;  %v7580_v42 = vld [vmem:[#allocation7_spill] sm:$0xff] }
 0x6a8   :  { %2897 = vmatpush2.bf16.msra.mxu0 %v7572_v30  ;;  %2938 = vmatpush2.bf16.msra.mxu1 %v7573_v33  ;;  %v7581_v30 = vld [vmem:[#allocation42_spill] sm:$0xff]  ;;  %v7582_v33 = vld [vmem:[#allocation8_spill] sm:$0xff] }
 0x6a9   :  { %3015 = vmatprep.subr.bf16.mxu0 %v7574_v57  ;;  %3056 = vmatprep.subr.bf16.mxu1 %v7575_v3  ;;  %v7583_v57 = vld [vmem:[#allocation44_spill] sm:$0xff]  ;;  %v7584_v3 = vld [vmem:[#allocation9_spill] sm:$0xff] }
 0x6ab   :  { %2899 = vmatmul.mubr.bf16.vlgmr.msra.gmra.mxu0 %v6239_v41  ;;  %2940 = vmatmul.mubr.bf16.vlgmr.msra.gmra.mxu1 %v6239_v41  ;;  %v7586_v41 = vld [vmem:[#allocation10_spill] sm:$0xff] }
 0x6ac   :  { %3016 = vmatpush1.bf16.msra.mxu0 %v7576_v34  ;;  %3057 = vmatpush1.bf16.msra.mxu1 %v7577_v56  ;;  %v7587_v34 = vld [vmem:[#allocation48_spill] sm:$0xff]  ;;  %v7588_v56 = vld [vmem:[#allocation11_spill] sm:$0xff] }
 0x6ad   :  { %3017 = vmatprep.subr.bf16.mxu0 %v7578_v19  ;;  %3058 = vmatprep.subr.bf16.mxu1 %v7579_v15  ;;  %v7589_v19 = vld [vmem:[#allocation50_spill] sm:$0xff]  ;;  %v7590_v15 = vld [vmem:[#allocation12_spill] sm:$0xff] }
 0x6b0   :  { %3018 = vmatpush1.bf16.msra.mxu0 %v7580_v42  ;;  %3059 = vmatpush1.bf16.msra.mxu1 %v7581_v30  ;;  %v7591_v42 = vld [vmem:[#allocation52_spill] sm:$0xff]  ;;  %v7592_v30 = vld [vmem:[#allocation13_spill] sm:$0xff] }
 0x6b1   :  { %3019 = vmatprep.subr.bf16.mxu0 %v7582_v33  ;;  %3060 = vmatprep.subr.bf16.mxu1 %v7583_v57  ;;  %v7593_v33 = vld [vmem:[#allocation54_spill] sm:$0xff] }
 0x6b2   :  { %v7594_v57 = vld [vmem:[#allocation14_spill] sm:$0xff] }
 0x6b4   :  { %3020 = vmatpush1.bf16.msra.mxu0 %v7584_v3  ;;  %3061 = vmatpush1.bf16.msra.mxu1 %v7585_v54  ;;  %v7595_v3 = vld [vmem:[#allocation56_spill] sm:$0xff]  ;;  %v7596_v54 = vld [vmem:[#allocation15_spill] sm:$0xff] }
 0x6b5   :  { %3021 = vmatprep.subr.bf16.mxu0 %v7586_v41  ;;  %3062 = vmatprep.subr.bf16.mxu1 %v7587_v34  ;;  %v7597_v41 = vld [vmem:[#allocation58_spill] sm:$0xff]  ;;  %v7598_v34 = vld [vmem:[#allocation16_spill] sm:$0xff] }
 0x6b8   :  { %3022 = vmatpush1.bf16.msra.mxu0 %v7588_v56  ;;  %3063 = vmatpush1.bf16.msra.mxu1 %v7589_v19  ;;  %v7599_v56 = vld [vmem:[#allocation60_spill] sm:$0xff]  ;;  %v7600_v19 = vld [vmem:[#allocation17_spill] sm:$0xff] }
 0x6b9   :  { %3023 = vmatprep.subr.bf16.mxu0 %v7590_v15  ;;  %3064 = vmatprep.subr.bf16.mxu1 %v7591_v42  ;;  %v7601_v15 = vld [vmem:[#allocation62_spill] sm:$0xff] }
 0x6ba   :  { %v7602_v42 = vld [vmem:[#allocation18_spill] sm:$0xff] }
 0x6bc   :  { %3024 = vmatpush1.bf16.msra.mxu0 %v7592_v30  ;;  %3065 = vmatpush1.bf16.msra.mxu1 %v7593_v33  ;;  %v7603_v30 = vld [vmem:[#allocation64_spill] sm:$0xff]  ;;  %v7604_v33 = vld [vmem:[#allocation19_spill] sm:$0xff] }
 0x6bd   :  { %3025 = vmatprep.subr.bf16.mxu0 %v7594_v57  ;;  %3066 = vmatprep.subr.bf16.mxu1 %v7595_v3  ;;  %v7605_v57 = vld [vmem:[#allocation66_spill] sm:$0xff]  ;;  %v7606_v3 = vld [vmem:[#allocation20_spill] sm:$0xff] }
 0x6c0   :  { %3026 = vmatpush1.bf16.msra.mxu0 %v7596_v54  ;;  %3067 = vmatpush1.bf16.msra.mxu1 %v7597_v41  ;;  %v7607_v54 = vld [vmem:[#allocation68_spill] sm:$0xff]  ;;  %v7608_v41 = vld [vmem:[#allocation21_spill] sm:$0xff] }
 0x6c1   :  { %3027 = vmatprep.subr.bf16.mxu0 %v7598_v34  ;;  %3068 = vmatprep.subr.bf16.mxu1 %v7599_v56  ;;  %v7609_v34 = vld [vmem:[#allocation70_spill] sm:$0xff] }
 0x6c2   :  { %v7610_v56 = vld [vmem:[#allocation22_spill] sm:$0xff] }
 0x6c4   :  { %3028 = vmatpush1.bf16.msra.mxu0 %v7600_v19  ;;  %3069 = vmatpush1.bf16.msra.mxu1 %v7601_v15  ;;  %v7611_v19 = vld [vmem:[#allocation72_spill] sm:$0xff]  ;;  %v7612_v15 = vld [vmem:[#allocation23_spill] sm:$0xff] }
 0x6c5   :  { %3029 = vmatprep.subr.bf16.mxu0 %v7602_v42  ;;  %3070 = vmatprep.subr.bf16.mxu1 %v7603_v30  ;;  %v7613_v42 = vld [vmem:[#allocation74_spill] sm:$0xff]  ;;  %v7614_v30 = vld [vmem:[#allocation24_spill] sm:$0xff] }
 0x6c8   :  { %3030 = vmatpush1.bf16.msra.mxu0 %v7604_v33  ;;  %3071 = vmatpush1.bf16.msra.mxu1 %v7605_v57  ;;  %v7615_v33 = vld [vmem:[#allocation76_spill] sm:$0xff]  ;;  %v7616_v57 = vld [vmem:[#allocation25_spill] sm:$0xff] }
 0x6c9   :  { %3031 = vmatprep.subr.bf16.mxu0 %v7606_v3  ;;  %3072 = vmatprep.subr.bf16.mxu1 %v7607_v54  ;;  %v7617_v3 = vld [vmem:[#allocation78_spill] sm:$0xff] }
 0x6ca   :  { %v7618_v54 = vld [vmem:[#allocation26_spill] sm:$0xff] }
 0x6cc   :  { %3032 = vmatpush2.bf16.msra.mxu0 %v7608_v41  ;;  %3073 = vmatpush2.bf16.msra.mxu1 %v7609_v34  ;;  %v7619_v41 = vld [vmem:[#allocation80_spill] sm:$0xff]  ;;  %v7620_v34 = vld [vmem:[#allocation27_spill] sm:$0xff] }
 0x6cd   :  { %3033 = vmatprep.subr.bf16.mxu0 %v7610_v56  ;;  %3074 = vmatprep.subr.bf16.mxu1 %v7611_v19  ;;  %v7621_v56 = vld [vmem:[#allocation82_spill] sm:$0xff]  ;;  %v7622_v19 = vld [vmem:[#allocation28_spill] sm:$0xff] }
 0x6d0   :  { %3034 = vmatpush2.bf16.msra.mxu0 %v7612_v15  ;;  %3075 = vmatpush2.bf16.msra.mxu1 %v7613_v42  ;;  %v7623_v15 = vld [vmem:[#allocation84_spill] sm:$0xff]  ;;  %v7624_v42 = vld [vmem:[#allocation29_spill] sm:$0xff] }
 0x6d1   :  { %3035 = vmatprep.subr.bf16.mxu0 %v7614_v30  ;;  %3076 = vmatprep.subr.bf16.mxu1 %v7615_v33  ;;  %v7625_v30 = vld [vmem:[#allocation86_spill] sm:$0xff] }
 0x6d2   :  { %v7626_v33 = vld [vmem:[#allocation30_spill] sm:$0xff] }
 0x6d4   :  { %3036 = vmatpush2.bf16.msra.mxu0 %v7616_v57  ;;  %3077 = vmatpush2.bf16.msra.mxu1 %v7617_v3  ;;  %v7627_v57 = vld [vmem:[#allocation88_spill] sm:$0xff]  ;;  %v7628_v3 = vld [vmem:[#allocation31_spill] sm:$0xff] }
 0x6d5   :  { %3037 = vmatprep.subr.bf16.mxu0 %v7618_v54  ;;  %3078 = vmatprep.subr.bf16.mxu1 %v7619_v41  ;;  %v7629_v54 = vld [vmem:[#allocation90_spill] sm:$0xff]  ;;  %v7630_v41 = vld [vmem:[#allocation32_spill] sm:$0xff] }
 0x6d8   :  { %3038 = vmatpush2.bf16.msra.mxu0 %v7620_v34  ;;  %3079 = vmatpush2.bf16.msra.mxu1 %v7621_v56  ;;  %v7631_v34 = vld [vmem:[#allocation92_spill] sm:$0xff]  ;;  %v7632_v56 = vld [vmem:[#allocation33_spill] sm:$0xff] }
 0x6d9   :  { %3039 = vmatprep.subr.bf16.mxu0 %v7622_v19  ;;  %3080 = vmatprep.subr.bf16.mxu1 %v7623_v15  ;;  %v7633_v19 = vld [vmem:[#allocation94_spill] sm:$0xff] }
 0x6da   :  { %v7634_v15 = vld [vmem:[#allocation34_spill] sm:$0xff] }
 0x6dc   :  { %3040 = vmatpush2.bf16.msra.mxu0 %v7624_v42  ;;  %3081 = vmatpush2.bf16.msra.mxu1 %v7625_v30  ;;  %v7635_v42 = vld [vmem:[#allocation96_spill] sm:$0xff]  ;;  %v7636_v30 = vld [vmem:[#allocation35_spill] sm:$0xff] }
 0x6dd   :  { %3041 = vmatprep.subr.bf16.mxu0 %v7626_v33  ;;  %3082 = vmatprep.subr.bf16.mxu1 %v7627_v57  ;;  %v7637_v33 = vld [vmem:[#allocation98_spill] sm:$0xff]  ;;  %v7638_v57 = vld [vmem:[#allocation37_spill] sm:$0xff] }
 0x6e0   :  { %3042 = vmatpush2.bf16.msra.mxu0 %v7628_v3  ;;  %3083 = vmatpush2.bf16.msra.mxu1 %v7629_v54  ;;  %v7639_v3 = vld [vmem:[#allocation100_spill] sm:$0xff] }
 0x6e1   :  { %3043 = vmatprep.subr.bf16.mxu0 %v7630_v41  ;;  %3084 = vmatprep.subr.bf16.mxu1 %v7631_v34 }
 0x6e4   :  { %3044 = vmatpush2.bf16.msra.mxu0 %v7632_v56  ;;  %3085 = vmatpush2.bf16.msra.mxu1 %v7633_v19 }
 0x6e5   :  { %3045 = vmatprep.subr.bf16.mxu0 %v7634_v15  ;;  %3086 = vmatprep.subr.bf16.mxu1 %v7635_v42 }
 0x6e8   :  { %3046 = vmatpush2.bf16.msra.mxu0 %v7636_v30  ;;  %3087 = vmatpush2.bf16.msra.mxu1 %v7637_v33  ;;  %v7643_v33 = vld [vmem:[#allocation132_spill] sm:$0xff] }
 0x6e9   :  { %3097 = vmatprep.subr.bf16.mxu0 %v7638_v57  ;;  %3138 = vmatprep.subr.bf16.mxu1 %v7639_v3 }
 0x72b   :  { %v2818_v54 = vpop.f32.mrf.mxu0  ;;  %v2859_v41 = vpop.f32.mrf.mxu1 }
 0x72c   :  { %v2950_v15 = vadd.f32 %v2859_v41, %v7640_v50  ;;  %v2948_v42 = vadd.f32 %v2818_v54, %v7641_v18  ;;  %v7645_v18 = vld [vmem:[#allocation135_spill] sm:$0xff] }
 0x72d   :  { %v2820_v25 = vpop.f32.mrf.mxu0  ;;  %v2861_v34 = vpop.f32.mrf.mxu1 }
 0x72e   :  { %v2951_v30 = vadd.f32 %v2861_v34, %v7642_v10  ;;  %v2964_v39 = vmul.f32 0.5, %v2950_v15  ;;  %v2949_v60 = vadd.f32 %v2820_v25, %v7643_v33  ;;  %v2956_v57 = vmul.f32 0.5, %v2948_v42 }
 0x72f   :  { %v2822_v36 = vpop.f32.mrf.mxu0  ;;  %v2863_v56 = vpop.f32.mrf.mxu1 }
 0x730   :  { %v2965_v51 = vmul.f32 0.5, %v2951_v30  ;;  %4146 = vtanh.f32 %v2964_v39  ;;  %v2957_v3 = vmul.f32 0.5, %v2949_v60  ;;  %v7646_v39 = vld [vmem:[#allocation163_spill] sm:$0xff] }
 0x731   :  { %v2823_v2 = vpop.f32.mrf.mxu0  ;;  %v2864_v19 = vpop.f32.mrf.mxu1  ;;  %4148 = vtanh.f32 %v2956_v57 }
 0x732   :  { %4150 = vtanh.f32 %v2965_v51  ;;  %v7644_v2 = vld [vmem:[#allocation133_spill] sm:$0xff]  ;;  %v7647_v51 = vld [vmem:[#allocation164_spill] sm:$0xff] }
 0x733   :  { %4152 = vtanh.f32 %v2957_v3 }
 0x73d   :  { %v4147_v15 = vpop.eup %4146 }
 0x73e   :  { %v4149_v33 = vpop.eup %4148  ;;  %v2968_v25 = vmul.f32 0.5, %v4147_v15 }
 0x73f   :  { %v4151_v3 = vpop.eup %4150 }
 0x740   :  { %v4153_v41 = vpop.eup %4152  ;;  %v2969_v6 = vmul.f32 0.5, %v4151_v3  ;;  %v2970_v5 = vadd.f32 0.5, %v2968_v25 }
 0x76b   :  { %v2900_v36 = vpop.f32.mrf.mxu0  ;;  %v2941_v56 = vpop.f32.mrf.mxu1 }
 0x76c   :  { %v2952_v19 = vadd.f32 %v2900_v36, %v7644_v2  ;;  %v2954_v60 = vadd.f32 %v2941_v56, %v7646_v39  ;;  %v2960_v36 = vmul.f32 0.5, %v4149_v33 }
 0x76d   :  { %v2902_v58 = vpop.f32.mrf.mxu0  ;;  %v2943_v50 = vpop.f32.mrf.mxu1 }
 0x76e   :  { %4154 = vtanh.f32 %v2952_v19  ;;  %v2953_v54 = vadd.f32 %v2902_v58, %v7645_v18  ;;  %v2955_v57 = vadd.f32 %v2943_v50, %v7647_v51  ;;  %v2974_v2 = vmul.f32 0.5, %v2954_v60 }
 0x76f   :  { %v2904_v10 = vpop.f32.mrf.mxu0  ;;  %v2945_v34 = vpop.f32.mrf.mxu1  ;;  %v2961_v58 = vmul.f32 0.5, %v4153_v41  ;;  %v2962_v18 = vadd.f32 0.5, %v2960_v36 }
 0x770   :  { %4156 = vtanh.f32 %v2953_v54  ;;  %v2975_v19 = vmul.f32 0.5, %v2955_v57  ;;  %v2971_v54 = vadd.f32 0.5, %v2969_v6  ;;  %v2982_v34 = vmul.f32 %v2970_v5, %v6224_v29 }
 0x771   :  { %v2905_v42 = vpop.f32.mrf.mxu0  ;;  %v2946_v30 = vpop.f32.mrf.mxu1  ;;  %4158 = vtanh.f32 %v2974_v2 }
 0x772   :  { %4160 = vtanh.f32 %v2975_v19  ;;  %v2963_v42 = vadd.f32 0.5, %v2961_v58  ;;  %v2983_v15 = vmul.f32 %v2971_v54, %v6228_v48  ;;  %v7650_v19 = vld [vmem:[#allocation103_spill] sm:$0xff]  ;;  %v7654_v54 = vld [vmem:[#allocation105_spill] sm:$0xff] }
 0x773   :  { %v7651_v58 = vld [vmem:[#allocation79_spill] sm:$0xff] }
 0x77b   :  { %v4155_v10 = vpop.eup %4154 }
 0x77c   :  { %v2984_v56 = vmul.f32 %v4155_v10, %v2962_v18  ;;  %v7652_v18 = vld [vmem:[#allocation104_spill] sm:$0xff]  ;;  %v7653_v10 = vld [vmem:[#allocation81_spill] sm:$0xff] }
 0x77d   :  { %v4157_v30 = vpop.eup %4156 }
 0x77e   :  { %v6382_v50 = vadd.f32 %v2984_v56, %v2982_v34  ;;  %v2985_v39 = vmul.f32 %v4157_v30, %v2963_v42  ;;  %v4159_v33 = vpop.eup %4158  ;;  %v7655_v34 = vld [vmem:[#allocation83_spill] sm:$0xff]  ;;  %v7656_v56 = vld [vmem:[#allocation106_spill] sm:$0xff]  ;;  %v7657_v42 = vld [vmem:[#allocation85_spill] sm:$0xff] }
 0x77f   :  { %v4161_v51 = vpop.eup %4160  ;;  %v2978_v6 = vmul.f32 0.5, %v4159_v33  ;;  %v7658_v30 = vld [vmem:[#allocation107_spill] sm:$0xff]  ;;  %v7661_v33 = vld [vmem:[#allocation89_spill] sm:$0xff] }
 0x780   :  { %4162 = vtanh.f32 %v6382_v50  ;;  %v6386_v60 = vadd.f32 %v2985_v39, %v2983_v15  ;;  %v2979_v57 = vmul.f32 0.5, %v4161_v51  ;;  %v7659_v15 = vld [vmem:[#allocation87_spill] sm:$0xff]  ;;  %v7660_v39 = vld [vmem:[#allocation108_spill] sm:$0xff]  ;;  %v7662_v51 = vld [vmem:[#allocation109_spill] sm:$0xff] }
 0x781   :  { %v2980_v29 = vadd.f32 0.5, %v2978_v6  ;;  %v7663_v6 = vld [vmem:[#allocation91_spill] sm:$0xff] }
 0x782   :  { %4164 = vtanh.f32 %v6386_v60  ;;  %v2981_v5 = vadd.f32 0.5, %v2979_v57  ;;  %v7664_v57 = vld [vmem:[#allocation110_spill] sm:$0xff] }
 0x78d   :  { %v4163_v3 = vpop.eup %4162 }
 0x78e   :  { %v6389_v41 = vmul.f32 %v4163_v3, %v2980_v29  ;;  %v7665_v3 = vld [vmem:[#allocation93_spill] sm:$0xff]  ;;  %v7666_v29 = vld [vmem:[#allocation111_spill] sm:$0xff] }
 0x78f   :  { %v4165_v25 = vpop.eup %4164 }
 0x790   :  { %7648 = vst [vmem:[#allocation55_spill] sm:$0xff] %v6389_v41  ;;  %v6391_v36 = vmul.f32 %v4165_v25, %v2981_v5  ;;  %v6397_v2 = vpack.c.bf16 %v6389_v41, %v6389_v41  ;;  %v7667_v5 = vld [vmem:[#allocation95_spill] sm:$0xff]  ;;  %v7668_v25 = vld [vmem:[#allocation112_spill] sm:$0xff]  ;;  %v7670_v41 = vld [vmem:[#allocation113_spill] sm:$0xff] }
 0x792   :  { %7649 = vst [vmem:[#allocation57_spill] sm:$0xff] %v6391_v36  ;;  %v2993_v48 = vpack.c.bf16 %v6391_v36, %v6391_v36  ;;  %v7671_v36 = vld [vmem:[#allocation99_spill] sm:$0xff] }
 0x794   :  { %3047 = vmatprep.mubr.bf16.mxu0 %v2993_v48  ;;  %3088 = vmatprep.mubr.bf16.mxu1 %v2993_v48 }
 0x795   :  { %3048 = vmatmul.mubr.bf16.vlgmr.msra.gmra.mxu0 %v6397_v2  ;;  %3089 = vmatmul.mubr.bf16.vlgmr.msra.gmra.mxu1 %v6397_v2 }
 0x796   :  { %3098 = vmatpush1.bf16.msra.mxu0 %v7154_v37  ;;  %3139 = vmatpush1.bf16.msra.mxu1 %v5099_v0 }
 0x797   :  { %3129 = vmatprep.mubr.bf16.mxu0 %v2993_v48  ;;  %3170 = vmatprep.mubr.bf16.mxu1 %v2993_v48  ;;  %v7669_v48 = vld [vmem:[#allocation97_spill] sm:$0xff] }
 0x798   :  { %3099 = vmatprep.subr.bf16.mxu0 %v7155_v28  ;;  %3140 = vmatprep.subr.bf16.mxu1 %v5103_v1 }
 0x79a   :  { %3100 = vmatpush1.bf16.msra.mxu0 %v7156_v47  ;;  %3141 = vmatpush1.bf16.msra.mxu1 %v5115_v32 }
 0x79b   :  { %3101 = vmatprep.subr.bf16.mxu0 %v7157_v9  ;;  %3142 = vmatprep.subr.bf16.mxu1 %v5118_v27 }
 0x79e   :  { %3102 = vmatpush1.bf16.msra.mxu0 %v7158_v21  ;;  %3143 = vmatpush1.bf16.msra.mxu1 %v5130_v20 }
 0x79f   :  { %3103 = vmatprep.subr.bf16.mxu0 %v7159_v63  ;;  %3144 = vmatprep.subr.bf16.mxu1 %v5133_v35 }
 0x7a2   :  { %3104 = vmatpush1.bf16.msra.mxu0 %v7160_v62  ;;  %3145 = vmatpush1.bf16.msra.mxu1 %v5144_v4 }
 0x7a3   :  { %3105 = vmatprep.subr.bf16.mxu0 %v7161_v8  ;;  %3146 = vmatprep.subr.bf16.mxu1 %v5147_v61 }
 0x7a6   :  { %3106 = vmatpush1.bf16.msra.mxu0 %v7162_v13  ;;  %3147 = vmatpush1.bf16.msra.mxu1 %v5158_v7 }
 0x7a7   :  { %3107 = vmatprep.subr.bf16.mxu0 %v7163_v49  ;;  %3148 = vmatprep.subr.bf16.mxu1 %v5161_v43 }
 0x7aa   :  { %3108 = vmatpush1.bf16.msra.mxu0 %v7164_v52  ;;  %3149 = vmatpush1.bf16.msra.mxu1 %v5172_v53 }
 0x7ab   :  { %3109 = vmatprep.subr.bf16.mxu0 %v7165_v59  ;;  %3150 = vmatprep.subr.bf16.mxu1 %v5175_v12 }
 0x7ae   :  { %3110 = vmatpush1.bf16.msra.mxu0 %v7166_v11  ;;  %3151 = vmatpush1.bf16.msra.mxu1 %v5186_v14 }
 0x7af   :  { %3111 = vmatprep.subr.bf16.mxu0 %v7167_v55  ;;  %3152 = vmatprep.subr.bf16.mxu1 %v5189_v16 }
 0x7b2   :  { %3112 = vmatpush1.bf16.msra.mxu0 %v7168_v46  ;;  %3153 = vmatpush1.bf16.msra.mxu1 %v5200_v22 }
 0x7b3   :  { %3113 = vmatprep.subr.bf16.mxu0 %v7169_v17  ;;  %3154 = vmatprep.subr.bf16.mxu1 %v5203_v24 }
 0x7b6   :  { %3114 = vmatpush2.bf16.msra.mxu0 %v7170_v40  ;;  %3155 = vmatpush2.bf16.msra.mxu1 %v5214_v31 }
 0x7b7   :  { %3115 = vmatprep.subr.bf16.mxu0 %v7171_v44  ;;  %3156 = vmatprep.subr.bf16.mxu1 %v7254_v26 }
 0x7ba   :  { %3116 = vmatpush2.bf16.msra.mxu0 %v7172_v23  ;;  %3157 = vmatpush2.bf16.msra.mxu1 %v7255_v45 }
 0x7bb   :  { %3117 = vmatprep.subr.bf16.mxu0 %v7173_v38  ;;  %3158 = vmatprep.subr.bf16.mxu1 %v7650_v19 }
 0x7be   :  { %3118 = vmatpush2.bf16.msra.mxu0 %v7651_v58  ;;  %3159 = vmatpush2.bf16.msra.mxu1 %v7652_v18 }
 0x7bf   :  { %3119 = vmatprep.subr.bf16.mxu0 %v7653_v10  ;;  %3160 = vmatprep.subr.bf16.mxu1 %v7654_v54 }
 0x7c2   :  { %3120 = vmatpush2.bf16.msra.mxu0 %v7655_v34  ;;  %3161 = vmatpush2.bf16.msra.mxu1 %v7656_v56  ;;  %v7741_v56 = vld [vmem:[#allocation154_spill] sm:$0xff] }
 0x7c3   :  { %3121 = vmatprep.subr.bf16.mxu0 %v7657_v42  ;;  %3162 = vmatprep.subr.bf16.mxu1 %v7658_v30  ;;  %v7739_v30 = vld [vmem:[#allocation153_spill] sm:$0xff]  ;;  %v7740_v42 = vld [vmem:[#allocation134_spill] sm:$0xff] }
 0x7c6   :  { %3122 = vmatpush2.bf16.msra.mxu0 %v7659_v15  ;;  %3163 = vmatpush2.bf16.msra.mxu1 %v7660_v39 }
 0x7c7   :  { %3123 = vmatprep.subr.bf16.mxu0 %v7661_v33  ;;  %3164 = vmatprep.subr.bf16.mxu1 %v7662_v51  ;;  %v7672_v33 = vld [vmem:[#allocation114_spill] sm:$0xff]  ;;  %v7673_v51 = vld [vmem:[#allocation4_spill] sm:$0xff] }
 0x7ca   :  { %3124 = vmatpush2.bf16.msra.mxu0 %v7663_v6  ;;  %3165 = vmatpush2.bf16.msra.mxu1 %v7664_v57  ;;  %v7674_v6 = vld [vmem:[#allocation36_spill] sm:$0xff] }
 0x7cb   :  { %3125 = vmatprep.subr.bf16.mxu0 %v7665_v3  ;;  %3166 = vmatprep.subr.bf16.mxu1 %v7666_v29  ;;  %v7675_v29 = vld [vmem:[#allocation5_spill] sm:$0xff]  ;;  %v7684_v3 = vld [vmem:[#allocation46_spill] sm:$0xff] }
 0x7ce   :  { %3126 = vmatpush2.bf16.msra.mxu0 %v7667_v5  ;;  %3167 = vmatpush2.bf16.msra.mxu1 %v7668_v25  ;;  %v7676_v5 = vld [vmem:[#allocation38_spill] sm:$0xff] }
 0x7cf   :  { %3127 = vmatprep.subr.bf16.mxu0 %v7669_v48  ;;  %3168 = vmatprep.subr.bf16.mxu1 %v7670_v41  ;;  %v7677_v25 = vld [vmem:[#allocation6_spill] sm:$0xff]  ;;  %v7678_v48 = vld [vmem:[#allocation40_spill] sm:$0xff]  ;;  %v7679_v41 = vld [vmem:[#allocation7_spill] sm:$0xff] }
 0x7d2   :  { %3128 = vmatpush2.bf16.msra.mxu0 %v7671_v36  ;;  %3169 = vmatpush2.bf16.msra.mxu1 %v7672_v33  ;;  %v7680_v36 = vld [vmem:[#allocation42_spill] sm:$0xff]  ;;  %v7681_v33 = vld [vmem:[#allocation8_spill] sm:$0xff] }
 0x7d3   :  { %3246 = vmatprep.subr.bf16.mxu0 %v7673_v51  ;;  %3287 = vmatprep.subr.bf16.mxu1 %v7674_v6  ;;  %v7682_v51 = vld [vmem:[#allocation44_spill] sm:$0xff]  ;;  %v7683_v6 = vld [vmem:[#allocation9_spill] sm:$0xff] }
 0x7d5   :  { %3130 = vmatmul.mubr.bf16.vlgmr.msra.gmra.mxu0 %v6397_v2  ;;  %3171 = vmatmul.mubr.bf16.vlgmr.msra.gmra.mxu1 %v6397_v2  ;;  %v7685_v2 = vld [vmem:[#allocation10_spill] sm:$0xff] }
 0x7d6   :  { %3247 = vmatpush1.bf16.msra.mxu0 %v7675_v29  ;;  %3288 = vmatpush1.bf16.msra.mxu1 %v7676_v5  ;;  %v7686_v29 = vld [vmem:[#allocation48_spill] sm:$0xff]  ;;  %v7687_v5 = vld [vmem:[#allocation11_spill] sm:$0xff] }
 0x7d7   :  { %3248 = vmatprep.subr.bf16.mxu0 %v7677_v25  ;;  %3289 = vmatprep.subr.bf16.mxu1 %v7678_v48  ;;  %v7688_v25 = vld [vmem:[#allocation50_spill] sm:$0xff]  ;;  %v7689_v48 = vld [vmem:[#allocation12_spill] sm:$0xff] }
 0x7da   :  { %3249 = vmatpush1.bf16.msra.mxu0 %v7679_v41  ;;  %3290 = vmatpush1.bf16.msra.mxu1 %v7680_v36  ;;  %v7690_v41 = vld [vmem:[#allocation52_spill] sm:$0xff]  ;;  %v7691_v36 = vld [vmem:[#allocation13_spill] sm:$0xff] }
 0x7db   :  { %3250 = vmatprep.subr.bf16.mxu0 %v7681_v33  ;;  %3291 = vmatprep.subr.bf16.mxu1 %v7682_v51  ;;  %v7692_v33 = vld [vmem:[#allocation54_spill] sm:$0xff] }
 0x7dc   :  { %v7693_v51 = vld [vmem:[#allocation14_spill] sm:$0xff] }
 0x7de   :  { %3251 = vmatpush1.bf16.msra.mxu0 %v7683_v6  ;;  %3292 = vmatpush1.bf16.msra.mxu1 %v7684_v3  ;;  %v7694_v6 = vld [vmem:[#allocation56_spill] sm:$0xff]  ;;  %v7695_v3 = vld [vmem:[#allocation15_spill] sm:$0xff] }
 0x7df   :  { %3252 = vmatprep.subr.bf16.mxu0 %v7685_v2  ;;  %3293 = vmatprep.subr.bf16.mxu1 %v7686_v29  ;;  %v7696_v2 = vld [vmem:[#allocation58_spill] sm:$0xff]  ;;  %v7697_v29 = vld [vmem:[#allocation16_spill] sm:$0xff] }
 0x7e2   :  { %3253 = vmatpush1.bf16.msra.mxu0 %v7687_v5  ;;  %3294 = vmatpush1.bf16.msra.mxu1 %v7688_v25  ;;  %v7698_v5 = vld [vmem:[#allocation60_spill] sm:$0xff]  ;;  %v7699_v25 = vld [vmem:[#allocation17_spill] sm:$0xff] }
 0x7e3   :  { %3254 = vmatprep.subr.bf16.mxu0 %v7689_v48  ;;  %3295 = vmatprep.subr.bf16.mxu1 %v7690_v41  ;;  %v7700_v48 = vld [vmem:[#allocation62_spill] sm:$0xff] }
 0x7e4   :  { %v7701_v41 = vld [vmem:[#allocation18_spill] sm:$0xff] }
 0x7e6   :  { %3255 = vmatpush1.bf16.msra.mxu0 %v7691_v36  ;;  %3296 = vmatpush1.bf16.msra.mxu1 %v7692_v33  ;;  %v7702_v36 = vld [vmem:[#allocation64_spill] sm:$0xff]  ;;  %v7703_v33 = vld [vmem:[#allocation19_spill] sm:$0xff] }
 0x7e7   :  { %3256 = vmatprep.subr.bf16.mxu0 %v7693_v51  ;;  %3297 = vmatprep.subr.bf16.mxu1 %v7694_v6  ;;  %v7704_v51 = vld [vmem:[#allocation66_spill] sm:$0xff]  ;;  %v7705_v6 = vld [vmem:[#allocation20_spill] sm:$0xff] }
 0x7ea   :  { %3257 = vmatpush1.bf16.msra.mxu0 %v7695_v3  ;;  %3298 = vmatpush1.bf16.msra.mxu1 %v7696_v2  ;;  %v7706_v3 = vld [vmem:[#allocation68_spill] sm:$0xff]  ;;  %v7707_v2 = vld [vmem:[#allocation21_spill] sm:$0xff] }
 0x7eb   :  { %3258 = vmatprep.subr.bf16.mxu0 %v7697_v29  ;;  %3299 = vmatprep.subr.bf16.mxu1 %v7698_v5  ;;  %v7708_v29 = vld [vmem:[#allocation70_spill] sm:$0xff] }
 0x7ec   :  { %v7709_v5 = vld [vmem:[#allocation22_spill] sm:$0xff] }
 0x7ee   :  { %3259 = vmatpush1.bf16.msra.mxu0 %v7699_v25  ;;  %3300 = vmatpush1.bf16.msra.mxu1 %v7700_v48  ;;  %v7710_v25 = vld [vmem:[#allocation72_spill] sm:$0xff]  ;;  %v7711_v48 = vld [vmem:[#allocation23_spill] sm:$0xff] }
 0x7ef   :  { %3260 = vmatprep.subr.bf16.mxu0 %v7701_v41  ;;  %3301 = vmatprep.subr.bf16.mxu1 %v7702_v36  ;;  %v7712_v41 = vld [vmem:[#allocation74_spill] sm:$0xff]  ;;  %v7713_v36 = vld [vmem:[#allocation24_spill] sm:$0xff] }
 0x7f2   :  { %3261 = vmatpush1.bf16.msra.mxu0 %v7703_v33  ;;  %3302 = vmatpush1.bf16.msra.mxu1 %v7704_v51  ;;  %v7714_v33 = vld [vmem:[#allocation76_spill] sm:$0xff]  ;;  %v7715_v51 = vld [vmem:[#allocation25_spill] sm:$0xff] }
 0x7f3   :  { %3262 = vmatprep.subr.bf16.mxu0 %v7705_v6  ;;  %3303 = vmatprep.subr.bf16.mxu1 %v7706_v3  ;;  %v7716_v6 = vld [vmem:[#allocation78_spill] sm:$0xff] }
 0x7f4   :  { %v7717_v3 = vld [vmem:[#allocation26_spill] sm:$0xff] }
 0x7f6   :  { %3263 = vmatpush2.bf16.msra.mxu0 %v7707_v2  ;;  %3304 = vmatpush2.bf16.msra.mxu1 %v7708_v29  ;;  %v7718_v2 = vld [vmem:[#allocation80_spill] sm:$0xff]  ;;  %v7719_v29 = vld [vmem:[#allocation27_spill] sm:$0xff] }
 0x7f7   :  { %3264 = vmatprep.subr.bf16.mxu0 %v7709_v5  ;;  %3305 = vmatprep.subr.bf16.mxu1 %v7710_v25  ;;  %v7720_v5 = vld [vmem:[#allocation82_spill] sm:$0xff]  ;;  %v7721_v25 = vld [vmem:[#allocation28_spill] sm:$0xff] }
 0x7fa   :  { %3265 = vmatpush2.bf16.msra.mxu0 %v7711_v48  ;;  %3306 = vmatpush2.bf16.msra.mxu1 %v7712_v41  ;;  %v7722_v48 = vld [vmem:[#allocation84_spill] sm:$0xff]  ;;  %v7723_v41 = vld [vmem:[#allocation29_spill] sm:$0xff] }
 0x7fb   :  { %3266 = vmatprep.subr.bf16.mxu0 %v7713_v36  ;;  %3307 = vmatprep.subr.bf16.mxu1 %v7714_v33  ;;  %v7724_v36 = vld [vmem:[#allocation86_spill] sm:$0xff] }
 0x7fc   :  { %v7725_v33 = vld [vmem:[#allocation30_spill] sm:$0xff] }
 0x7fe   :  { %3267 = vmatpush2.bf16.msra.mxu0 %v7715_v51  ;;  %3308 = vmatpush2.bf16.msra.mxu1 %v7716_v6  ;;  %v7726_v51 = vld [vmem:[#allocation88_spill] sm:$0xff]  ;;  %v7727_v6 = vld [vmem:[#allocation31_spill] sm:$0xff] }
 0x7ff   :  { %3268 = vmatprep.subr.bf16.mxu0 %v7717_v3  ;;  %3309 = vmatprep.subr.bf16.mxu1 %v7718_v2  ;;  %v7728_v3 = vld [vmem:[#allocation90_spill] sm:$0xff]  ;;  %v7729_v2 = vld [vmem:[#allocation32_spill] sm:$0xff] }
 0x802   :  { %3269 = vmatpush2.bf16.msra.mxu0 %v7719_v29  ;;  %3310 = vmatpush2.bf16.msra.mxu1 %v7720_v5  ;;  %v7730_v29 = vld [vmem:[#allocation92_spill] sm:$0xff]  ;;  %v7731_v5 = vld [vmem:[#allocation33_spill] sm:$0xff] }
 0x803   :  { %3270 = vmatprep.subr.bf16.mxu0 %v7721_v25  ;;  %3311 = vmatprep.subr.bf16.mxu1 %v7722_v48  ;;  %v7732_v25 = vld [vmem:[#allocation94_spill] sm:$0xff] }
 0x804   :  { %v7733_v48 = vld [vmem:[#allocation34_spill] sm:$0xff] }
 0x806   :  { %3271 = vmatpush2.bf16.msra.mxu0 %v7723_v41  ;;  %3312 = vmatpush2.bf16.msra.mxu1 %v7724_v36  ;;  %v7734_v41 = vld [vmem:[#allocation96_spill] sm:$0xff]  ;;  %v7735_v36 = vld [vmem:[#allocation35_spill] sm:$0xff] }
 0x807   :  { %3272 = vmatprep.subr.bf16.mxu0 %v7725_v33  ;;  %3313 = vmatprep.subr.bf16.mxu1 %v7726_v51  ;;  %v7736_v33 = vld [vmem:[#allocation98_spill] sm:$0xff]  ;;  %v7737_v51 = vld [vmem:[#allocation37_spill] sm:$0xff] }
 0x80a   :  { %3273 = vmatpush2.bf16.msra.mxu0 %v7727_v6  ;;  %3314 = vmatpush2.bf16.msra.mxu1 %v7728_v3  ;;  %v7738_v6 = vld [vmem:[#allocation100_spill] sm:$0xff] }
 0x80b   :  { %3274 = vmatprep.subr.bf16.mxu0 %v7729_v2  ;;  %3315 = vmatprep.subr.bf16.mxu1 %v7730_v29 }
 0x80e   :  { %3275 = vmatpush2.bf16.msra.mxu0 %v7731_v5  ;;  %3316 = vmatpush2.bf16.msra.mxu1 %v7732_v25 }
 0x80f   :  { %3276 = vmatprep.subr.bf16.mxu0 %v7733_v48  ;;  %3317 = vmatprep.subr.bf16.mxu1 %v7734_v41 }
 0x812   :  { %3277 = vmatpush2.bf16.msra.mxu0 %v7735_v36  ;;  %3318 = vmatpush2.bf16.msra.mxu1 %v7736_v33  ;;  %v7742_v33 = vld [vmem:[#allocation136_spill] sm:$0xff] }
 0x813   :  { %3328 = vmatprep.subr.bf16.mxu0 %v7737_v51  ;;  %3369 = vmatprep.subr.bf16.mxu1 %v7738_v6 }
 0x855   :  { %v3049_v3 = vpop.f32.mrf.mxu0  ;;  %v3090_v2 = vpop.f32.mrf.mxu1 }
 0x856   :  { %v3181_v48 = vadd.f32 %v3090_v2, %v7739_v30  ;;  %v3179_v41 = vadd.f32 %v3049_v3, %v7740_v42  ;;  %v7744_v42 = vld [vmem:[#allocation139_spill] sm:$0xff] }
 0x857   :  { %v3051_v57 = vpop.f32.mrf.mxu0  ;;  %v3092_v29 = vpop.f32.mrf.mxu1 }
 0x858   :  { %v3182_v36 = vadd.f32 %v3092_v29, %v7741_v56  ;;  %v3195_v34 = vmul.f32 0.5, %v3181_v48  ;;  %v3180_v54 = vadd.f32 %v3051_v57, %v7742_v33  ;;  %v3187_v51 = vmul.f32 0.5, %v3179_v41 }
 0x859   :  { %v3053_v39 = vpop.f32.mrf.mxu0  ;;  %v3094_v5 = vpop.f32.mrf.mxu1 }
 0x85a   :  { %v3196_v10 = vmul.f32 0.5, %v3182_v36  ;;  %4166 = vtanh.f32 %v3195_v34  ;;  %v3188_v6 = vmul.f32 0.5, %v3180_v54  ;;  %v7745_v34 = vld [vmem:[#allocation165_spill] sm:$0xff] }
 0x85b   :  { %v3054_v15 = vpop.f32.mrf.mxu0  ;;  %v3095_v25 = vpop.f32.mrf.mxu1  ;;  %4168 = vtanh.f32 %v3187_v51 }
 0x85c   :  { %4170 = vtanh.f32 %v3196_v10  ;;  %v7743_v15 = vld [vmem:[#allocation137_spill] sm:$0xff]  ;;  %v7746_v10 = vld [vmem:[#allocation166_spill] sm:$0xff] }
 0x85d   :  { %4172 = vtanh.f32 %v3188_v6 }
 0x867   :  { %v4167_v29 = vpop.eup %4166 }
 0x868   :  { %v4169_v41 = vpop.eup %4168  ;;  %v3199_v51 = vmul.f32 0.5, %v4167_v29 }
 0x869   :  { %v4171_v33 = vpop.eup %4170 }
 0x86a   :  { %v4173_v6 = vpop.eup %4172  ;;  %v3200_v58 = vmul.f32 0.5, %v4171_v33  ;;  %v3201_v19 = vadd.f32 0.5, %v3199_v51 }
 0x895   :  { %v3131_v39 = vpop.f32.mrf.mxu0  ;;  %v3172_v5 = vpop.f32.mrf.mxu1 }
 0x896   :  { %v3183_v25 = vadd.f32 %v3131_v39, %v7743_v15  ;;  %v3185_v54 = vadd.f32 %v3172_v5, %v7745_v34  ;;  %v3191_v39 = vmul.f32 0.5, %v4169_v41 }
 0x897   :  { %v3133_v18 = vpop.f32.mrf.mxu0  ;;  %v3174_v30 = vpop.f32.mrf.mxu1 }
 0x898   :  { %4174 = vtanh.f32 %v3183_v25  ;;  %v3184_v3 = vadd.f32 %v3133_v18, %v7744_v42  ;;  %v3186_v36 = vadd.f32 %v3174_v30, %v7746_v10  ;;  %v3205_v15 = vmul.f32 0.5, %v3185_v54 }
 0x899   :  { %v3135_v56 = vpop.f32.mrf.mxu0  ;;  %v3176_v2 = vpop.f32.mrf.mxu1  ;;  %v3192_v18 = vmul.f32 0.5, %v4173_v6  ;;  %v3193_v42 = vadd.f32 0.5, %v3191_v39 }
 0x89a   :  { %4176 = vtanh.f32 %v3184_v3  ;;  %v3206_v25 = vmul.f32 0.5, %v3186_v36  ;;  %v3202_v3 = vadd.f32 0.5, %v3200_v58  ;;  %v3213_v2 = vmul.f32 %v3201_v19, %v6382_v50 }
 0x89b   :  { %v3136_v57 = vpop.f32.mrf.mxu0  ;;  %v3177_v48 = vpop.f32.mrf.mxu1  ;;  %4178 = vtanh.f32 %v3205_v15 }
 0x89c   :  { %4180 = vtanh.f32 %v3206_v25  ;;  %v3194_v57 = vadd.f32 0.5, %v3192_v18  ;;  %v3214_v29 = vmul.f32 %v3202_v3, %v6386_v60  ;;  %v4043_v25 = vld [vmem:[%s6728_s6 + $0x8] sm:$0xff]   ;;  %v4044_v18 = vld [vmem:[%s6728_s6 + $0x40] sm:$0xff]   ;;  %v7773_v3 = vld [vmem:[#allocation39_spill] sm:$0xff] }
 0x8a5   :  { %v4175_v56 = vpop.eup %4174 }
 0x8a6   :  { %v3215_v5 = vmul.f32 %v4175_v56, %v3193_v42  ;;  %v4045_v42 = vld [vmem:[%s6728_s6] sm:$0xff]   ;;  %v7772_v56 = vld [vmem:[#allocation169_spill] sm:$0xff] }
 0x8a7   :  { %v4177_v48 = vpop.eup %4176 }
 0x8a8   :  { %v6540_v30 = vadd.f32 %v3215_v5, %v3213_v2  ;;  %v3216_v34 = vmul.f32 %v4177_v48, %v3194_v57  ;;  %v4179_v41 = vpop.eup %4178  ;;  %v3977_v2 = vpack.c.bf16 %v7773_v3, %v7772_v56  ;;  %v7774_v5 = vld [vmem:[#allocation45_spill] sm:$0xff] }
 0x8a9   :  { %v4181_v10 = vpop.eup %4180  ;;  %v3209_v58 = vmul.f32 0.5, %v4179_v41  ;;  %v7775_v57 = vld [vmem:[#allocation49_spill] sm:$0xff] }
 0x8aa   :  { %4182 = vtanh.f32 %v6540_v30  ;;  %v6544_v54 = vadd.f32 %v3216_v34, %v3214_v29  ;;  %v3210_v36 = vmul.f32 0.5, %v4181_v10  ;;  %v3980_v48 = vpack.c.bf16 %v7775_v57, %v7774_v5  ;;  %v7776_v29 = vld [vmem:[#allocation43_spill] sm:$0xff]  ;;  %v7778_v10 = vld [vmem:[#allocation53_spill] sm:$0xff] }
 0x8ab   :  { %v3211_v50 = vadd.f32 0.5, %v3209_v58  ;;  %v7777_v34 = vld [vmem:[#allocation47_spill] sm:$0xff]  ;;  %v7779_v58 = vld [vmem:[#allocation57_spill] sm:$0xff] }
 0x8ac   :  { %4184 = vtanh.f32 %v6544_v54  ;;  %v3212_v19 = vadd.f32 0.5, %v3210_v36  ;;  %v3979_v41 = vpack.c.bf16 %v7777_v34, %v7776_v29  ;;  %v3982_v36 = vpack.c.bf16 %v7779_v58, %v7778_v10 }
 0x8b7   :  { %v4183_v33 = vpop.eup %4182 }
 0x8b8   :  { %v6547_v6 = vmul.f32 %v4183_v33, %v3211_v50  ;;  %v7780_v33 = vld [vmem:[#allocation51_spill] sm:$0xff] }
 0x8b9   :  { %v4185_v51 = vpop.eup %4184  ;;  %v7781_v50 = vld [vmem:[#allocation55_spill] sm:$0xff] }
 0x8ba   :  { %v6549_v39 = vmul.f32 %v4185_v51, %v3212_v19  ;;  %v6555_v15 = vpack.c.bf16 %v6547_v6, %v6547_v6  ;;  %v3981_v19 = vpack.c.bf16 %v7781_v50, %v7780_v33 }
 0x8bc   :  { %v3224_v60 = vpack.c.bf16 %v6549_v39, %v6549_v39 }
 0x8be   :  { %3278 = vmatprep.mubr.bf16.mxu0 %v3224_v60  ;;  %3319 = vmatprep.mubr.bf16.mxu1 %v3224_v60 }
 0x8bf   :  { %3279 = vmatmul.mubr.bf16.vlgmr.msra.gmra.mxu0 %v6555_v15  ;;  %3320 = vmatmul.mubr.bf16.vlgmr.msra.gmra.mxu1 %v6555_v15 }
 0x8c0   :  { %3329 = vmatpush1.bf16.msra.mxu0 %v7154_v37  ;;  %3370 = vmatpush1.bf16.msra.mxu1 %v5099_v0  ;;  %v7747_v0 = vld [vmem:[#allocation103_spill] sm:$0xff] }
 0x8c1   :  { %3360 = vmatprep.mubr.bf16.mxu0 %v3224_v60  ;;  %3401 = vmatprep.mubr.bf16.mxu1 %v3224_v60  ;;  %v7764_v37 = vld [vmem:[#allocation95_spill] sm:$0xff] }
 0x8c2   :  { %3330 = vmatprep.subr.bf16.mxu0 %v7155_v28  ;;  %3371 = vmatprep.subr.bf16.mxu1 %v5103_v1  ;;  %v7748_v1 = vld [vmem:[#allocation79_spill] sm:$0xff]  ;;  %v7765_v28 = vld [vmem:[#allocation112_spill] sm:$0xff] }
 0x8c4   :  { %3331 = vmatpush1.bf16.msra.mxu0 %v7156_v47  ;;  %3372 = vmatpush1.bf16.msra.mxu1 %v5115_v32  ;;  %v7749_v32 = vld [vmem:[#allocation104_spill] sm:$0xff]  ;;  %v7766_v47 = vld [vmem:[#allocation97_spill] sm:$0xff] }
 0x8c5   :  { %3332 = vmatprep.subr.bf16.mxu0 %v7157_v9  ;;  %3373 = vmatprep.subr.bf16.mxu1 %v5118_v27  ;;  %v7750_v27 = vld [vmem:[#allocation81_spill] sm:$0xff] }
 0x8c6   :  { %v7767_v9 = vld [vmem:[#allocation113_spill] sm:$0xff] }
 0x8c8   :  { %3333 = vmatpush1.bf16.msra.mxu0 %v7158_v21  ;;  %3374 = vmatpush1.bf16.msra.mxu1 %v5130_v20  ;;  %v7751_v20 = vld [vmem:[#allocation105_spill] sm:$0xff]  ;;  %v4030_v21 = vld [vmem:[%s6728_s6 + $0x78] sm:$0xff]  }
 0x8c9   :  { %3334 = vmatprep.subr.bf16.mxu0 %v7159_v63  ;;  %3375 = vmatprep.subr.bf16.mxu1 %v5133_v35  ;;  %v7752_v35 = vld [vmem:[#allocation83_spill] sm:$0xff] }
 0x8ca   :  { %v7768_v63 = vld [vmem:[#allocation99_spill] sm:$0xff] }
 0x8cc   :  { %3335 = vmatpush1.bf16.msra.mxu0 %v7160_v62  ;;  %3376 = vmatpush1.bf16.msra.mxu1 %v5144_v4  ;;  %v7753_v4 = vld [vmem:[#allocation106_spill] sm:$0xff] }
 0x8cd   :  { %3336 = vmatprep.subr.bf16.mxu0 %v7161_v8  ;;  %3377 = vmatprep.subr.bf16.mxu1 %v5147_v61  ;;  %v7754_v61 = vld [vmem:[#allocation85_spill] sm:$0xff]  ;;  %v7769_v62 = vld [vmem:[#allocation114_spill] sm:$0xff]  ;;  %v4031_v8 = vld [vmem:[%s6728_s6 + $0x38] sm:$0xff]  }
 0x8d0   :  { %3337 = vmatpush1.bf16.msra.mxu0 %v7162_v13  ;;  %3378 = vmatpush1.bf16.msra.mxu1 %v5158_v7  ;;  %v7755_v7 = vld [vmem:[#allocation107_spill] sm:$0xff]  ;;  %v4032_v13 = vld [vmem:[%s6728_s6 + $0x70] sm:$0xff]  }
 0x8d1   :  { %3338 = vmatprep.subr.bf16.mxu0 %v7163_v49  ;;  %3379 = vmatprep.subr.bf16.mxu1 %v5161_v43  ;;  %v7756_v43 = vld [vmem:[#allocation87_spill] sm:$0xff]  ;;  %v7770_v49 = vld [vmem:[#allocation170_spill] sm:$0xff] }
 0x8d4   :  { %3339 = vmatpush1.bf16.msra.mxu0 %v7164_v52  ;;  %3380 = vmatpush1.bf16.msra.mxu1 %v5172_v53  ;;  %v7757_v53 = vld [vmem:[#allocation108_spill] sm:$0xff]  ;;  %v7771_v52 = vld [vmem:[#allocation41_spill] sm:$0xff] }
 0x8d5   :  { %3340 = vmatprep.subr.bf16.mxu0 %v7165_v59  ;;  %3381 = vmatprep.subr.bf16.mxu1 %v5175_v12  ;;  %v7758_v12 = vld [vmem:[#allocation89_spill] sm:$0xff]  ;;  %v3978_v59 = vpack.c.bf16 %v7771_v52, %v7770_v49  ;;  %v7788_v52 = vld [vmem:[#allocation167_spill] sm:$0xff] }
 0x8d8   :  { %3341 = vmatpush1.bf16.msra.mxu0 %v7166_v11  ;;  %3382 = vmatpush1.bf16.msra.mxu1 %v5186_v14  ;;  %v7759_v14 = vld [vmem:[#allocation109_spill] sm:$0xff]  ;;  %v4033_v11 = vld [vmem:[%s6728_s6 + $0x30] sm:$0xff]  }
 0x8d9   :  { %3342 = vmatprep.subr.bf16.mxu0 %v7167_v55  ;;  %3383 = vmatprep.subr.bf16.mxu1 %v5189_v16  ;;  %v7760_v16 = vld [vmem:[#allocation91_spill] sm:$0xff]  ;;  %v4034_v55 = vld [vmem:[%s6728_s6 + $0x68] sm:$0xff]  }
 0x8dc   :  { %3343 = vmatpush1.bf16.msra.mxu0 %v7168_v46  ;;  %3384 = vmatpush1.bf16.msra.mxu1 %v5200_v22  ;;  %v7761_v22 = vld [vmem:[#allocation110_spill] sm:$0xff]  ;;  %v4035_v46 = vld [vmem:[%s6728_s6 + $0x28] sm:$0xff]  }
 0x8dd   :  { %3344 = vmatprep.subr.bf16.mxu0 %v7169_v17  ;;  %3385 = vmatprep.subr.bf16.mxu1 %v5203_v24  ;;  %v7762_v24 = vld [vmem:[#allocation93_spill] sm:$0xff]  ;;  %v4036_v17 = vld [vmem:[%s6728_s6 + $0x60] sm:$0xff]  }
 0x8e0   :  { %3345 = vmatpush2.bf16.msra.mxu0 %v7170_v40  ;;  %3386 = vmatpush2.bf16.msra.mxu1 %v5214_v31  ;;  %v7763_v31 = vld [vmem:[#allocation111_spill] sm:$0xff]  ;;  %v4037_v40 = vld [vmem:[%s6728_s6 + $0x20] sm:$0xff]  }
 0x8e1   :  { %3346 = vmatprep.subr.bf16.mxu0 %v7171_v44  ;;  %3387 = vmatprep.subr.bf16.mxu1 %v7254_v26  ;;  %v4038_v44 = vld [vmem:[%s6728_s6 + $0x58] sm:$0xff]   ;;  %v4041_v26 = vld [vmem:[%s6728_s6 + $0x10] sm:$0xff]  }
 0x8e4   :  { %3347 = vmatpush2.bf16.msra.mxu0 %v7172_v23  ;;  %3388 = vmatpush2.bf16.msra.mxu1 %v7255_v45  ;;  %v4039_v23 = vld [vmem:[%s6728_s6 + $0x18] sm:$0xff]   ;;  %v4042_v45 = vld [vmem:[%s6728_s6 + $0x48] sm:$0xff]  }
 0x8e5   :  { %3348 = vmatprep.subr.bf16.mxu0 %v7173_v38  ;;  %3389 = vmatprep.subr.bf16.mxu1 %v7747_v0  ;;  %v4040_v38 = vld [vmem:[%s6728_s6 + $0x50] sm:$0xff]  }
 0x8e8   :  { %3349 = vmatpush2.bf16.msra.mxu0 %v7748_v1  ;;  %3390 = vmatpush2.bf16.msra.mxu1 %v7749_v32 }
 0x8e9   :  { %3350 = vmatprep.subr.bf16.mxu0 %v7750_v27  ;;  %3391 = vmatprep.subr.bf16.mxu1 %v7751_v20 }
 0x8ec   :  { %3351 = vmatpush2.bf16.msra.mxu0 %v7752_v35  ;;  %3392 = vmatpush2.bf16.msra.mxu1 %v7753_v4  ;;  %v7782_v35 = vld [vmem:[#allocation155_spill] sm:$0xff] }
 0x8ed   :  { %3352 = vmatprep.subr.bf16.mxu0 %v7754_v61  ;;  %3393 = vmatprep.subr.bf16.mxu1 %v7755_v7  ;;  %v7783_v61 = vld [vmem:[#allocation138_spill] sm:$0xff] }
 0x8f0   :  { %3353 = vmatpush2.bf16.msra.mxu0 %v7756_v43  ;;  %3394 = vmatpush2.bf16.msra.mxu1 %v7757_v53  ;;  %v7784_v43 = vld [vmem:[#allocation156_spill] sm:$0xff] }
 0x8f1   :  { %3354 = vmatprep.subr.bf16.mxu0 %v7758_v12  ;;  %3395 = vmatprep.subr.bf16.mxu1 %v7759_v14  ;;  %v7785_v14 = vld [vmem:[#allocation140_spill] sm:$0xff] }
 0x8f4   :  { %3355 = vmatpush2.bf16.msra.mxu0 %v7760_v16  ;;  %3396 = vmatpush2.bf16.msra.mxu1 %v7761_v22 }
 0x8f5   :  { %3356 = vmatprep.subr.bf16.mxu0 %v7762_v24  ;;  %3397 = vmatprep.subr.bf16.mxu1 %v7763_v31 }
 0x8f8   :  { %3357 = vmatpush2.bf16.msra.mxu0 %v7764_v37  ;;  %3398 = vmatpush2.bf16.msra.mxu1 %v7765_v28 }
 0x8f9   :  { %3358 = vmatprep.subr.bf16.mxu0 %v7766_v47  ;;  %3399 = vmatprep.subr.bf16.mxu1 %v7767_v9  ;;  %v7786_v47 = vld [vmem:[#allocation141_spill] sm:$0xff] }
 0x8fc   :  { %3359 = vmatpush2.bf16.msra.mxu0 %v7768_v63  ;;  %3400 = vmatpush2.bf16.msra.mxu1 %v7769_v62  ;;  %v7787_v62 = vld [vmem:[#allocation142_spill] sm:$0xff] }
 0x8fd   :  { %3985 = vmatprep.subr.bf16.mxu0 %v4030_v21 }
 0x8ff   :  { %3361 = vmatmul.mubr.bf16.vlgmr.msra.gmra.mxu0 %v6555_v15  ;;  %3402 = vmatmul.mubr.bf16.vlgmr.msra.gmra.mxu1 %v6555_v15 }
 0x900   :  { %3986 = vmatpush3.bf16.msra.mxu0 %v4031_v8  ;;  %3681 = vmatprep.mubr.bf16.mxu0 %v3978_v59 }
 0x901   :  { %3987 = vmatprep.subr.bf16.mxu0 %v4032_v13 }
 0x904   :  { %3988 = vmatpush3.bf16.msra.mxu0 %v4033_v11 }
 0x905   :  { %3989 = vmatprep.subr.bf16.mxu0 %v4034_v55 }
 0x908   :  { %3990 = vmatpush3.bf16.msra.mxu0 %v4035_v46 }
 0x909   :  { %3991 = vmatprep.subr.bf16.mxu0 %v4036_v17 }
 0x90c   :  { %3992 = vmatpush3.bf16.msra.mxu0 %v4037_v40  ;;  %v7789_v40 = vld [vmem:[#allocation168_spill] sm:$0xff] }
 0x90d   :  { %3993 = vmatprep.subr.bf16.mxu0 %v4038_v44 }
 0x910   :  { %3994 = vmatpush3.bf16.msra.mxu0 %v4039_v23 }
 0x911   :  { %3995 = vmatprep.subr.bf16.mxu0 %v4040_v38 }
 0x914   :  { %3996 = vmatpush3.bf16.msra.mxu0 %v4041_v26 }
 0x915   :  { %3997 = vmatprep.subr.bf16.mxu0 %v4042_v45 }
 0x918   :  { %3998 = vmatpush3.bf16.msra.mxu0 %v4043_v25 }
 0x919   :  { %3999 = vmatprep.subr.bf16.mxu0 %v4044_v18 }
 0x91c   :  { %4000 = vmatpush3.bf16.msra.mxu0 %v4045_v42 }
 0x91f   :  { %3682 = vmatmul.mubr.bf16.vlgmr.msra.gmra.mxu0 %v3977_v2 }
 0x920   :  { %3689 = vmatprep.mubr.bf16.mxu0 %v3980_v48 }
 0x927   :  { %3690 = vmatmul.mubr.bf16.gmra.mxu0 %v3979_v41 }
 0x928   :  { %3697 = vmatprep.mubr.bf16.mxu0 %v3982_v36 }
 0x92f   :  { %3698 = vmatmul.mubr.bf16.gmra.mxu0 %v3981_v19 }
 0x97f   :  { %v3280_v51 = vpop.f32.mrf.mxu0  ;;  %v3321_v60 = vpop.f32.mrf.mxu1 }
 0x980   :  { %v3412_v4 = vadd.f32 %v3321_v60, %v7782_v35  ;;  %v3410_v7 = vadd.f32 %v3280_v51, %v7783_v61 }
 0x981   :  { %v3282_v15 = vpop.f32.mrf.mxu0  ;;  %v3323_v0 = vpop.f32.mrf.mxu1 }
 0x982   :  { %v3413_v53 = vadd.f32 %v3323_v0, %v7784_v43  ;;  %v3426_v12 = vmul.f32 0.5, %v3412_v4  ;;  %v3411_v16 = vadd.f32 %v3282_v15, %v7785_v14  ;;  %v3418_v22 = vmul.f32 0.5, %v3410_v7 }
 0x983   :  { %v3284_v1 = vpop.f32.mrf.mxu0  ;;  %v3325_v32 = vpop.f32.mrf.mxu1 }
 0x984   :  { %v3427_v24 = vmul.f32 0.5, %v3413_v53  ;;  %4186 = vtanh.f32 %v3426_v12  ;;  %v3419_v31 = vmul.f32 0.5, %v3411_v16 }
 0x985   :  { %v3285_v27 = vpop.f32.mrf.mxu0  ;;  %v3326_v20 = vpop.f32.mrf.mxu1  ;;  %4188 = vtanh.f32 %v3418_v22 }
 0x986   :  { %4190 = vtanh.f32 %v3427_v24 }
 0x987   :  { %4192 = vtanh.f32 %v3419_v31 }
 0x991   :  { %v4187_v11 = vpop.eup %4186 }
 0x992   :  { %v4189_v17 = vpop.eup %4188  ;;  %v3430_v38 = vmul.f32 0.5, %v4187_v11 }
 0x993   :  { %v4191_v23 = vpop.eup %4190  ;;  %v3422_v25 = vmul.f32 0.5, %v4189_v17 }
 0x994   :  { %v4193_v45 = vpop.eup %4192  ;;  %v3431_v18 = vmul.f32 0.5, %v4191_v23  ;;  %v3432_v56 = vadd.f32 0.5, %v3430_v38 }
 0x995   :  { %v3423_v3 = vmul.f32 0.5, %v4193_v45  ;;  %v3424_v2 = vadd.f32 0.5, %v3422_v25 }
 0x996   :  { %v3433_v57 = vadd.f32 0.5, %v3431_v18  ;;  %v3444_v48 = vmul.f32 %v3432_v56, %v6540_v30  ;;  %v3944_v30 = vld [vmem:[%s6729_s7] ss:$0 sm:$0xff] }
 0x997   :  { %v3425_v34 = vadd.f32 0.5, %v3423_v3 }
 0x998   :  { %v3445_v58 = vmul.f32 %v3433_v57, %v6544_v54 }
 0x9bf   :  { %v3362_v37 = vpop.f32.mrf.mxu0  ;;  %v3403_v28 = vpop.f32.mrf.mxu1 }
 0x9c0   :  { %v3414_v9 = vadd.f32 %v3362_v37, %v7786_v47  ;;  %v3416_v59 = vadd.f32 %v3403_v28, %v7788_v52 }
 0x9c1   :  { %v3364_v21 = vpop.f32.mrf.mxu0  ;;  %v3405_v63 = vpop.f32.mrf.mxu1 }
 0x9c2   :  { %4194 = vtanh.f32 %v3414_v9  ;;  %v3415_v8 = vadd.f32 %v3364_v21, %v7787_v62  ;;  %v3417_v44 = vadd.f32 %v3405_v63, %v7789_v40  ;;  %v3436_v26 = vmul.f32 0.5, %v3416_v59 }
 0x9c3   :  { %v3366_v13 = vpop.f32.mrf.mxu0  ;;  %v3407_v49 = vpop.f32.mrf.mxu1 }
 0x9c4   :  { %4196 = vtanh.f32 %v3415_v8  ;;  %v3437_v42 = vmul.f32 0.5, %v3417_v44 }
 0x9c5   :  { %v3367_v55 = vpop.f32.mrf.mxu0  ;;  %v3408_v46 = vpop.f32.mrf.mxu1  ;;  %4198 = vtanh.f32 %v3436_v26 }
 0x9c6   :  { %4200 = vtanh.f32 %v3437_v42 }
 0x9cf   :  { %v4195_v5 = vpop.eup %4194 }
 0x9d0   :  { %v3446_v29 = vmul.f32 %v4195_v5, %v3424_v2 }
 0x9d1   :  { %v4197_v41 = vpop.eup %4196 }
 0x9d2   :  { %v3448_v10 = vadd.f32 %v3446_v29, %v3444_v48  ;;  %v3447_v36 = vmul.f32 %v4197_v41, %v3425_v34  ;;  %v4199_v50 = vpop.eup %4198 }
 0x9d3   :  { %v4201_v19 = vpop.eup %4200  ;;  %v3440_v51 = vmul.f32 0.5, %v4199_v50 }
 0x9d4   :  { %4202 = vtanh.f32 %v3448_v10  ;;  %v3449_v33 = vadd.f32 %v3447_v36, %v3445_v58  ;;  %v3441_v60 = vmul.f32 0.5, %v4201_v19 }
 0x9d5   :  { %v3442_v0 = vadd.f32 0.5, %v3440_v51 }
 0x9d6   :  { %4204 = vtanh.f32 %v3449_v33  ;;  %v3443_v35 = vadd.f32 0.5, %v3441_v60 }
 0x9df   :  { %v4001_v15 = vpop.f32.mrf.mxu0 }
 0x9e1   :  { %v4203_v1 = vpop.eup %4202  ;;  %v4002_v32 = vpop.f32.mrf.mxu0 }
 0x9e2   :  { %v4003_v27 = vadd.f32 %v4002_v32, %v4001_v15  ;;  %v3452_v20 = vmul.f32 %v4203_v1, %v3442_v0 }
 0x9e3   :  { %v4004_v54 = vpop.f32.mrf.mxu0  ;;  %v4205_v4 = vpop.eup %4204 }
 0x9e4   :  { %v3684_v61 = vadd.f32 %v4003_v27, %v3944_v30  ;;  %v3453_v43 = vmul.f32 %v4205_v4, %v3443_v35  ;;  %v3983_v22 = vpack.c.bf16 %v3452_v20, %v6547_v6 }
 0x9e5   :  { %v4005_v7 = vpop.f32.mrf.mxu0 }
 0x9e6   :  { %3714 = vst [vmem:[%s6730_s8] sm:$0xff] %v3684_v61  ;;  %v4006_v53 = vadd.f32 %v4005_v7, %v4004_v54  ;;  %v3984_v14 = vpack.c.bf16 %v3453_v43, %v6549_v39 }
 0x9e7   :  { %v4007_v12 = vpop.f32.mrf.mxu0 }
 0x9e8   :  { %v3687_v16 = vadd.f32 %v4006_v53, %v3944_v30  ;;  %3705 = vmatprep.mubr.bf16.mxu0 %v3984_v14 }
 0x9e9   :  { %v4008_v24 = vpop.f32.mrf.mxu0  ;;  %3706 = vmatmul.mubr.bf16.gmra.mxu0 %v3983_v22 }
 0x9ea   :  { %3715 = vst [vmem:[%s6730_s8 + $0x8] sm:$0xff] %v3687_v16  ;;  %v4009_v31 = vadd.f32 %v4008_v24, %v4007_v12 }
 0x9eb   :  { %v4010_v37 = vpop.f32.mrf.mxu0 }
 0x9ec   :  { %v3692_v28 = vadd.f32 %v4009_v31, %v3944_v30 }
 0x9ed   :  { %v4011_v47 = vpop.f32.mrf.mxu0 }
 0x9ee   :  { %3716 = vst [vmem:[%s6730_s8 + $0x10] sm:$0xff] %v3692_v28  ;;  %v4012_v9 = vadd.f32 %v4011_v47, %v4010_v37 }
 0x9ef   :  { %v4013_v39 = vpop.f32.mrf.mxu0 }
 0x9f0   :  { %v3695_v21 = vadd.f32 %v4012_v9, %v3944_v30 }
 0x9f1   :  { %v4014_v63 = vpop.f32.mrf.mxu0 }
 0x9f2   :  { %3717 = vst [vmem:[%s6730_s8 + $0x18] sm:$0xff] %v3695_v21  ;;  %v4015_v6 = vadd.f32 %v4014_v63, %v4013_v39 }
 0x9f3   :  { %v4016_v62 = vpop.f32.mrf.mxu0 }
 0x9f4   :  { %v3700_v8 = vadd.f32 %v4015_v6, %v3944_v30 }
 0x9f5   :  { %v4017_v13 = vpop.f32.mrf.mxu0 }
 0x9f6   :  { %3718 = vst [vmem:[%s6730_s8 + $0x20] sm:$0xff] %v3700_v8  ;;  %v4018_v49 = vadd.f32 %v4017_v13, %v4016_v62 }
 0x9f8   :  { %v3703_v52 = vadd.f32 %v4018_v49, %v3944_v30 }
 0x9fa   :  { %3719 = vst [vmem:[%s6730_s8 + $0x28] sm:$0xff] %v3703_v52 }
 0xaa9   :  { %v4019_v59 = vpop.f32.mrf.mxu0 }
 0xaab   :  { %v4020_v11 = vpop.f32.mrf.mxu0 }
 0xaac   :  { %v4021_v55 = vadd.f32 %v4020_v11, %v4019_v59 }
 0xaad   :  { %v4022_v46 = vpop.f32.mrf.mxu0 }
 0xaae   :  { %v3708_v17 = vadd.f32 %v4021_v55, %v3944_v30 }
 0xaaf   :  { %v4023_v40 = vpop.f32.mrf.mxu0 }
 0xab0   :  { %3720 = vst [vmem:[%s6730_s8 + $0x30] sm:$0xff] %v3708_v17  ;;  %v4024_v44 = vadd.f32 %v4023_v40, %v4022_v46 }
 0xab2   :  { %v3711_v23 = vadd.f32 %v4024_v44, %v3944_v30 }
 0xab4   :  { %3721 = vst [vmem:[%s6730_s8 + $0x38] sm:$0xff] %v3711_v23 }

</bundles_post_ra>
